<compile_context>
chip_gen: v7x
topology: tpu7x:2x2x1
jax: 0.10.0
libtpu: 0.0.40
codegen_flags: <defaults>
</compile_context>

<pallas_src>
import math

import jax
import jax.numpy as jnp
import numpy as np
from jax.experimental import pallas as pl
from jax.experimental.pallas import tpu as pltpu  # noqa: F401  (TPU backend)

# ----------------------------- config ---------------------------------------
VOCAB = 128
HIDDEN = 64
NUM_HEADS = 4
HEAD_DIM = HIDDEN // NUM_HEADS          # 16
INTERMEDIATE = 128
NUM_LAYERS = 2
ROTARY_DIM = HEAD_DIM // 2              # partial rotary factor 0.5 -> 8
EPS = 1e-5

BATCH = 2
SEQ = 8
PAST = 8
TOTAL = PAST + SEQ                      # 16
BS = BATCH * SEQ                        # 16
BHT = BATCH * NUM_HEADS * TOTAL         # 128
QKVF = 3 * HIDDEN + INTERMEDIATE        # fused Q|K|V|fc1 width = 320
KV_W = 2 * HIDDEN                       # packed K|V lane width = 128

# prologue slab column offsets (all 128-lane aligned starts)
_OH0, _OH1 = 0, VOCAB                   # one-hot ids
_BI0, _BI1 = 128, 128 + BHT             # attention bias (batch+head blocked)
_CO0, _CO1 = 256, 256 + HIDDEN          # cos (full hidden width)
_SI0, _SI1 = 384, 384 + HIDDEN          # sin (full hidden width)
PRO_W = 512

SMALL_W = QKVF                          # small-params slab width = 320
N_SMALL_ROWS = 4 * NUM_LAYERS + 3       # 11

_LOG2_T = TOTAL.bit_length() - 1
_LOG2_HT = (NUM_HEADS * TOTAL).bit_length() - 1
_LOG2_D = HEAD_DIM.bit_length() - 1
assert TOTAL == 1 << _LOG2_T
assert NUM_HEADS * TOTAL == 1 << _LOG2_HT
assert HEAD_DIM == 1 << _LOG2_D


# ----------------------------- in-kernel helpers -----------------------------
def _layernorm(x, g, b):
    mu = jnp.mean(x, axis=-1, keepdims=True)
    xc = x - mu
    var = jnp.mean(xc * xc, axis=-1, keepdims=True)
    return xc * jax.lax.rsqrt(var + EPS) * g + b


def _gelu_new(x):
    return 0.5 * x * (
        1.0 + jnp.tanh(math.sqrt(2.0 / math.pi) * (x + 0.044715 * x * x * x)))


# ----------------------------- fused forward kernel -------------------------
def _fused_forward_kernel(pro_ref, embed_ref, wqkvf_ref, wof_ref, lmr_ref,
                          small_ref, pastkv_ref, logits_ref, kvout_ref):
    f32 = jnp.float32

    slab = pro_ref[...]                                   # [BS, 512]
    onehot = slab[:, _OH0:_OH1]                           # [BS, 128]
    bias = slab[:, _BI0:_BI1]                             # [BS, 128]
    cosf = slab[:, _CO0:_CO1]                             # [BS, 64]
    sinf = slab[:, _SI0:_SI1]                             # [BS, 64]

    small = small_ref[...]                                # [11, 320]
    lmr = lmr_ref[...]                                    # [64, 192]
    lm_w = lmr[:, :VOCAB]                                 # [64, 128]
    rot_m = lmr[:, VOCAB:]                                # [64, 64] rotate-half

    # past cache -> lane-dense output slab (one full write for all layers)
    kvout_ref[:, :, :PAST, :] = pastkv_ref[...]

    # (batch, head) block-structure constants, built once from 2-D iotas
    # (power-of-two shifts only; no extra DMA descriptors).
    r0 = jax.lax.broadcasted_iota(jnp.int32, (BHT, BATCH * TOTAL), 0)
    c0 = jax.lax.broadcasted_iota(jnp.int32, (BHT, BATCH * TOTAL), 1)
    sel = jnp.logical_and((r0 >> _LOG2_HT) == (c0 >> _LOG2_T),
                          (r0 & (TOTAL - 1)) == (c0 & (TOTAL - 1))).astype(f32)
    r1 = jax.lax.broadcasted_iota(jnp.int32, (BHT, HIDDEN), 0)
    c1 = jax.lax.broadcasted_iota(jnp.int32, (BHT, HIDDEN), 1)
    headmask = (((r1 >> _LOG2_T) & (NUM_HEADS - 1)) == (c1 >> _LOG2_D)).astype(f32)
    r2 = jax.lax.broadcasted_iota(jnp.int32, (BHT, BHT), 0)
    c2 = jax.lax.broadcasted_iota(jnp.int32, (BHT, BHT), 1)
    gsum = ((r2 >> _LOG2_T) == (c2 >> _LOG2_T)).astype(f32)

    # embedding gather as one-hot @ table on the MXU
    h = jnp.dot(onehot, embed_ref[...], preferred_element_type=f32)   # [BS, 64]

    for li in range(NUM_LAYERS):
        r = 4 * li
        ln_g = small[r + 0:r + 1, :HIDDEN]
        ln_b = small[r + 1:r + 2, :HIDDEN]
        b_qkvf = small[r + 2:r + 3, :QKVF]
        b_of = small[r + 3:r + 4, :HIDDEN]

        residual = h
        ln = _layernorm(h, ln_g, ln_b)

        # fused Q|K|V|fc1 projection (1/sqrt(D) already folded into Q cols)
        qkvf = jnp.dot(ln, wqkvf_ref[li], preferred_element_type=f32) + b_qkvf
        q = qkvf[:, 0:HIDDEN]
        k = qkvf[:, HIDDEN:2 * HIDDEN]
        v = qkvf[:, 2 * HIDDEN:3 * HIDDEN]
        mlp = _gelu_new(qkvf[:, 3 * HIDDEN:])                         # [BS, 128]

        # full-width partial RoPE: x*cos + (x @ R)*sin (cos=1, sin=0 on pass dims)
        q = q * cosf + jnp.dot(q, rot_m, preferred_element_type=f32) * sinf
        k = k * cosf + jnp.dot(k, rot_m, preferred_element_type=f32) * sinf

        # KV-cache writeback straight into the lane-dense output slab
        kvout_ref[li, :, PAST:, 0:HIDDEN] = k.reshape(BATCH, SEQ, HIDDEN)
        kvout_ref[li, :, PAST:, HIDDEN:] = v.reshape(BATCH, SEQ, HIDDEN)

        # read back full (past+new) K/V for both batches
        kv = kvout_ref[li]                                            # [B, T, 128]
        k_all = kv[:, :, 0:HIDDEN].reshape(BATCH * TOTAL, HIDDEN)     # [32, 64]
        v_all = kv[:, :, HIDDEN:].reshape(BATCH * TOTAL, HIDDEN)

        # (batch, head) block-diagonal attention: all batches & heads in one pass
        k_rows = jnp.dot(sel, k_all, preferred_element_type=f32) * headmask
        v_bd = jnp.dot(sel, v_all, preferred_element_type=f32) * headmask

        s = jax.lax.dot_general(q, k_rows, (((1,), (1,)), ((), ())),
                                preferred_element_type=f32) + bias    # [BS, BHT]
        m = jnp.max(s, axis=-1, keepdims=True)
        p = jnp.exp(s - m)
        denom = jnp.dot(p, gsum, preferred_element_type=f32)          # per-(b,h) sums
        inv = jnp.where(denom > 0.0, pl.reciprocal(denom, approx=True), 0.0)
        attn = jnp.dot(p * inv, v_bd, preferred_element_type=f32)     # [BS, 64]

        # fused o_proj + fc2 as two dots (no concat)
        w_of = wof_ref[li]                                            # [192, 64]
        out = (jnp.dot(attn, w_of[:HIDDEN, :], preferred_element_type=f32)
               + jnp.dot(mlp, w_of[HIDDEN:, :], preferred_element_type=f32))
        h = residual + out + b_of

    fr = 4 * NUM_LAYERS
    fln_g = small[fr + 0:fr + 1, :HIDDEN]
    fln_b = small[fr + 1:fr + 2, :HIDDEN]
    lm_b = small[fr + 2:fr + 3, :VOCAB]
    hf = _layernorm(h, fln_g, fln_b)
    logits_ref[...] = jnp.dot(hf, lm_w, preferred_element_type=jnp.float32) + lm_b


# ----------------------------- prologue helpers (plain JAX) ------------------
def _rope_cos_sin(position_ids, rotary_dim):
    inv_freq = 1.0 / (10000.0 ** (jnp.arange(0, rotary_dim, 2, dtype=jnp.float32)
                                  / rotary_dim))
    freqs = position_ids.astype(jnp.float32)[..., None] * inv_freq   # [B,S,rot/2]
    emb = jnp.concatenate([freqs, freqs], axis=-1)                   # [B,S,rot]
    return jnp.cos(emb), jnp.sin(emb)


def _rotate_half(x):
    half = x.shape[-1] // 2
    return jnp.concatenate([-x[..., half:], x[..., :half]], axis=-1)


def _apply_partial_rope(x, cos, sin, rotary_dim):
    x_rot, x_pass = x[..., :rotary_dim], x[..., rotary_dim:]
    x_rot = x_rot * cos[:, None] + _rotate_half(x_rot) * sin[:, None]
    return jnp.concatenate([x_rot, x_pass], axis=-1)


def _build_attn_bias(attention_mask, position_ids, total_len):
    # allowed[b, i, j] = attention_mask[b, j] & (j <= position_ids[b, i])
    j_idx = jnp.arange(total_len)[None, None, :]
    causal = j_idx <= position_ids[:, :, None]
    padding = attention_mask[:, None, :] > 0
    allowed = jnp.logical_and(causal, padding)
    return jnp.where(allowed, 0.0, -1e9).astype(jnp.float32)


def _rotate_half_matrix():
    """Signed permutation implementing per-head rotate_half on rotary dims."""
    R = np.zeros((HIDDEN, HIDDEN), np.float32)
    half = ROTARY_DIM // 2
    for hh in range(NUM_HEADS):
        o = hh * HEAD_DIM
        for j in range(half):
            R[o + half + j, o + j] = -1.0
            R[o + j, o + half + j] = 1.0
    return jnp.asarray(R)


# ----------------------------- params ----------------------------------------
def init_params(key):
    def norm(k, shape, scale=0.02):
        return scale * jax.random.normal(k, shape, dtype=jnp.float32)

    keys = jax.random.split(key, 4 + NUM_LAYERS)
    params = {
        "embed": norm(keys[0], (VOCAB, HIDDEN)),
        "fln_g": 1.0 + norm(keys[2], (HIDDEN,), 0.05),
        "fln_b": norm(keys[3], (HIDDEN,), 0.02),
        "lm_w": norm(keys[1], (HIDDEN, VOCAB)),
        "lm_b": jnp.zeros((VOCAB,), jnp.float32),
        "layers": [],
    }
    for li in range(NUM_LAYERS):
        lk = jax.random.split(keys[4 + li], 14)
        params["layers"].append({
            "ln_g": 1.0 + norm(lk[12], (HIDDEN,), 0.05),
            "ln_b": norm(lk[13], (HIDDEN,), 0.02),
            "q_w": norm(lk[0], (HIDDEN, HIDDEN)), "q_b": norm(lk[6], (HIDDEN,)),
            "k_w": norm(lk[1], (HIDDEN, HIDDEN)), "k_b": norm(lk[7], (HIDDEN,)),
            "v_w": norm(lk[2], (HIDDEN, HIDDEN)), "v_b": norm(lk[8], (HIDDEN,)),
            "o_w": norm(lk[3], (HIDDEN, HIDDEN)), "o_b": norm(lk[9], (HIDDEN,)),
            "fc1_w": norm(lk[4], (HIDDEN, INTERMEDIATE)),
            "fc1_b": norm(lk[10], (INTERMEDIATE,)),
            "fc2_w": norm(lk[5], (INTERMEDIATE, HIDDEN)),
            "fc2_b": norm(lk[11], (HIDDEN,)),
        })
    return params


def _pad_row(v, width):
    v = jnp.asarray(v, jnp.float32).reshape(-1)
    return jnp.pad(v, (0, width - v.shape[0]))


def pack_kernel_params(params):
    """Fuse/pack canonical params into 5 lane-dense kernel inputs."""
    scale = 1.0 / math.sqrt(HEAD_DIM)
    wqkvf, wof, rows = [], [], []
    for p in params["layers"]:
        wqkvf.append(jnp.concatenate(
            [p["q_w"] * scale, p["k_w"], p["v_w"], p["fc1_w"]], axis=1))
        wof.append(jnp.concatenate([p["o_w"], p["fc2_w"]], axis=0))
        rows += [
            _pad_row(p["ln_g"], SMALL_W),
            _pad_row(p["ln_b"], SMALL_W),
            _pad_row(jnp.concatenate(
                [p["q_b"] * scale, p["k_b"], p["v_b"], p["fc1_b"]]), SMALL_W),
            _pad_row(p["o_b"] + p["fc2_b"], SMALL_W),
        ]
    rows += [_pad_row(params["fln_g"], SMALL_W),
             _pad_row(params["fln_b"], SMALL_W),
             _pad_row(params["lm_b"], SMALL_W)]
    return {
        "embed": params["embed"],                                    # [128, 64]
        "wqkvf": jnp.stack(wqkvf),                                   # [L, 64, 320]
        "wof": jnp.stack(wof),                                       # [L, 192, 64]
        "lmr": jnp.concatenate([params["lm_w"], _rotate_half_matrix()],
                               axis=1),                              # [64, 192]
        "small": jnp.stack(rows),                                    # [11, 320]
    }


# ----------------------------- wrapper ---------------------------------------
def model_wrapper_forward(params, input_ids, attention_mask, position_ids,
                          legacy_cache):
    """Mirrors ModelWrapper.forward: returns (logits,) + updated legacy cache."""
    # TODO(synk): HF DynamicCache bookkeeping is plain tuple plumbing here.
    assert len(legacy_cache) == NUM_LAYERS and len(legacy_cache[0]) == 2
    B, S = input_ids.shape
    past_len = legacy_cache[0][0].shape[2]
    total = past_len + S
    assert (B, S, past_len) == (BATCH, SEQ, PAST)
    assert attention_mask.shape == (B, total)

    packed = pack_kernel_params(params)

    # --- prologue slab [BS, 512]: one-hot | blocked bias | cos | sin ---------
    onehot = jax.nn.one_hot(input_ids.reshape(-1), VOCAB, dtype=jnp.float32)

    cos, sin = _rope_cos_sin(position_ids, ROTARY_DIM)               # [B,S,8]
    pass_w = HEAD_DIM - ROTARY_DIM
    cos_h = jnp.concatenate([cos, jnp.ones((B, S, pass_w), jnp.float32)], -1)
    sin_h = jnp.concatenate([sin, jnp.zeros((B, S, pass_w), jnp.float32)], -1)
    cos_full = jnp.tile(cos_h, (1, 1, NUM_HEADS)).reshape(BS, HIDDEN)
    sin_full = jnp.tile(sin_h, (1, 1, NUM_HEADS)).reshape(BS, HIDDEN)

    bias_bst = _build_attn_bias(attention_mask, position_ids, total)  # [B,S,T]
    same_b = jnp.arange(B)[:, None] == jnp.arange(B)[None, :]
    bias_full = jnp.where(same_b[:, None, :, None, None],
                          bias_bst[:, :, None, None, :],
                          jnp.float32(-1e9))
    bias_full = jnp.broadcast_to(
        bias_full, (B, S, B, NUM_HEADS, total)).reshape(BS, BHT)

    pad64 = jnp.zeros((BS, 64), jnp.float32)
    prologue = jnp.concatenate(
        [onehot, bias_full, cos_full, pad64, sin_full, pad64], axis=1)
    assert prologue.shape == (BS, PRO_W)

    # --- past KV packed lane-dense: [L, B, PAST, 128] -------------------------
    past_kv = jnp.stack([
        jnp.concatenate(
            [k.transpose(0, 2, 1, 3).reshape(B, past_len, HIDDEN),
             v.transpose(0, 2, 1, 3).reshape(B, past_len, HIDDEN)], axis=-1)
        for (k, v) in legacy_cache])

    logits_flat, kv_out = pl.pallas_call(
        _fused_forward_kernel,
        out_shape=(
            jax.ShapeDtypeStruct((BS, VOCAB), jnp.float32),
            jax.ShapeDtypeStruct((NUM_LAYERS, BATCH, TOTAL, KV_W), jnp.float32),
        ),
    )(prologue, packed["embed"], packed["wqkvf"], packed["wof"],
      packed["lmr"], packed["small"], past_kv)

    logits = logits_flat.reshape(B, S, VOCAB)
    new_cache = []
    for li in range(NUM_LAYERS):
        k = kv_out[li, :, :, :HIDDEN].reshape(
            B, total, NUM_HEADS, HEAD_DIM).transpose(0, 2, 1, 3)
        v = kv_out[li, :, :, HIDDEN:].reshape(
            B, total, NUM_HEADS, HEAD_DIM).transpose(0, 2, 1, 3)
        new_cache.append((k, v))
    return (logits,) + tuple(new_cache)


# ----------------------------- pure-JAX reference ----------------------------
def _reference_forward(params, input_ids, attention_mask, position_ids,
                       legacy_cache):
    B, S = input_ids.shape
    total = legacy_cache[0][0].shape[2] + S
    h = params["embed"][input_ids]
    cos, sin = _rope_cos_sin(position_ids, ROTARY_DIM)
    bias = _build_attn_bias(attention_mask, position_ids, total)
    scale = 1.0 / math.sqrt(HEAD_DIM)

    def ln(x, g, b):
        mu = jnp.mean(x, -1, keepdims=True)
        xc = x - mu
        var = jnp.mean(xc * xc, -1, keepdims=True)
        return xc * jax.lax.rsqrt(var + EPS) * g + b

    new_cache = []
    for li in range(NUM_LAYERS):
        p = params["layers"][li]
        past_k, past_v = legacy_cache[li]
        residual = h
        x = ln(h, p["ln_g"], p["ln_b"])
        q = x @ p["q_w"] + p["q_b"]
        k = x @ p["k_w"] + p["k_b"]
        v = x @ p["v_w"] + p["v_b"]
        f1 = x @ p["fc1_w"] + p["fc1_b"]

        def heads(t):
            return t.reshape(B, S, NUM_HEADS, HEAD_DIM).transpose(0, 2, 1, 3)

        q = _apply_partial_rope(heads(q), cos, sin, ROTARY_DIM)
        k = _apply_partial_rope(heads(k), cos, sin, ROTARY_DIM)
        v = heads(v)
        k_tot = jnp.concatenate([past_k, k], axis=2)
        v_tot = jnp.concatenate([past_v, v], axis=2)
        new_cache.append((k_tot, v_tot))

        s = jnp.einsum("bhqd,bhkd->bhqk", q, k_tot) * scale + bias[:, None]
        pr = jax.nn.softmax(s, axis=-1)
        o = jnp.einsum("bhqk,bhkd->bhqd", pr, v_tot)
        o = o.transpose(0, 2, 1, 3).reshape(B, S, HIDDEN)
        attn_out = o @ p["o_w"] + p["o_b"]
        mlp_out = _gelu_new(f1) @ p["fc2_w"] + p["fc2_b"]
        h = residual + attn_out + mlp_out

    hf = ln(h, params["fln_g"], params["fln_b"])
    return (hf @ params["lm_w"] + params["lm_b"],) + tuple(new_cache)


# ----------------------------- main ------------------------------------------
if __name__ == "__main__":
    key = jax.random.PRNGKey(0)
    pkey, ikey, ckey = jax.random.split(key, 3)

    params = init_params(pkey)

    input_ids = jax.random.randint(ikey, (BATCH, SEQ), 0, VOCAB, dtype=jnp.int32)
    attention_mask = jnp.ones((BATCH, TOTAL), dtype=jnp.int32)
    attention_mask = attention_mask.at[1, 0:2].set(0)   # exercise padding mask
    position_ids = PAST + jnp.broadcast_to(jnp.arange(SEQ, dtype=jnp.int32),
                                           (BATCH, SEQ))

    cache_keys = jax.random.split(ckey, 2 * NUM_LAYERS)
    legacy_cache = tuple(
        (0.02 * jax.random.normal(cache_keys[2 * li],
                                  (BATCH, NUM_HEADS, PAST, HEAD_DIM), jnp.float32),
         0.02 * jax.random.normal(cache_keys[2 * li + 1],
                                  (BATCH, NUM_HEADS, PAST, HEAD_DIM), jnp.float32))
        for li in range(NUM_LAYERS)
    )

    fwd = jax.jit(model_wrapper_forward)
    outputs = jax.block_until_ready(
        fwd(params, input_ids, attention_mask, position_ids, legacy_cache))

    logits = outputs[0]
    assert logits.shape == (BATCH, SEQ, VOCAB)
    for li in range(NUM_LAYERS):
        k_new, v_new = outputs[1 + li]
        assert k_new.shape == (BATCH, NUM_HEADS, TOTAL, HEAD_DIM)
        assert v_new.shape == (BATCH, NUM_HEADS, TOTAL, HEAD_DIM)
    assert bool(jnp.all(jnp.isfinite(logits)))

    # Correctness check against an unfused plain-JAX reference.
    with jax.default_matmul_precision("highest"):
        ref = _reference_forward(params, input_ids, attention_mask,
                                 position_ids, legacy_cache)
    np.testing.assert_allclose(np.asarray(logits), np.asarray(ref[0]),
                               rtol=5e-2, atol=5e-3)
    for li in range(NUM_LAYERS):
        np.testing.assert_allclose(np.asarray(outputs[1 + li][0]),
                                   np.asarray(ref[1 + li][0]),
                                   rtol=5e-2, atol=5e-3)
        np.testing.assert_allclose(np.asarray(outputs[1 + li][1]),
                                   np.asarray(ref[1 + li][1]),
                                   rtol=5e-2, atol=5e-3)

    print("KERNEL_OK")
</pallas_src>

<mosaic_0001>
module attributes {stable_mosaic.version = 11 : i64} {
  func.func @_fused_forward_kernel(%arg0: memref<16x512xf32, #tpu.memory_space<vmem>>, %arg1: memref<128x64xf32, #tpu.memory_space<vmem>>, %arg2: memref<2x64x320xf32, #tpu.memory_space<vmem>>, %arg3: memref<2x192x64xf32, #tpu.memory_space<vmem>>, %arg4: memref<64x192xf32, #tpu.memory_space<vmem>>, %arg5: memref<11x320xf32, #tpu.memory_space<vmem>>, %arg6: memref<2x2x8x128xf32, #tpu.memory_space<vmem>>, %arg7: memref<16x128xf32, #tpu.memory_space<vmem>>, %arg8: memref<2x2x16x128xf32, #tpu.memory_space<vmem>>) attributes {dimension_semantics = [], scalar_prefetch = 0 : i64, scratch_operands = 0 : i64, tpu.core_type = #tpu.core_type<tc>} {
    %c0 = arith.constant 0 : index
    %c0_0 = arith.constant 0 : index
    %0 = vector.load %arg0[%c0, %c0_0] : memref<16x512xf32, #tpu.memory_space<vmem>>, vector<16x512xf32>
    %1 = vector.extract_strided_slice %0 {offsets = [0, 0], sizes = [16, 128], strides = [1, 1]} : vector<16x512xf32> to vector<16x128xf32>
    %2 = vector.extract_strided_slice %0 {offsets = [0, 128], sizes = [16, 128], strides = [1, 1]} : vector<16x512xf32> to vector<16x128xf32>
    %3 = vector.extract_strided_slice %0 {offsets = [0, 256], sizes = [16, 64], strides = [1, 1]} : vector<16x512xf32> to vector<16x64xf32>
    %4 = vector.extract_strided_slice %0 {offsets = [0, 384], sizes = [16, 64], strides = [1, 1]} : vector<16x512xf32> to vector<16x64xf32>
    %c0_1 = arith.constant 0 : index
    %c0_2 = arith.constant 0 : index
    %5 = vector.load %arg5[%c0_1, %c0_2] : memref<11x320xf32, #tpu.memory_space<vmem>>, vector<11x320xf32>
    %c0_3 = arith.constant 0 : index
    %c0_4 = arith.constant 0 : index
    %6 = vector.load %arg4[%c0_3, %c0_4] : memref<64x192xf32, #tpu.memory_space<vmem>>, vector<64x192xf32>
    %7 = vector.extract_strided_slice %6 {offsets = [0, 0], sizes = [64, 128], strides = [1, 1]} : vector<64x192xf32> to vector<64x128xf32>
    %8 = vector.extract_strided_slice %6 {offsets = [0, 128], sizes = [64, 64], strides = [1, 1]} : vector<64x192xf32> to vector<64x64xf32>
    %c0_5 = arith.constant 0 : index
    %c0_6 = arith.constant 0 : index
    %c0_7 = arith.constant 0 : index
    %c0_8 = arith.constant 0 : index
    %9 = vector.load %arg6[%c0_5, %c0_6, %c0_7, %c0_8] : memref<2x2x8x128xf32, #tpu.memory_space<vmem>>, vector<2x2x8x128xf32>
    %c0_9 = arith.constant 0 : index
    %c0_10 = arith.constant 0 : index
    %c0_11 = arith.constant 0 : index
    %c0_12 = arith.constant 0 : index
    %10 = vector.load %arg8[%c0_9, %c0_10, %c0_11, %c0_12] : memref<2x2x16x128xf32, #tpu.memory_space<vmem>>, vector<2x2x8x128xf32>
    tpu.vector_store %arg8[%c0_9, %c0_10, %c0_11, %c0_12], %9 {strides = array<i32>} : memref<2x2x16x128xf32, #tpu.memory_space<vmem>>, vector<2x2x8x128xf32>,
    %11 = tpu.iota {dimensions = array<i32: 0>} : vector<128x32xi32>
    %12 = tpu.iota {dimensions = array<i32: 1>} : vector<128x32xi32>
    %c6_i32 = arith.constant 6 : i32
    %13 = vector.broadcast %c6_i32 : i32 to vector<128x32xi32>
    %14 = arith.shrsi %11, %13 : vector<128x32xi32>
    %c4_i32 = arith.constant 4 : i32
    %15 = vector.broadcast %c4_i32 : i32 to vector<128x32xi32>
    %16 = arith.shrsi %12, %15 : vector<128x32xi32>
    %17 = arith.cmpi eq, %14, %16 : vector<128x32xi32>
    %c15_i32 = arith.constant 15 : i32
    %18 = vector.broadcast %c15_i32 : i32 to vector<128x32xi32>
    %19 = arith.andi %11, %18 : vector<128x32xi32>
    %c15_i32_13 = arith.constant 15 : i32
    %20 = vector.broadcast %c15_i32_13 : i32 to vector<128x32xi32>
    %21 = arith.andi %12, %20 : vector<128x32xi32>
    %22 = arith.cmpi eq, %19, %21 : vector<128x32xi32>
    %23 = arith.andi %17, %22 : vector<128x32xi1>
    %24 = arith.extui %23 : vector<128x32xi1> to vector<128x32xi32>
    %25 = arith.sitofp %24 : vector<128x32xi32> to vector<128x32xf32>
    %26 = tpu.iota {dimensions = array<i32: 0>} : vector<128x64xi32>
    %27 = tpu.iota {dimensions = array<i32: 1>} : vector<128x64xi32>
    %c4_i32_14 = arith.constant 4 : i32
    %28 = vector.broadcast %c4_i32_14 : i32 to vector<128x64xi32>
    %29 = arith.shrsi %26, %28 : vector<128x64xi32>
    %c3_i32 = arith.constant 3 : i32
    %30 = vector.broadcast %c3_i32 : i32 to vector<128x64xi32>
    %31 = arith.andi %29, %30 : vector<128x64xi32>
    %c4_i32_15 = arith.constant 4 : i32
    %32 = vector.broadcast %c4_i32_15 : i32 to vector<128x64xi32>
    %33 = arith.shrsi %27, %32 : vector<128x64xi32>
    %34 = arith.cmpi eq, %31, %33 : vector<128x64xi32>
    %35 = arith.extui %34 : vector<128x64xi1> to vector<128x64xi32>
    %36 = arith.sitofp %35 : vector<128x64xi32> to vector<128x64xf32>
    %37 = tpu.iota {dimensions = array<i32: 0>} : vector<128x128xi32>
    %38 = tpu.iota {dimensions = array<i32: 1>} : vector<128x128xi32>
    %c4_i32_16 = arith.constant 4 : i32
    %39 = vector.broadcast %c4_i32_16 : i32 to vector<128x128xi32>
    %40 = arith.shrsi %37, %39 : vector<128x128xi32>
    %c4_i32_17 = arith.constant 4 : i32
    %41 = vector.broadcast %c4_i32_17 : i32 to vector<128x128xi32>
    %42 = arith.shrsi %38, %41 : vector<128x128xi32>
    %43 = arith.cmpi eq, %40, %42 : vector<128x128xi32>
    %44 = arith.extui %43 : vector<128x128xi1> to vector<128x128xi32>
    %45 = arith.sitofp %44 : vector<128x128xi32> to vector<128x128xf32>
    %c0_18 = arith.constant 0 : index
    %c0_19 = arith.constant 0 : index
    %46 = vector.load %arg1[%c0_18, %c0_19] : memref<128x64xf32, #tpu.memory_space<vmem>>, vector<128x64xf32>
    %cst = arith.constant dense<0.000000e+00> : vector<16x64xf32>
    %47 = tpu.matmul %1, %46, %cst {dimension_numbers = #tpu.dot_dimension_numbers<[1], [0], [0], [1], [0, 0, 1, 1], [], []>} : vector<16x128xf32>, vector<128x64xf32>, vector<16x64xf32> -> vector<16x64xf32>
    %48 = vector.extract_strided_slice %5 {offsets = [0, 0], sizes = [1, 64], strides = [1, 1]} : vector<11x320xf32> to vector<1x64xf32>
    %49 = vector.extract_strided_slice %5 {offsets = [1, 0], sizes = [1, 64], strides = [1, 1]} : vector<11x320xf32> to vector<1x64xf32>
    %50 = vector.extract_strided_slice %5 {offsets = [2, 0], sizes = [1, 320], strides = [1, 1]} : vector<11x320xf32> to vector<1x320xf32>
    %51 = vector.extract_strided_slice %5 {offsets = [3, 0], sizes = [1, 64], strides = [1, 1]} : vector<11x320xf32> to vector<1x64xf32>
    %cst_20 = arith.constant dense<0.000000e+00> : vector<16xf32>
    %52 = vector.multi_reduction <add>, %47, %cst_20 [1] : vector<16x64xf32> to vector<16xf32>
    %53 = vector.shape_cast %52 : vector<16xf32> to vector<16x1xf32>
    %cst_21 = arith.constant 6.400000e+01 : f32
    %54 = vector.broadcast %cst_21 : f32 to vector<16x1xf32>
    %55 = arith.divf %53, %54 : vector<16x1xf32>
    %56 = vector.broadcast %55 : vector<16x1xf32> to vector<16x64xf32>
    %57 = arith.subf %47, %56 : vector<16x64xf32>
    %58 = arith.mulf %57, %57 : vector<16x64xf32>
    %cst_22 = arith.constant dense<0.000000e+00> : vector<16xf32>
    %59 = vector.multi_reduction <add>, %58, %cst_22 [1] : vector<16x64xf32> to vector<16xf32>
    %60 = vector.shape_cast %59 : vector<16xf32> to vector<16x1xf32>
    %cst_23 = arith.constant 6.400000e+01 : f32
    %61 = vector.broadcast %cst_23 : f32 to vector<16x1xf32>
    %62 = arith.divf %60, %61 : vector<16x1xf32>
    %cst_24 = arith.constant 9.99999974E-6 : f32
    %63 = vector.broadcast %cst_24 : f32 to vector<16x1xf32>
    %64 = arith.addf %62, %63 : vector<16x1xf32>
    %65 = math.rsqrt %64 : vector<16x1xf32>
    %66 = vector.broadcast %65 : vector<16x1xf32> to vector<16x64xf32>
    %67 = arith.mulf %57, %66 : vector<16x64xf32>
    %68 = vector.broadcast %48 : vector<1x64xf32> to vector<16x64xf32>
    %69 = arith.mulf %67, %68 : vector<16x64xf32>
    %70 = vector.broadcast %49 : vector<1x64xf32> to vector<16x64xf32>
    %71 = arith.addf %69, %70 : vector<16x64xf32>
    %c0_25 = arith.constant 0 : index
    %c0_26 = arith.constant 0 : index
    %c0_27 = arith.constant 0 : index
    %72 = vector.load %arg2[%c0_25, %c0_26, %c0_27] : memref<2x64x320xf32, #tpu.memory_space<vmem>>, vector<1x64x320xf32>
    %73 = vector.shape_cast %72 : vector<1x64x320xf32> to vector<64x320xf32>
    %cst_28 = arith.constant dense<0.000000e+00> : vector<16x320xf32>
    %74 = tpu.matmul %71, %73, %cst_28 {dimension_numbers = #tpu.dot_dimension_numbers<[1], [0], [0], [1], [0, 0, 1, 1], [], []>} : vector<16x64xf32>, vector<64x320xf32>, vector<16x320xf32> -> vector<16x320xf32>
    %75 = vector.broadcast %50 : vector<1x320xf32> to vector<16x320xf32>
    %76 = arith.addf %74, %75 : vector<16x320xf32>
    %77 = vector.extract_strided_slice %76 {offsets = [0, 0], sizes = [16, 64], strides = [1, 1]} : vector<16x320xf32> to vector<16x64xf32>
    %78 = vector.extract_strided_slice %76 {offsets = [0, 64], sizes = [16, 64], strides = [1, 1]} : vector<16x320xf32> to vector<16x64xf32>
    %79 = vector.extract_strided_slice %76 {offsets = [0, 128], sizes = [16, 64], strides = [1, 1]} : vector<16x320xf32> to vector<16x64xf32>
    %80 = vector.extract_strided_slice %76 {offsets = [0, 192], sizes = [16, 128], strides = [1, 1]} : vector<16x320xf32> to vector<16x128xf32>
    %cst_29 = arith.constant 5.000000e-01 : f32
    %81 = vector.broadcast %cst_29 : f32 to vector<16x128xf32>
    %82 = arith.mulf %81, %80 : vector<16x128xf32>
    %cst_30 = arith.constant 4.471500e-02 : f32
    %83 = vector.broadcast %cst_30 : f32 to vector<16x128xf32>
    %84 = arith.mulf %83, %80 : vector<16x128xf32>
    %85 = arith.mulf %84, %80 : vector<16x128xf32>
    %86 = arith.mulf %85, %80 : vector<16x128xf32>
    %87 = arith.addf %80, %86 : vector<16x128xf32>
    %cst_31 = arith.constant 0.797884583 : f32
    %88 = vector.broadcast %cst_31 : f32 to vector<16x128xf32>
    %89 = arith.mulf %88, %87 : vector<16x128xf32>
    %90 = math.tanh %89 : vector<16x128xf32>
    %cst_32 = arith.constant 1.000000e+00 : f32
    %91 = vector.broadcast %cst_32 : f32 to vector<16x128xf32>
    %92 = arith.addf %91, %90 : vector<16x128xf32>
    %93 = arith.mulf %82, %92 : vector<16x128xf32>
    %94 = arith.mulf %77, %3 : vector<16x64xf32>
    %cst_33 = arith.constant dense<0.000000e+00> : vector<16x64xf32>
    %95 = tpu.matmul %77, %8, %cst_33 {dimension_numbers = #tpu.dot_dimension_numbers<[1], [0], [0], [1], [0, 0, 1, 1], [], []>} : vector<16x64xf32>, vector<64x64xf32>, vector<16x64xf32> -> vector<16x64xf32>
    %96 = arith.mulf %95, %4 : vector<16x64xf32>
    %97 = arith.addf %94, %96 : vector<16x64xf32>
    %98 = arith.mulf %78, %3 : vector<16x64xf32>
    %cst_34 = arith.constant dense<0.000000e+00> : vector<16x64xf32>
    %99 = tpu.matmul %78, %8, %cst_34 {dimension_numbers = #tpu.dot_dimension_numbers<[1], [0], [0], [1], [0, 0, 1, 1], [], []>} : vector<16x64xf32>, vector<64x64xf32>, vector<16x64xf32> -> vector<16x64xf32>
    %100 = arith.mulf %99, %4 : vector<16x64xf32>
    %101 = arith.addf %98, %100 : vector<16x64xf32>
    %102 = vector.shape_cast %101 : vector<16x64xf32> to vector<2x8x64xf32>
    %c0_35 = arith.constant 0 : index
    %c0_36 = arith.constant 0 : index
    %c8 = arith.constant 8 : index
    %c0_37 = arith.constant 0 : index
    %103 = vector.load %arg8[%c0_35, %c0_36, %c8, %c0_37] : memref<2x2x16x128xf32, #tpu.memory_space<vmem>>, vector<1x2x8x64xf32>
    %104 = vector.shape_cast %103 : vector<1x2x8x64xf32> to vector<2x8x64xf32>
    %105 = vector.shape_cast %102 : vector<2x8x64xf32> to vector<1x2x8x64xf32>
    tpu.vector_store %arg8[%c0_35, %c0_36, %c8, %c0_37], %105 {strides = array<i32>} : memref<2x2x16x128xf32, #tpu.memory_space<vmem>>, vector<1x2x8x64xf32>,
    %106 = vector.shape_cast %79 : vector<16x64xf32> to vector<2x8x64xf32>
    %c0_38 = arith.constant 0 : index
    %c0_39 = arith.constant 0 : index
    %c8_40 = arith.constant 8 : index
    %c64 = arith.constant 64 : index
    %107 = vector.load %arg8[%c0_38, %c0_39, %c8_40, %c64] : memref<2x2x16x128xf32, #tpu.memory_space<vmem>>, vector<1x2x8x64xf32>
    %108 = vector.shape_cast %107 : vector<1x2x8x64xf32> to vector<2x8x64xf32>
    %109 = vector.shape_cast %106 : vector<2x8x64xf32> to vector<1x2x8x64xf32>
    tpu.vector_store %arg8[%c0_38, %c0_39, %c8_40, %c64], %109 {strides = array<i32>} : memref<2x2x16x128xf32, #tpu.memory_space<vmem>>, vector<1x2x8x64xf32>,
    %c0_41 = arith.constant 0 : index
    %c0_42 = arith.constant 0 : index
    %c0_43 = arith.constant 0 : index
    %c0_44 = arith.constant 0 : index
    %110 = vector.load %arg8[%c0_41, %c0_42, %c0_43, %c0_44] : memref<2x2x16x128xf32, #tpu.memory_space<vmem>>, vector<1x2x16x128xf32>
    %111 = vector.shape_cast %110 : vector<1x2x16x128xf32> to vector<2x16x128xf32>
    %112 = vector.extract_strided_slice %111 {offsets = [0, 0, 0], sizes = [2, 16, 64], strides = [1, 1, 1]} : vector<2x16x128xf32> to vector<2x16x64xf32>
    %113 = vector.shape_cast %112 : vector<2x16x64xf32> to vector<32x64xf32>
    %114 = vector.extract_strided_slice %111 {offsets = [0, 0, 64], sizes = [2, 16, 64], strides = [1, 1, 1]} : vector<2x16x128xf32> to vector<2x16x64xf32>
    %115 = vector.shape_cast %114 : vector<2x16x64xf32> to vector<32x64xf32>
    %cst_45 = arith.constant dense<0.000000e+00> : vector<128x64xf32>
    %116 = tpu.matmul %25, %113, %cst_45 {dimension_numbers = #tpu.dot_dimension_numbers<[1], [0], [0], [1], [0, 0, 1, 1], [], []>} : vector<128x32xf32>, vector<32x64xf32>, vector<128x64xf32> -> vector<128x64xf32>
    %117 = arith.mulf %116, %36 : vector<128x64xf32>
    %cst_46 = arith.constant dense<0.000000e+00> : vector<128x64xf32>
    %118 = tpu.matmul %25, %115, %cst_46 {dimension_numbers = #tpu.dot_dimension_numbers<[1], [0], [0], [1], [0, 0, 1, 1], [], []>} : vector<128x32xf32>, vector<32x64xf32>, vector<128x64xf32> -> vector<128x64xf32>
    %119 = arith.mulf %118, %36 : vector<128x64xf32>
    %cst_47 = arith.constant dense<0.000000e+00> : vector<16x128xf32>
    %120 = tpu.matmul %97, %117, %cst_47 {dimension_numbers = #tpu.dot_dimension_numbers<[1], [1], [0], [0], [0, 0, 1, 0], [], []>} : vector<16x64xf32>, vector<128x64xf32>, vector<16x128xf32> -> vector<16x128xf32>
    %121 = arith.addf %120, %2 : vector<16x128xf32>
    %cst_48 = arith.constant dense<0xFF800000> : vector<16xf32>
    %122 = vector.multi_reduction <maximumf>, %121, %cst_48 [1] : vector<16x128xf32> to vector<16xf32>
    %123 = vector.shape_cast %122 : vector<16xf32> to vector<16x1xf32>
    %124 = vector.broadcast %123 : vector<16x1xf32> to vector<16x128xf32>
    %125 = arith.subf %121, %124 : vector<16x128xf32>
    %126 = math.exp %125 : vector<16x128xf32>
    %cst_49 = arith.constant dense<0.000000e+00> : vector<16x128xf32>
    %127 = tpu.matmul %126, %45, %cst_49 {dimension_numbers = #tpu.dot_dimension_numbers<[1], [0], [0], [1], [0, 0, 1, 1], [], []>} : vector<16x128xf32>, vector<128x128xf32>, vector<16x128xf32> -> vector<16x128xf32>
    %cst_50 = arith.constant 0.000000e+00 : f32
    %128 = vector.broadcast %cst_50 : f32 to vector<16x128xf32>
    %129 = arith.cmpf ogt, %127, %128 : vector<16x128xf32>
    %130 = tpu.reciprocal %127 {approx = true} : vector<16x128xf32> -> vector<16x128xf32>
    %cst_51 = arith.constant 0.000000e+00 : f32
    %131 = vector.broadcast %cst_51 : f32 to vector<16x128xf32>
    %132 = arith.select %129, %130, %131 : vector<16x128xi1>, vector<16x128xf32>
    %133 = arith.mulf %126, %132 : vector<16x128xf32>
    %cst_52 = arith.constant dense<0.000000e+00> : vector<16x64xf32>
    %134 = tpu.matmul %133, %119, %cst_52 {dimension_numbers = #tpu.dot_dimension_numbers<[1], [0], [0], [1], [0, 0, 1, 1], [], []>} : vector<16x128xf32>, vector<128x64xf32>, vector<16x64xf32> -> vector<16x64xf32>
    %c0_53 = arith.constant 0 : index
    %c0_54 = arith.constant 0 : index
    %c0_55 = arith.constant 0 : index
    %135 = vector.load %arg3[%c0_53, %c0_54, %c0_55] : memref<2x192x64xf32, #tpu.memory_space<vmem>>, vector<1x192x64xf32>
    %136 = vector.shape_cast %135 : vector<1x192x64xf32> to vector<192x64xf32>
    %137 = vector.extract_strided_slice %136 {offsets = [0, 0], sizes = [64, 64], strides = [1, 1]} : vector<192x64xf32> to vector<64x64xf32>
    %cst_56 = arith.constant dense<0.000000e+00> : vector<16x64xf32>
    %138 = tpu.matmul %134, %137, %cst_56 {dimension_numbers = #tpu.dot_dimension_numbers<[1], [0], [0], [1], [0, 0, 1, 1], [], []>} : vector<16x64xf32>, vector<64x64xf32>, vector<16x64xf32> -> vector<16x64xf32>
    %139 = vector.extract_strided_slice %136 {offsets = [64, 0], sizes = [128, 64], strides = [1, 1]} : vector<192x64xf32> to vector<128x64xf32>
    %cst_57 = arith.constant dense<0.000000e+00> : vector<16x64xf32>
    %140 = tpu.matmul %93, %139, %cst_57 {dimension_numbers = #tpu.dot_dimension_numbers<[1], [0], [0], [1], [0, 0, 1, 1], [], []>} : vector<16x128xf32>, vector<128x64xf32>, vector<16x64xf32> -> vector<16x64xf32>
    %141 = arith.addf %138, %140 : vector<16x64xf32>
    %142 = arith.addf %47, %141 : vector<16x64xf32>
    %143 = vector.broadcast %51 : vector<1x64xf32> to vector<16x64xf32>
    %144 = arith.addf %142, %143 : vector<16x64xf32>
    %145 = vector.extract_strided_slice %5 {offsets = [4, 0], sizes = [1, 64], strides = [1, 1]} : vector<11x320xf32> to vector<1x64xf32>
    %146 = vector.extract_strided_slice %5 {offsets = [5, 0], sizes = [1, 64], strides = [1, 1]} : vector<11x320xf32> to vector<1x64xf32>
    %147 = vector.extract_strided_slice %5 {offsets = [6, 0], sizes = [1, 320], strides = [1, 1]} : vector<11x320xf32> to vector<1x320xf32>
    %148 = vector.extract_strided_slice %5 {offsets = [7, 0], sizes = [1, 64], strides = [1, 1]} : vector<11x320xf32> to vector<1x64xf32>
    %cst_58 = arith.constant dense<0.000000e+00> : vector<16xf32>
    %149 = vector.multi_reduction <add>, %144, %cst_58 [1] : vector<16x64xf32> to vector<16xf32>
    %150 = vector.shape_cast %149 : vector<16xf32> to vector<16x1xf32>
    %cst_59 = arith.constant 6.400000e+01 : f32
    %151 = vector.broadcast %cst_59 : f32 to vector<16x1xf32>
    %152 = arith.divf %150, %151 : vector<16x1xf32>
    %153 = vector.broadcast %152 : vector<16x1xf32> to vector<16x64xf32>
    %154 = arith.subf %144, %153 : vector<16x64xf32>
    %155 = arith.mulf %154, %154 : vector<16x64xf32>
    %cst_60 = arith.constant dense<0.000000e+00> : vector<16xf32>
    %156 = vector.multi_reduction <add>, %155, %cst_60 [1] : vector<16x64xf32> to vector<16xf32>
    %157 = vector.shape_cast %156 : vector<16xf32> to vector<16x1xf32>
    %cst_61 = arith.constant 6.400000e+01 : f32
    %158 = vector.broadcast %cst_61 : f32 to vector<16x1xf32>
    %159 = arith.divf %157, %158 : vector<16x1xf32>
    %cst_62 = arith.constant 9.99999974E-6 : f32
    %160 = vector.broadcast %cst_62 : f32 to vector<16x1xf32>
    %161 = arith.addf %159, %160 : vector<16x1xf32>
    %162 = math.rsqrt %161 : vector<16x1xf32>
    %163 = vector.broadcast %162 : vector<16x1xf32> to vector<16x64xf32>
    %164 = arith.mulf %154, %163 : vector<16x64xf32>
    %165 = vector.broadcast %145 : vector<1x64xf32> to vector<16x64xf32>
    %166 = arith.mulf %164, %165 : vector<16x64xf32>
    %167 = vector.broadcast %146 : vector<1x64xf32> to vector<16x64xf32>
    %168 = arith.addf %166, %167 : vector<16x64xf32>
    %c1 = arith.constant 1 : index
    %c0_63 = arith.constant 0 : index
    %c0_64 = arith.constant 0 : index
    %169 = vector.load %arg2[%c1, %c0_63, %c0_64] : memref<2x64x320xf32, #tpu.memory_space<vmem>>, vector<1x64x320xf32>
    %170 = vector.shape_cast %169 : vector<1x64x320xf32> to vector<64x320xf32>
    %cst_65 = arith.constant dense<0.000000e+00> : vector<16x320xf32>
    %171 = tpu.matmul %168, %170, %cst_65 {dimension_numbers = #tpu.dot_dimension_numbers<[1], [0], [0], [1], [0, 0, 1, 1], [], []>} : vector<16x64xf32>, vector<64x320xf32>, vector<16x320xf32> -> vector<16x320xf32>
    %172 = vector.broadcast %147 : vector<1x320xf32> to vector<16x320xf32>
    %173 = arith.addf %171, %172 : vector<16x320xf32>
    %174 = vector.extract_strided_slice %173 {offsets = [0, 0], sizes = [16, 64], strides = [1, 1]} : vector<16x320xf32> to vector<16x64xf32>
    %175 = vector.extract_strided_slice %173 {offsets = [0, 64], sizes = [16, 64], strides = [1, 1]} : vector<16x320xf32> to vector<16x64xf32>
    %176 = vector.extract_strided_slice %173 {offsets = [0, 128], sizes = [16, 64], strides = [1, 1]} : vector<16x320xf32> to vector<16x64xf32>
    %177 = vector.extract_strided_slice %173 {offsets = [0, 192], sizes = [16, 128], strides = [1, 1]} : vector<16x320xf32> to vector<16x128xf32>
    %cst_66 = arith.constant 5.000000e-01 : f32
    %178 = vector.broadcast %cst_66 : f32 to vector<16x128xf32>
    %179 = arith.mulf %178, %177 : vector<16x128xf32>
    %cst_67 = arith.constant 4.471500e-02 : f32
    %180 = vector.broadcast %cst_67 : f32 to vector<16x128xf32>
    %181 = arith.mulf %180, %177 : vector<16x128xf32>
    %182 = arith.mulf %181, %177 : vector<16x128xf32>
    %183 = arith.mulf %182, %177 : vector<16x128xf32>
    %184 = arith.addf %177, %183 : vector<16x128xf32>
    %cst_68 = arith.constant 0.797884583 : f32
    %185 = vector.broadcast %cst_68 : f32 to vector<16x128xf32>
    %186 = arith.mulf %185, %184 : vector<16x128xf32>
    %187 = math.tanh %186 : vector<16x128xf32>
    %cst_69 = arith.constant 1.000000e+00 : f32
    %188 = vector.broadcast %cst_69 : f32 to vector<16x128xf32>
    %189 = arith.addf %188, %187 : vector<16x128xf32>
    %190 = arith.mulf %179, %189 : vector<16x128xf32>
    %191 = arith.mulf %174, %3 : vector<16x64xf32>
    %cst_70 = arith.constant dense<0.000000e+00> : vector<16x64xf32>
    %192 = tpu.matmul %174, %8, %cst_70 {dimension_numbers = #tpu.dot_dimension_numbers<[1], [0], [0], [1], [0, 0, 1, 1], [], []>} : vector<16x64xf32>, vector<64x64xf32>, vector<16x64xf32> -> vector<16x64xf32>
    %193 = arith.mulf %192, %4 : vector<16x64xf32>
    %194 = arith.addf %191, %193 : vector<16x64xf32>
    %195 = arith.mulf %175, %3 : vector<16x64xf32>
    %cst_71 = arith.constant dense<0.000000e+00> : vector<16x64xf32>
    %196 = tpu.matmul %175, %8, %cst_71 {dimension_numbers = #tpu.dot_dimension_numbers<[1], [0], [0], [1], [0, 0, 1, 1], [], []>} : vector<16x64xf32>, vector<64x64xf32>, vector<16x64xf32> -> vector<16x64xf32>
    %197 = arith.mulf %196, %4 : vector<16x64xf32>
    %198 = arith.addf %195, %197 : vector<16x64xf32>
    %199 = vector.shape_cast %198 : vector<16x64xf32> to vector<2x8x64xf32>
    %c1_72 = arith.constant 1 : index
    %c0_73 = arith.constant 0 : index
    %c8_74 = arith.constant 8 : index
    %c0_75 = arith.constant 0 : index
    %200 = vector.load %arg8[%c1_72, %c0_73, %c8_74, %c0_75] : memref<2x2x16x128xf32, #tpu.memory_space<vmem>>, vector<1x2x8x64xf32>
    %201 = vector.shape_cast %200 : vector<1x2x8x64xf32> to vector<2x8x64xf32>
    %202 = vector.shape_cast %199 : vector<2x8x64xf32> to vector<1x2x8x64xf32>
    tpu.vector_store %arg8[%c1_72, %c0_73, %c8_74, %c0_75], %202 {strides = array<i32>} : memref<2x2x16x128xf32, #tpu.memory_space<vmem>>, vector<1x2x8x64xf32>,
    %203 = vector.shape_cast %176 : vector<16x64xf32> to vector<2x8x64xf32>
    %c1_76 = arith.constant 1 : index
    %c0_77 = arith.constant 0 : index
    %c8_78 = arith.constant 8 : index
    %c64_79 = arith.constant 64 : index
    %204 = vector.load %arg8[%c1_76, %c0_77, %c8_78, %c64_79] : memref<2x2x16x128xf32, #tpu.memory_space<vmem>>, vector<1x2x8x64xf32>
    %205 = vector.shape_cast %204 : vector<1x2x8x64xf32> to vector<2x8x64xf32>
    %206 = vector.shape_cast %203 : vector<2x8x64xf32> to vector<1x2x8x64xf32>
    tpu.vector_store %arg8[%c1_76, %c0_77, %c8_78, %c64_79], %206 {strides = array<i32>} : memref<2x2x16x128xf32, #tpu.memory_space<vmem>>, vector<1x2x8x64xf32>,
    %c1_80 = arith.constant 1 : index
    %c0_81 = arith.constant 0 : index
    %c0_82 = arith.constant 0 : index
    %c0_83 = arith.constant 0 : index
    %207 = vector.load %arg8[%c1_80, %c0_81, %c0_82, %c0_83] : memref<2x2x16x128xf32, #tpu.memory_space<vmem>>, vector<1x2x16x128xf32>
    %208 = vector.shape_cast %207 : vector<1x2x16x128xf32> to vector<2x16x128xf32>
    %209 = vector.extract_strided_slice %208 {offsets = [0, 0, 0], sizes = [2, 16, 64], strides = [1, 1, 1]} : vector<2x16x128xf32> to vector<2x16x64xf32>
    %210 = vector.shape_cast %209 : vector<2x16x64xf32> to vector<32x64xf32>
    %211 = vector.extract_strided_slice %208 {offsets = [0, 0, 64], sizes = [2, 16, 64], strides = [1, 1, 1]} : vector<2x16x128xf32> to vector<2x16x64xf32>
    %212 = vector.shape_cast %211 : vector<2x16x64xf32> to vector<32x64xf32>
    %cst_84 = arith.constant dense<0.000000e+00> : vector<128x64xf32>
    %213 = tpu.matmul %25, %210, %cst_84 {dimension_numbers = #tpu.dot_dimension_numbers<[1], [0], [0], [1], [0, 0, 1, 1], [], []>} : vector<128x32xf32>, vector<32x64xf32>, vector<128x64xf32> -> vector<128x64xf32>
    %214 = arith.mulf %213, %36 : vector<128x64xf32>
    %cst_85 = arith.constant dense<0.000000e+00> : vector<128x64xf32>
    %215 = tpu.matmul %25, %212, %cst_85 {dimension_numbers = #tpu.dot_dimension_numbers<[1], [0], [0], [1], [0, 0, 1, 1], [], []>} : vector<128x32xf32>, vector<32x64xf32>, vector<128x64xf32> -> vector<128x64xf32>
    %216 = arith.mulf %215, %36 : vector<128x64xf32>
    %cst_86 = arith.constant dense<0.000000e+00> : vector<16x128xf32>
    %217 = tpu.matmul %194, %214, %cst_86 {dimension_numbers = #tpu.dot_dimension_numbers<[1], [1], [0], [0], [0, 0, 1, 0], [], []>} : vector<16x64xf32>, vector<128x64xf32>, vector<16x128xf32> -> vector<16x128xf32>
    %218 = arith.addf %217, %2 : vector<16x128xf32>
    %cst_87 = arith.constant dense<0xFF800000> : vector<16xf32>
    %219 = vector.multi_reduction <maximumf>, %218, %cst_87 [1] : vector<16x128xf32> to vector<16xf32>
    %220 = vector.shape_cast %219 : vector<16xf32> to vector<16x1xf32>
    %221 = vector.broadcast %220 : vector<16x1xf32> to vector<16x128xf32>
    %222 = arith.subf %218, %221 : vector<16x128xf32>
    %223 = math.exp %222 : vector<16x128xf32>
    %cst_88 = arith.constant dense<0.000000e+00> : vector<16x128xf32>
    %224 = tpu.matmul %223, %45, %cst_88 {dimension_numbers = #tpu.dot_dimension_numbers<[1], [0], [0], [1], [0, 0, 1, 1], [], []>} : vector<16x128xf32>, vector<128x128xf32>, vector<16x128xf32> -> vector<16x128xf32>
    %cst_89 = arith.constant 0.000000e+00 : f32
    %225 = vector.broadcast %cst_89 : f32 to vector<16x128xf32>
    %226 = arith.cmpf ogt, %224, %225 : vector<16x128xf32>
    %227 = tpu.reciprocal %224 {approx = true} : vector<16x128xf32> -> vector<16x128xf32>
    %cst_90 = arith.constant 0.000000e+00 : f32
    %228 = vector.broadcast %cst_90 : f32 to vector<16x128xf32>
    %229 = arith.select %226, %227, %228 : vector<16x128xi1>, vector<16x128xf32>
    %230 = arith.mulf %223, %229 : vector<16x128xf32>
    %cst_91 = arith.constant dense<0.000000e+00> : vector<16x64xf32>
    %231 = tpu.matmul %230, %216, %cst_91 {dimension_numbers = #tpu.dot_dimension_numbers<[1], [0], [0], [1], [0, 0, 1, 1], [], []>} : vector<16x128xf32>, vector<128x64xf32>, vector<16x64xf32> -> vector<16x64xf32>
    %c1_92 = arith.constant 1 : index
    %c0_93 = arith.constant 0 : index
    %c0_94 = arith.constant 0 : index
    %232 = vector.load %arg3[%c1_92, %c0_93, %c0_94] : memref<2x192x64xf32, #tpu.memory_space<vmem>>, vector<1x192x64xf32>
    %233 = vector.shape_cast %232 : vector<1x192x64xf32> to vector<192x64xf32>
    %234 = vector.extract_strided_slice %233 {offsets = [0, 0], sizes = [64, 64], strides = [1, 1]} : vector<192x64xf32> to vector<64x64xf32>
    %cst_95 = arith.constant dense<0.000000e+00> : vector<16x64xf32>
    %235 = tpu.matmul %231, %234, %cst_95 {dimension_numbers = #tpu.dot_dimension_numbers<[1], [0], [0], [1], [0, 0, 1, 1], [], []>} : vector<16x64xf32>, vector<64x64xf32>, vector<16x64xf32> -> vector<16x64xf32>
    %236 = vector.extract_strided_slice %233 {offsets = [64, 0], sizes = [128, 64], strides = [1, 1]} : vector<192x64xf32> to vector<128x64xf32>
    %cst_96 = arith.constant dense<0.000000e+00> : vector<16x64xf32>
    %237 = tpu.matmul %190, %236, %cst_96 {dimension_numbers = #tpu.dot_dimension_numbers<[1], [0], [0], [1], [0, 0, 1, 1], [], []>} : vector<16x128xf32>, vector<128x64xf32>, vector<16x64xf32> -> vector<16x64xf32>
    %238 = arith.addf %235, %237 : vector<16x64xf32>
    %239 = arith.addf %144, %238 : vector<16x64xf32>
    %240 = vector.broadcast %148 : vector<1x64xf32> to vector<16x64xf32>
    %241 = arith.addf %239, %240 : vector<16x64xf32>
    %242 = vector.extract_strided_slice %5 {offsets = [8, 0], sizes = [1, 64], strides = [1, 1]} : vector<11x320xf32> to vector<1x64xf32>
    %243 = vector.extract_strided_slice %5 {offsets = [9, 0], sizes = [1, 64], strides = [1, 1]} : vector<11x320xf32> to vector<1x64xf32>
    %244 = vector.extract_strided_slice %5 {offsets = [10, 0], sizes = [1, 128], strides = [1, 1]} : vector<11x320xf32> to vector<1x128xf32>
    %cst_97 = arith.constant dense<0.000000e+00> : vector<16xf32>
    %245 = vector.multi_reduction <add>, %241, %cst_97 [1] : vector<16x64xf32> to vector<16xf32>
    %246 = vector.shape_cast %245 : vector<16xf32> to vector<16x1xf32>
    %cst_98 = arith.constant 6.400000e+01 : f32
    %247 = vector.broadcast %cst_98 : f32 to vector<16x1xf32>
    %248 = arith.divf %246, %247 : vector<16x1xf32>
    %249 = vector.broadcast %248 : vector<16x1xf32> to vector<16x64xf32>
    %250 = arith.subf %241, %249 : vector<16x64xf32>
    %251 = arith.mulf %250, %250 : vector<16x64xf32>
    %cst_99 = arith.constant dense<0.000000e+00> : vector<16xf32>
    %252 = vector.multi_reduction <add>, %251, %cst_99 [1] : vector<16x64xf32> to vector<16xf32>
    %253 = vector.shape_cast %252 : vector<16xf32> to vector<16x1xf32>
    %cst_100 = arith.constant 6.400000e+01 : f32
    %254 = vector.broadcast %cst_100 : f32 to vector<16x1xf32>
    %255 = arith.divf %253, %254 : vector<16x1xf32>
    %cst_101 = arith.constant 9.99999974E-6 : f32
    %256 = vector.broadcast %cst_101 : f32 to vector<16x1xf32>
    %257 = arith.addf %255, %256 : vector<16x1xf32>
    %258 = math.rsqrt %257 : vector<16x1xf32>
    %259 = vector.broadcast %258 : vector<16x1xf32> to vector<16x64xf32>
    %260 = arith.mulf %250, %259 : vector<16x64xf32>
    %261 = vector.broadcast %242 : vector<1x64xf32> to vector<16x64xf32>
    %262 = arith.mulf %260, %261 : vector<16x64xf32>
    %263 = vector.broadcast %243 : vector<1x64xf32> to vector<16x64xf32>
    %264 = arith.addf %262, %263 : vector<16x64xf32>
    %cst_102 = arith.constant dense<0.000000e+00> : vector<16x128xf32>
    %265 = tpu.matmul %264, %7, %cst_102 {dimension_numbers = #tpu.dot_dimension_numbers<[1], [0], [0], [1], [0, 0, 1, 1], [], []>} : vector<16x64xf32>, vector<64x128xf32>, vector<16x128xf32> -> vector<16x128xf32>
    %266 = vector.broadcast %244 : vector<1x128xf32> to vector<16x128xf32>
    %267 = arith.addf %265, %266 : vector<16x128xf32>
    %c0_103 = arith.constant 0 : index
    %c0_104 = arith.constant 0 : index
    %268 = vector.load %arg7[%c0_103, %c0_104] : memref<16x128xf32, #tpu.memory_space<vmem>>, vector<16x128xf32>
    tpu.vector_store %arg7[%c0_103, %c0_104], %267 {strides = array<i32>} : memref<16x128xf32, #tpu.memory_space<vmem>>, vector<16x128xf32>,
    return
  }
}

</mosaic_0001>

<bundles_post_ra>
// kernel: tile.14
= control target key start
LH: loop header
LB: loop body
LE: loop exit
PB: predicated region body
PF: predicated region fallthrough
CT: control target
= control target key end

     0   :  { %vm82_vm0 = vcmask 1047556   ;;  %vm84_vm1 = vcmask 130048   ;;  %s195_s9 = smov 48   ;;  %s196_s14 = smov 16   ;;  %vm103_vm2 = vcmask 523648   ;;  %vm124_vm3 = vcmask 392448   ;;  %s289_s0 = inlined_call_operand.vmem [shape: f32[2,1,8,4,16], index: 0, kind: input, shape index: {}]   ;;  %s290_s1 = inlined_call_operand.vmem [shape: f32[16,64], index: 1, kind: output, shape index: {}]  }
   0x1   :  { %v180_v0 = vld [vmem:[%s289_s0 + $0x1c] sm:$0xf]  ;;  %v181_v1 = vld [vmem:[%s289_s0 + $0x18] sm:$0xf]  ;;  %v182_v2 = vld [vmem:[%s289_s0 + $0x14] sm:$0xf] }
   0x2   :  { %48 = vst [vmem:[#allocation0 + $0x38] sm:$0xf] %v180_v0  ;;  %53 = vst [vmem:[#allocation0 + $0x30] sm:$0xf] %v181_v1  ;;  %v183_v3 = vld [vmem:[%s289_s0 + $0x10] sm:$0xf] }
   0x3   :  { %58 = vst [vmem:[#allocation0 + $0x28] sm:$0xf] %v182_v2  ;;  %v184_v4 = vld [vmem:[%s289_s0 + $0xc] sm:$0xf]  ;;  %v185_v5 = vld [vmem:[%s289_s0 + $0x8] sm:$0xf] }
   0x4   :  { %63 = vst [vmem:[#allocation0 + $0x20] sm:$0xf] %v183_v3  ;;  %68 = vst [vmem:[#allocation0 + $0x18] sm:$0xf] %v184_v4  ;;  %v186_v6 = vld [vmem:[%s289_s0 + $0x4] sm:$0xf] }
   0x5   :  { %73 = vst [vmem:[#allocation0 + $0x10] sm:$0xf] %v185_v5  ;;  %v78_v7 = vld [vmem:[%s289_s0] sm:$0xf]  ;;  %77 = vst [vmem:[#allocation0 + $0x8] sm:$0xf] %v186_v6 }
   0x6   :  { %79 = vst [vmem:[#allocation0] sm:$0xf] %v78_v7  ;;  %v172_v8 = vld [vmem:[%s289_s0 + $0x3c] sm:$0xf]  ;;  %v173_v9 = vld [vmem:[%s289_s0 + $0x38] sm:$0xf] }
   0x7   :  { %8 = vst [vmem:[#allocation0 + $0x78] sm:$0xf] %v172_v8  ;;  %13 = vst [vmem:[#allocation0 + $0x70] sm:$0xf] %v173_v9  ;;  %v174_v10 = vld [vmem:[%s289_s0 + $0x34] sm:$0xf] }
   0x8   :  { %v175_v11 = vld [vmem:[%s289_s0 + $0x30] sm:$0xf]  ;;  %v176_v12 = vld [vmem:[%s289_s0 + $0x2c] sm:$0xf]  ;;  %18 = vst [vmem:[#allocation0 + $0x68] sm:$0xf] %v174_v10 }
   0x9   :  { %23 = vst [vmem:[#allocation0 + $0x60] sm:$0xf] %v175_v11  ;;  %28 = vst [vmem:[#allocation0 + $0x58] sm:$0xf] %v176_v12  ;;  %v177_v13 = vld [vmem:[%s289_s0 + $0x28] sm:$0xf] }
   0xa   :  { %v178_v14 = vld [vmem:[%s289_s0 + $0x24] sm:$0xf]  ;;  %v179_v15 = vld [vmem:[%s289_s0 + $0x20] sm:$0xf]  ;;  %33 = vst [vmem:[#allocation0 + $0x50] sm:$0xf] %v177_v13 }
   0xb   :  { %38 = vst [vmem:[#allocation0 + $0x48] sm:$0xf] %v178_v14  ;;  %43 = vst [vmem:[#allocation0 + $0x40] sm:$0xf] %v179_v15  ;;  %s194_s0 = smov 32   ;;  %vm145_vm4 = vcmask 261248  }
   0xc   :  { %v119_v16 = vld [vmem:[#allocation0 + $0x2] ss:$8 sm:$0xf0]   ;;  %v98_v17 = vld [vmem:[#allocation0 + $0x3] ss:$8 sm:$0xf0]  }
   0xd   :  { %v117_v18 = vld [vmem:[#allocation0 + $0x2] ss:$8 sm:$0xf]   ;;  %v96_v19 = vld [vmem:[#allocation0 + $0x3] ss:$8 sm:$0xf]  }
   0xe   :  { %v121_v20 = vsel %vm82_vm0, %v119_v16, %v117_v18  ;;  %v100_v21 = vsel %vm82_vm0, %v98_v17, %v96_v19  ;;  %v138_v24 = vld [vmem:[#allocation0 + $0x1] ss:$8 sm:$0xf]   ;;  %v80_v32 = vld [vmem:[#allocation0] ss:$8 sm:$0xf]  }
   0xf   :  { %122 = vrot.lane.b32.xlu1 %v121_v20, %s194_s0  ;;  %101 = vrot.lane.b32.xlu0 %v100_v21, %s195_s9  ;;  %v140_v25 = vld [vmem:[#allocation0 + $0x1] ss:$8 sm:$0xf0]   ;;  %v81_v33 = vld [vmem:[#allocation0] ss:$8 sm:$0xf0]  }
  0x10   :  { %v129_v22 = vld [vmem:[#allocation0 + $0x42] ss:$8 sm:$0xf0]   ;;  %v108_v23 = vld [vmem:[#allocation0 + $0x43] ss:$8 sm:$0xf0]   ;;  %v83_v34 = vsel %vm82_vm0, %v81_v33, %v80_v32  ;;  %v142_v38 = vsel %vm82_vm0, %v140_v25, %v138_v24 }
  0x11   :  { %v150_v31 = vld [vmem:[#allocation0 + $0x41] ss:$8 sm:$0xf0]   ;;  %v89_v36 = vld [vmem:[#allocation0 + $0x40] ss:$8 sm:$0xf0]  }
  0x12   :  { %v127_v26 = vld [vmem:[#allocation0 + $0x42] ss:$8 sm:$0xf]   ;;  %v106_v27 = vld [vmem:[#allocation0 + $0x43] ss:$8 sm:$0xf]  }
  0x13   :  { %v131_v28 = vsel %vm82_vm0, %v129_v22, %v127_v26  ;;  %v110_v29 = vsel %vm82_vm0, %v108_v23, %v106_v27  ;;  %v148_v30 = vld [vmem:[#allocation0 + $0x41] ss:$8 sm:$0xf]   ;;  %v87_v35 = vld [vmem:[#allocation0 + $0x40] ss:$8 sm:$0xf]  }
  0x14   :  { %132 = vrot.lane.b32.xlu1 %v131_v28, %s194_s0  ;;  %111 = vrot.lane.b32.xlu0 %v110_v29, %s195_s9  ;;  %v152_v37 = vsel %vm82_vm0, %v150_v31, %v148_v30  ;;  %85 = vst.msk [vmem:[%s290_s1] sm:$0xff] %vm84_vm1, %v83_v34   ;;  %v91_v39 = vsel %vm82_vm0, %v89_v36, %v87_v35 }
  0x15   :  { %187 = vst.msk [vmem:[%s290_s1 + $0x8] sm:$0xff] %vm84_vm1, %v91_v39  }
  0x18   :  { %153 = vrot.lane.b32.xlu1 %v152_v37, %s196_s14  ;;  %143 = vrot.lane.b32.xlu0 %v142_v38, %s196_s14 }
  0x81   :  { %v123_v40 = vpop.permute.xlu1 %122   ;;  %v102_v41 = vpop.permute.xlu0 %101  }
  0x82   :  { %104 = vst.msk [vmem:[%s290_s1] sm:$0xff] %vm103_vm2, %v102_v41  }
  0x83   :  { %125 = vst.msk [vmem:[%s290_s1] sm:$0xff] %vm124_vm3, %v123_v40  }
  0x86   :  { %v133_v42 = vpop.permute.xlu1 %132   ;;  %v112_v43 = vpop.permute.xlu0 %111  }
  0x87   :  { %188 = vst.msk [vmem:[%s290_s1 + $0x8] sm:$0xff] %vm103_vm2, %v112_v43  }
  0x88   :  { %189 = vst.msk [vmem:[%s290_s1 + $0x8] sm:$0xff] %vm124_vm3, %v133_v42  }
  0x8a   :  { %v154_v44 = vpop.permute.xlu1 %153   ;;  %v144_v45 = vpop.permute.xlu0 %143  }
  0x8b   :  { %190 = vst.msk [vmem:[%s290_s1 + $0x8] sm:$0xff] %vm145_vm4, %v154_v44   ;;  %146 = vst.msk [vmem:[%s290_s1] sm:$0xff] %vm145_vm4, %v144_v45  }

// kernel: eq.1
= control target key start
LH: loop header
LB: loop body
LE: loop exit
PB: predicated region body
PF: predicated region fallthrough
CT: control target
= control target key end

     0   :  { %vm7_vm0 = vcmask 64512   ;;  %vm13_vm1 = vcmask 130112   ;;  %s39_s0 = inlined_call_operand.vmem [shape: s32[2,8], index: 0, kind: input, shape index: {}]   ;;  %s40_s1 = inlined_call_operand.vmem [shape: s32[16], index: 1, kind: output, shape index: {}]  }
   0x1   :  { %v4_v0 = vld [vmem:[%s39_s0] sm:$0x3]  ;;  %s22_s0 = smov 8  }
   0x2   :  { %5 = vst [vmem:[#allocation1] sm:$0x3] %v4_v0 }
   0x9   :  { %v10_v1 = vld [vmem:[#allocation1 + $0x1] sm:$0x1]   ;;  %v6_v2 = vld [vmem:[#allocation1] sm:$0x1]  }
   0xa   :  { %11 = vrot.lane.b32.xlu0 %v10_v1, %s22_s0  ;;  %8 = vst.msk [vmem:[#allocation0] sm:$0x1] %vm7_vm0, %v6_v2  }
  0x7c   :  { %v12_v3 = vpop.permute.xlu0 %11  }
  0x7d   :  { %14 = vst.msk [vmem:[#allocation0] sm:$0x1] %vm13_vm1, %v12_v3  }
  0x84   :  { %v18_v4 = vld [vmem:[#allocation0] sm:$0x1] }
  0x85   :  { %20 = vst [vmem:[%s40_s1] sm:$0x1] %v18_v4 }

// kernel: squeeze.7
= control target key start
LH: loop header
LB: loop body
LE: loop exit
PB: predicated region body
PF: predicated region fallthrough
CT: control target
= control target key end

     0   :  { %vm3_vm0 = vcmask 130048   ;;  %s399_s12 = smov 112   ;;  %s401_s15 = smov 80   ;;  %s552_s0 = inlined_call_operand.vmem [shape: f32[1,2,16,64], index: 0, kind: input, shape index: {}]   ;;  %s553_s1 = inlined_call_operand.vmem [shape: f32[2,16,4,16], index: 1, kind: output, shape index: {}]  }
   0x1   :  { %v357_v0 = vld [vmem:[%s552_s0 + $0x10] sm:$0xff]   ;;  %v27_v1 = vld [vmem:[%s552_s0] sm:$0xff]   ;;  %v358_v2 = vld [vmem:[%s552_s0 + $0x18] sm:$0xff]  }
   0x2   :  { %46 = vrot.lane.b32.xlu1 %v357_v0, %s399_s12  ;;  %28 = vrot.lane.b32.xlu0 %v27_v1, %s399_s12  ;;  %v356_v3 = vld [vmem:[%s552_s0 + $0x8] sm:$0xff]   ;;  %4 = vst.msk [vmem:[#allocation0] ss:$8 sm:$0xf] %vm3_vm0, %v27_v1   ;;  %s400_s0 = smov 96  }
   0x3   :  { %5 = vst.msk [vmem:[#allocation0] ss:$8 sm:$0xf0] %vm3_vm0, %v27_v1   ;;  %24 = vst.msk [vmem:[#allocation0 + $0xc0] ss:$8 sm:$0xf] %vm3_vm0, %v358_v2  }
   0x4   :  { %26 = vst.msk [vmem:[#allocation0 + $0xc0] ss:$8 sm:$0xf0] %vm3_vm0, %v358_v2   ;;  %17 = vst.msk [vmem:[#allocation0 + $0x80] ss:$8 sm:$0xf] %vm3_vm0, %v357_v0  }
   0x5   :  { %19 = vst.msk [vmem:[#allocation0 + $0x80] ss:$8 sm:$0xf0] %vm3_vm0, %v357_v0   ;;  %12 = vst.msk [vmem:[#allocation0 + $0x40] ss:$8 sm:$0xf0] %vm3_vm0, %v356_v3  }
   0x6   :  { %10 = vst.msk [vmem:[#allocation0 + $0x40] ss:$8 sm:$0xf] %vm3_vm0, %v356_v3   ;;  %55 = vrot.lane.b32.xlu1 %v358_v2, %s399_s12  ;;  %37 = vrot.lane.b32.xlu0 %v356_v3, %s399_s12 }
   0xa   :  { %72 = vrot.lane.b32.xlu1 %v356_v3, %s400_s0  ;;  %63 = vrot.lane.b32.xlu0 %v27_v1, %s400_s0 }
   0xe   :  { %90 = vrot.lane.b32.xlu1 %v358_v2, %s400_s0  ;;  %81 = vrot.lane.b32.xlu0 %v357_v0, %s400_s0 }
  0x12   :  { %107 = vrot.lane.b32.xlu1 %v356_v3, %s401_s15  ;;  %98 = vrot.lane.b32.xlu0 %v27_v1, %s401_s15 }
  0x16   :  { %125 = vrot.lane.b32.xlu1 %v358_v2, %s401_s15  ;;  %116 = vrot.lane.b32.xlu0 %v357_v0, %s401_s15 }
  0x74   :  { %v47_v4 = vpop.permute.xlu1 %46   ;;  %v29_v5 = vpop.permute.xlu0 %28  }
  0x75   :  { %50 = vst.msk [vmem:[#allocation0 + $0x81] ss:$8 sm:$0xf] %vm3_vm0, %v47_v4   ;;  %52 = vst.msk [vmem:[#allocation0 + $0x81] ss:$8 sm:$0xf0] %vm3_vm0, %v47_v4  }
  0x76   :  { %32 = vst.msk [vmem:[#allocation0 + $0x1] ss:$8 sm:$0xf] %vm3_vm0, %v29_v5   ;;  %34 = vst.msk [vmem:[#allocation0 + $0x1] ss:$8 sm:$0xf0] %vm3_vm0, %v29_v5  }
  0x78   :  { %v56_v6 = vpop.permute.xlu1 %55   ;;  %v38_v7 = vpop.permute.xlu0 %37  }
  0x79   :  { %59 = vst.msk [vmem:[#allocation0 + $0xc1] ss:$8 sm:$0xf] %vm3_vm0, %v56_v6   ;;  %61 = vst.msk [vmem:[#allocation0 + $0xc1] ss:$8 sm:$0xf0] %vm3_vm0, %v56_v6  }
  0x7a   :  { %41 = vst.msk [vmem:[#allocation0 + $0x41] ss:$8 sm:$0xf] %vm3_vm0, %v38_v7   ;;  %43 = vst.msk [vmem:[#allocation0 + $0x41] ss:$8 sm:$0xf0] %vm3_vm0, %v38_v7  }
  0x7c   :  { %v73_v8 = vpop.permute.xlu1 %72   ;;  %v64_v9 = vpop.permute.xlu0 %63  }
  0x7d   :  { %76 = vst.msk [vmem:[#allocation0 + $0x42] ss:$8 sm:$0xf] %vm3_vm0, %v73_v8   ;;  %78 = vst.msk [vmem:[#allocation0 + $0x42] ss:$8 sm:$0xf0] %vm3_vm0, %v73_v8  }
  0x7e   :  { %67 = vst.msk [vmem:[#allocation0 + $0x2] ss:$8 sm:$0xf] %vm3_vm0, %v64_v9   ;;  %69 = vst.msk [vmem:[#allocation0 + $0x2] ss:$8 sm:$0xf0] %vm3_vm0, %v64_v9  }
  0x80   :  { %v91_v10 = vpop.permute.xlu1 %90   ;;  %v82_v11 = vpop.permute.xlu0 %81  }
  0x81   :  { %94 = vst.msk [vmem:[#allocation0 + $0xc2] ss:$8 sm:$0xf] %vm3_vm0, %v91_v10   ;;  %96 = vst.msk [vmem:[#allocation0 + $0xc2] ss:$8 sm:$0xf0] %vm3_vm0, %v91_v10  }
  0x82   :  { %85 = vst.msk [vmem:[#allocation0 + $0x82] ss:$8 sm:$0xf] %vm3_vm0, %v82_v11   ;;  %87 = vst.msk [vmem:[#allocation0 + $0x82] ss:$8 sm:$0xf0] %vm3_vm0, %v82_v11  }
  0x84   :  { %v108_v12 = vpop.permute.xlu1 %107   ;;  %v99_v13 = vpop.permute.xlu0 %98  }
  0x85   :  { %111 = vst.msk [vmem:[#allocation0 + $0x43] ss:$8 sm:$0xf] %vm3_vm0, %v108_v12   ;;  %113 = vst.msk [vmem:[#allocation0 + $0x43] ss:$8 sm:$0xf0] %vm3_vm0, %v108_v12  }
  0x86   :  { %102 = vst.msk [vmem:[#allocation0 + $0x3] ss:$8 sm:$0xf] %vm3_vm0, %v99_v13   ;;  %104 = vst.msk [vmem:[#allocation0 + $0x3] ss:$8 sm:$0xf0] %vm3_vm0, %v99_v13  }
  0x88   :  { %v126_v14 = vpop.permute.xlu1 %125   ;;  %v117_v15 = vpop.permute.xlu0 %116  }
  0x89   :  { %129 = vst.msk [vmem:[#allocation0 + $0xc3] ss:$8 sm:$0xf] %vm3_vm0, %v126_v14   ;;  %131 = vst.msk [vmem:[#allocation0 + $0xc3] ss:$8 sm:$0xf0] %vm3_vm0, %v126_v14  }
  0x8a   :  { %120 = vst.msk [vmem:[#allocation0 + $0x83] ss:$8 sm:$0xf] %vm3_vm0, %v117_v15   ;;  %122 = vst.msk [vmem:[#allocation0 + $0x83] ss:$8 sm:$0xf0] %vm3_vm0, %v117_v15  }
  0x8c   :  { %v180_v16 = vld [vmem:[#allocation0 + $0x40] sm:$0xf]  ;;  %v186_v17 = vld [vmem:[#allocation0 + $0x48] sm:$0xf]  ;;  %v192_v18 = vld [vmem:[#allocation0 + $0x50] sm:$0xf] }
  0x8d   :  { %372 = vst [vmem:[%s553_s1 + $0x20] sm:$0xf] %v180_v16  ;;  %373 = vst [vmem:[%s553_s1 + $0x24] sm:$0xf] %v186_v17  ;;  %v198_v19 = vld [vmem:[#allocation0 + $0x58] sm:$0xf] }
  0x8e   :  { %374 = vst [vmem:[%s553_s1 + $0x28] sm:$0xf] %v192_v18  ;;  %v204_v20 = vld [vmem:[#allocation0 + $0x60] sm:$0xf]  ;;  %v210_v21 = vld [vmem:[#allocation0 + $0x68] sm:$0xf] }
  0x8f   :  { %375 = vst [vmem:[%s553_s1 + $0x2c] sm:$0xf] %v198_v19  ;;  %v216_v22 = vld [vmem:[#allocation0 + $0x70] sm:$0xf]  ;;  %v222_v23 = vld [vmem:[#allocation0 + $0x78] sm:$0xf] }
  0x90   :  { %v135_v24 = vld [vmem:[#allocation0] sm:$0xf]  ;;  %376 = vst [vmem:[%s553_s1 + $0x30] sm:$0xf] %v204_v20  ;;  %377 = vst [vmem:[%s553_s1 + $0x34] sm:$0xf] %v210_v21 }
  0x91   :  { %137 = vst [vmem:[%s553_s1] sm:$0xf] %v135_v24  ;;  %v139_v25 = vld [vmem:[#allocation0 + $0x8] sm:$0xf]  ;;  %v144_v26 = vld [vmem:[#allocation0 + $0x10] sm:$0xf] }
  0x92   :  { %v150_v27 = vld [vmem:[#allocation0 + $0x18] sm:$0xf]  ;;  %378 = vst [vmem:[%s553_s1 + $0x38] sm:$0xf] %v216_v22  ;;  %379 = vst [vmem:[%s553_s1 + $0x3c] sm:$0xf] %v222_v23 }
  0x93   :  { %365 = vst [vmem:[%s553_s1 + $0x4] sm:$0xf] %v139_v25  ;;  %366 = vst [vmem:[%s553_s1 + $0x8] sm:$0xf] %v144_v26  ;;  %v156_v28 = vld [vmem:[#allocation0 + $0x20] sm:$0xf] }
  0x94   :  { %367 = vst [vmem:[%s553_s1 + $0xc] sm:$0xf] %v150_v27  ;;  %v162_v29 = vld [vmem:[#allocation0 + $0x28] sm:$0xf]  ;;  %v168_v30 = vld [vmem:[#allocation0 + $0x30] sm:$0xf] }
  0x95   :  { %368 = vst [vmem:[%s553_s1 + $0x10] sm:$0xf] %v156_v28  ;;  %369 = vst [vmem:[%s553_s1 + $0x14] sm:$0xf] %v162_v29  ;;  %v174_v31 = vld [vmem:[#allocation0 + $0x38] sm:$0xf] }
  0x96   :  { %370 = vst [vmem:[%s553_s1 + $0x18] sm:$0xf] %v168_v30  ;;  %v276_v32 = vld [vmem:[#allocation0 + $0xc0] sm:$0xf]  ;;  %v282_v33 = vld [vmem:[#allocation0 + $0xc8] sm:$0xf] }
  0x97   :  { %371 = vst [vmem:[%s553_s1 + $0x1c] sm:$0xf] %v174_v31  ;;  %388 = vst [vmem:[%s553_s1 + $0x60] sm:$0xf] %v276_v32  ;;  %v288_v34 = vld [vmem:[#allocation0 + $0xd0] sm:$0xf] }
  0x98   :  { %389 = vst [vmem:[%s553_s1 + $0x64] sm:$0xf] %v282_v33  ;;  %v294_v35 = vld [vmem:[#allocation0 + $0xd8] sm:$0xf]  ;;  %v300_v36 = vld [vmem:[#allocation0 + $0xe0] sm:$0xf] }
  0x99   :  { %390 = vst [vmem:[%s553_s1 + $0x68] sm:$0xf] %v288_v34  ;;  %391 = vst [vmem:[%s553_s1 + $0x6c] sm:$0xf] %v294_v35  ;;  %v306_v37 = vld [vmem:[#allocation0 + $0xe8] sm:$0xf] }
  0x9a   :  { %392 = vst [vmem:[%s553_s1 + $0x70] sm:$0xf] %v300_v36  ;;  %v312_v38 = vld [vmem:[#allocation0 + $0xf0] sm:$0xf]  ;;  %v318_v39 = vld [vmem:[#allocation0 + $0xf8] sm:$0xf] }
  0x9b   :  { %393 = vst [vmem:[%s553_s1 + $0x74] sm:$0xf] %v306_v37  ;;  %394 = vst [vmem:[%s553_s1 + $0x78] sm:$0xf] %v312_v38  ;;  %v228_v40 = vld [vmem:[#allocation0 + $0x80] sm:$0xf] }
  0x9c   :  { %395 = vst [vmem:[%s553_s1 + $0x7c] sm:$0xf] %v318_v39  ;;  %v234_v41 = vld [vmem:[#allocation0 + $0x88] sm:$0xf]  ;;  %v240_v42 = vld [vmem:[#allocation0 + $0x90] sm:$0xf] }
  0x9d   :  { %380 = vst [vmem:[%s553_s1 + $0x40] sm:$0xf] %v228_v40  ;;  %381 = vst [vmem:[%s553_s1 + $0x44] sm:$0xf] %v234_v41  ;;  %v246_v43 = vld [vmem:[#allocation0 + $0x98] sm:$0xf] }
  0x9e   :  { %382 = vst [vmem:[%s553_s1 + $0x48] sm:$0xf] %v240_v42  ;;  %v252_v44 = vld [vmem:[#allocation0 + $0xa0] sm:$0xf]  ;;  %v258_v45 = vld [vmem:[#allocation0 + $0xa8] sm:$0xf] }
  0x9f   :  { %383 = vst [vmem:[%s553_s1 + $0x4c] sm:$0xf] %v246_v43  ;;  %384 = vst [vmem:[%s553_s1 + $0x50] sm:$0xf] %v252_v44  ;;  %v264_v46 = vld [vmem:[#allocation0 + $0xb0] sm:$0xf] }
  0xa0   :  { %385 = vst [vmem:[%s553_s1 + $0x54] sm:$0xf] %v258_v45  ;;  %v270_v47 = vld [vmem:[#allocation0 + $0xb8] sm:$0xf]  ;;  %386 = vst [vmem:[%s553_s1 + $0x58] sm:$0xf] %v264_v46 }
  0xa1   :  { %387 = vst [vmem:[%s553_s1 + $0x5c] sm:$0xf] %v270_v47 }

// kernel: model_wrapper_forward.1
= control target key start
LH: loop header
LB: loop body
LE: loop exit
PB: predicated region body
PF: predicated region fallthrough
CT: control target
= control target key end

     0   :  { %s6854_s0 = inlined_call_operand.vmem [shape: f32[16,512], index: 0, kind: input, shape index: {}]   ;;  %s6855_s1 = inlined_call_operand.vmem [shape: f32[128,64], index: 1, kind: input, shape index: {}]   ;;  %s6856_s2 = inlined_call_operand.vmem [shape: f32[2,64,320], index: 2, kind: input, shape index: {}]   ;;  %s6857_s3 = inlined_call_operand.vmem [shape: f32[2,192,64], index: 3, kind: input, shape index: {}]   ;;  %s6858_s4 = inlined_call_operand.vmem [shape: f32[64,192], index: 4, kind: input, shape index: {}]   ;;  %s6859_s5 = inlined_call_operand.vmem [shape: f32[11,320], index: 5, kind: input, shape index: {}]   ;;  %s6860_s6 = inlined_call_operand.vmem [shape: f32[2,2,8,128], index: 6, kind: input, shape index: {}]   ;;  %s6861_s7 = inlined_call_operand.hbm [shape: f32[16,128], index: 7, kind: output, shape index: {0}]   ;;  %s6862_s8 = inlined_call_operand.vmem [shape: f32[2,2,16,128], index: 8, kind: output, shape index: {1}]  }
   0x1   :  { %v326_v0 = vld [vmem:[%s6855_s1] sm:$0xff]  ;;  %v327_v1 = vld [vmem:[%s6855_s1 + $0x8] sm:$0xff]  ;;  %v328_v2 = vld [vmem:[%s6855_s1 + $0x10] sm:$0xff] }
   0x2   :  { %v4459_v3 = vpack.c.bf16 %v327_v1, %v326_v0  ;;  %v329_v4 = vld [vmem:[%s6855_s1 + $0x18] sm:$0xff]  ;;  %v330_v6 = vld [vmem:[%s6855_s1 + $0x20] sm:$0xff]  ;;  %v331_v7 = vld [vmem:[%s6855_s1 + $0x28] sm:$0xff] }
   0x3   :  { %v4463_v5 = vpack.c.bf16 %v329_v4, %v328_v2  ;;  %v4467_v8 = vpack.c.bf16 %v331_v7, %v330_v6  ;;  %v29_v9 = vld [vmem:[%s6854_s0] sm:$0xff]  ;;  %v332_v10 = vld [vmem:[%s6855_s1 + $0x30] sm:$0xff]  ;;  %v333_v11 = vld [vmem:[%s6855_s1 + $0x38] sm:$0xff] }
   0x4   :  { %4460 = vmatprep.subr.bf16.mxu0 %v4459_v3  ;;  %3877 = vmatprep.mubr.f32.mxu0 %v29_v9 }
   0x5   :  { %4462 = vmatpush3.bf16.msra.mxu0 %v4459_v3 }
   0x6   :  { %4464 = vmatprep.subr.bf16.mxu0 %v4463_v5 }
   0x7   :  { %14 = vsyncpa [#allocation3], 0  ;;  %v4471_v12 = vpack.c.bf16 %v333_v11, %v332_v10  ;;  %v334_v13 = vld [vmem:[%s6855_s1 + $0x40] sm:$0xff]  ;;  %v335_v14 = vld [vmem:[%s6855_s1 + $0x48] sm:$0xff]  ;;  %vm417_vm0 = vcmask 523264   ;;  %v6869_v59 = vmov 0.0  }
   0x8   :  { %v4475_v15 = vpack.c.bf16 %v335_v14, %v334_v13  ;;  %v336_v16 = vld [vmem:[%s6855_s1 + $0x50] sm:$0xff]  ;;  %v337_v17 = vld [vmem:[%s6855_s1 + $0x58] sm:$0xff]  ;;  %v338_v19 = vld [vmem:[%s6855_s1 + $0x60] sm:$0xff]  ;;  %563 = vmatprep.mubr.f32.mxu1 %v6869_v59  ;;  %s5115_s16 = smov 64   ;;  %vm904_vm3 = vcmask 261120   ;;  %vm897_vm5 = vcmask 1048064  }
   0x9   :  { %4466 = vmatpush3.bf16.msra.mxu0 %v4463_v5  ;;  %v4479_v18 = vpack.c.bf16 %v337_v17, %v336_v16  ;;  %v339_v20 = vld [vmem:[%s6855_s1 + $0x68] sm:$0xff]  ;;  %v340_v22 = vld [vmem:[%s6855_s1 + $0x70] sm:$0xff]  ;;  %v341_v23 = vld [vmem:[%s6855_s1 + $0x78] sm:$0xff] }
   0xa   :  { %4468 = vmatprep.subr.bf16.mxu0 %v4467_v8  ;;  %v4483_v21 = vpack.c.bf16 %v339_v20, %v338_v19  ;;  %v4487_v24 = vpack.c.bf16 %v341_v23, %v340_v22  ;;  %v33_v25 = vld [vmem:[%s6854_s0 + $0x20] sm:$0xff]  ;;  %v458_v40 = vld [vmem:[%s6856_s2 + $0x8] sm:$0xff]  ;;  %v460_v44 = vld [vmem:[%s6856_s2 + $0x18] sm:$0xff] }
   0xb   :  { %v461_v41 = vld [vmem:[%s6856_s2 + $0x20] sm:$0xff]  ;;  %v464_v46 = vld [vmem:[%s6856_s2 + $0x38] sm:$0xff]  ;;  %v467_v47 = vld [vmem:[%s6856_s2 + $0x50] sm:$0xff] }
   0xc   :  { %v4491_v42 = vpack.c.bf16 %v461_v41, %v458_v40  ;;  %v457_v43 = vld [vmem:[%s6856_s2] sm:$0xff]  ;;  %v4495_v48 = vpack.c.bf16 %v467_v47, %v464_v46  ;;  %v463_v49 = vld [vmem:[%s6856_s2 + $0x30] sm:$0xff]  ;;  %v466_v50 = vld [vmem:[%s6856_s2 + $0x48] sm:$0xff] }
   0xd   :  { %4470 = vmatpush3.bf16.msra.mxu0 %v4467_v8  ;;  %v4493_v45 = vpack.c.bf16 %v460_v44, %v457_v43  ;;  %v4497_v51 = vpack.c.bf16 %v466_v50, %v463_v49  ;;  %v470_v52 = vld [vmem:[%s6856_s2 + $0x68] sm:$0xff]  ;;  %v473_v53 = vld [vmem:[%s6856_s2 + $0x80] sm:$0xff]  ;;  %v472_v56 = vld [vmem:[%s6856_s2 + $0x78] sm:$0xff] }
   0xe   :  { %4472 = vmatprep.subr.bf16.mxu0 %v4471_v12  ;;  %4492 = vmatprep.subr.bf16.mxu1 %v4491_v42  ;;  %v469_v54 = vld [vmem:[%s6856_s2 + $0x60] sm:$0xff]  ;;  %v4499_v55 = vpack.c.bf16 %v473_v53, %v470_v52  ;;  %v476_v57 = vld [vmem:[%s6856_s2 + $0x98] sm:$0xff]  ;;  %v479_v58 = vld [vmem:[%s6856_s2 + $0xb0] sm:$0xff] }
   0xf   :  { %4494 = vmatpush1.bf16.msra.mxu1 %v4493_v45  ;;  %v4501_v60 = vpack.c.bf16 %v472_v56, %v469_v54  ;;  %v4503_v61 = vpack.c.bf16 %v479_v58, %v476_v57  ;;  %v475_v62 = vld [vmem:[%s6856_s2 + $0x90] sm:$0xff]  ;;  %v478_v63 = vld [vmem:[%s6856_s2 + $0xa8] sm:$0xff]  ;;  %v44_v5 = vld [vmem:[%s6858_s4 + $0x18] sm:$0xff] }
  0x10   :  { %4496 = vmatprep.subr.bf16.mxu1 %v4495_v48  ;;  %v459_v0 = vld [vmem:[%s6856_s2 + $0x10] sm:$0xff]  ;;  %v462_v1 = vld [vmem:[%s6856_s2 + $0x28] sm:$0xff]  ;;  %v4505_v2 = vpack.c.bf16 %v478_v63, %v475_v62  ;;  %v48_v8 = vld [vmem:[%s6858_s4 + $0x38] sm:$0xff] }
  0x11   :  { %4474 = vmatpush3.bf16.msra.mxu0 %v4471_v12  ;;  %v4507_v3 = vpack.c.bf16 %v462_v1, %v459_v0  ;;  %v42_v4 = vld [vmem:[%s6858_s4 + $0x8] sm:$0xff]  ;;  %v52_v11 = vld [vmem:[%s6858_s4 + $0x58] sm:$0xff]  ;;  %v37_v22 = vld [vmem:[%s6859_s5] sm:$0xff] }
  0x12   :  { %4476 = vmatprep.subr.bf16.mxu0 %v4475_v15  ;;  %v46_v6 = vld [vmem:[%s6858_s4 + $0x28] sm:$0xff]  ;;  %v5303_v7 = vpack.c.bf16 %v44_v5, %v42_v4  ;;  %v480_v43 = vld [vmem:[%s6856_s2 + $0xb8] sm:$0xff]  ;;  %v5392_v54 = vld [vmem:[%s6854_s0 + $0x30] sm:$0xff] }
  0x13   :  { %4498 = vmatpush1.bf16.msra.mxu1 %v4497_v51  ;;  %v5308_v9 = vpack.c.bf16 %v48_v8, %v46_v6  ;;  %v50_v10 = vld [vmem:[%s6858_s4 + $0x48] sm:$0xff]  ;;  %v56_v46 = vld [vmem:[%s6858_s4 + $0x78] sm:$0xff]  ;;  %v5405_v57 = vld [vmem:[%s6854_s0 + $0x10] sm:$0xff] }
  0x14   :  { %4500 = vmatprep.subr.bf16.mxu1 %v4499_v55  ;;  %v5319_v12 = vpack.c.bf16 %v52_v11, %v50_v10  ;;  %v54_v45 = vld [vmem:[%s6858_s4 + $0x68] sm:$0xff]  ;;  %v5432_v6 = vld [vmem:[%s6854_s0 + $0x38] sm:$0xff] }
  0x15   :  { %4478 = vmatpush3.bf16.msra.mxu0 %v4475_v15  ;;  %v65_v15 = vlaneseq  ;;  %v5373_v47 = vpack.c.bf16 %v56_v46, %v54_v45  ;;  %v38_v5 = vld [vmem:[%s6859_s5 + $0x8] sm:$0xff] }
  0x16   :  { %4480 = vmatprep.subr.bf16.mxu0 %v4479_v18 }
  0x17   :  { %4502 = vmatpush1.bf16.msra.mxu1 %v4501_v60  ;;  %v5325_v19 = vshrl.u32 %v65_v15, 7 }
  0x18   :  { %4504 = vmatprep.subr.bf16.mxu1 %v4503_v61 }
  0x19   :  { %4482 = vmatpush3.bf16.msra.mxu0 %v4479_v18  ;;  %v6863_v23 = vsub.s32 1, %v5325_v19  ;;  %v5380_v48 = vsub.s32 2, %v5325_v19 }
  0x1a   :  { %4484 = vmatprep.subr.bf16.mxu0 %v4483_v21 }
  0x1b   :  { %4506 = vmatpush1.bf16.msra.mxu1 %v4505_v2  ;;  %v484_v49 = vrot.slane %v37_v22, %v5380_v48  ;;  %v5422_v2 = vld [vmem:[%s6854_s0 + $0x18] sm:$0xff]  ;;  %v488_v8 = vrot.slane %v38_v5, %v5380_v48  ;;  %v5656_v5 = vadd.s32 88, %v5325_v19 }
  0x1c   :  { %4508 = vmatprep.subr.bf16.mxu1 %v4507_v3 }
  0x1d   :  { %4486 = vmatpush3.bf16.msra.mxu0 %v4483_v21  ;;  %v6864_v21 = vsub.s32 0, %v5325_v19 }
  0x1e   :  { %4488 = vmatprep.subr.bf16.mxu0 %v4487_v24 }
  0x21   :  { %4490 = vmatpush3.bf16.msra.mxu0 %v4487_v24  ;;  %v448_v24 = vrot.slane %v37_v22, %v6864_v21 }
  0x22   :  { %4524 = vmatprep.subr.bf16.mxu0 %v5303_v7 }
  0x24   :  { %3878 = vmatmul.mubr.f32.vlgmr.msra.gmra.mrb[0].mxu0 %v33_v25 }
  0x25   :  { %4526 = vmatpush3.bf16.msra.mxu0 %v5303_v7 }
  0x26   :  { %4528 = vmatprep.subr.bf16.mxu0 %v5308_v9 }
  0x29   :  { %4530 = vmatpush3.bf16.msra.mxu0 %v5308_v9 }
  0x2a   :  { %4532 = vmatprep.subr.bf16.mxu0 %v5319_v12 }
  0x2d   :  { %4534 = vmatpush3.bf16.msra.mxu0 %v5319_v12 }
  0x2e   :  { %4536 = vmatprep.subr.bf16.mxu0 %v5373_v47 }
  0x31   :  { %4538 = vmatpush3.bf16.msra.mxu0 %v5373_v47 }
  0xf7   :  { %v5219_v26 = vpop.f32.mrb[0].mxu0 }
  0xf8   :  { %v5221_v27 = vpop.f32.mrb[1].mxu0  ;;  %v421_v29 = vsel %vm417_vm0, %v5219_v26, 0.0 }
  0xf9   :  { %v418_v28 = vsel %vm417_vm0, %v5221_v27, 0.0 }
  0xfa   :  { %419 = vadd.xlane.f32.xlu0 %v418_v28 }
  0xfe   :  { %422 = vadd.xlane.f32.xlu0 %v421_v29  ;;  %v454_v29 = vrot.slane %v37_v22, %v6863_v23 }
 0x187   :  { %v420_v30 = vpop.xlane.xlu0 %419 }
 0x188   :  { %v425_v31 = vmul.f32 0.015625, %v420_v30  ;;  %v465_v30 = vld [vmem:[%s6856_s2 + $0x40] sm:$0xff] }
 0x18a   :  { %v5228_v32 = vsub.f32 %v5221_v27, %v425_v31  ;;  %v468_v31 = vld [vmem:[%s6856_s2 + $0x58] sm:$0xff] }
 0x18b   :  { %v423_v33 = vpop.xlane.xlu0 %422 }
 0x18c   :  { %v426_v34 = vmul.f32 0.015625, %v423_v33  ;;  %v429_v35 = vmul.f32 %v5228_v32, %v5228_v32 }
 0x18e   :  { %v5233_v36 = vsub.f32 %v5219_v26, %v426_v34  ;;  %v431_v37 = vsel %vm417_vm0, %v429_v35, 0.0 }
 0x18f   :  { %432 = vadd.xlane.f32.xlu1 %v431_v37  ;;  %v4511_v37 = vpack.c.bf16 %v468_v31, %v465_v30  ;;  %v84_v30 = vshra.s32 %v5325_v19, 6 }
 0x190   :  { %v430_v38 = vmul.f32 %v5233_v36, %v5233_v36 }
 0x192   :  { %v434_v39 = vsel %vm417_vm0, %v430_v38, 0.0 }
 0x193   :  { %435 = vadd.xlane.f32.xlu1 %v434_v39  ;;  %v474_v39 = vld [vmem:[%s6856_s2 + $0x88] sm:$0xff] }
 0x21c   :  { %v433_v13 = vpop.xlane.xlu1 %432 }
 0x21d   :  { %v437_v14 = vmul.f32 0.015625, %v433_v13 }
 0x21f   :  { %v439_v16 = vadd.f32 1e-05, %v437_v14  ;;  %v57_v14 = vld [vmem:[%s6860_s6] sm:$0xff] }
 0x220   :  { %v436_v17 = vpop.xlane.xlu1 %435  ;;  %61 = vst [vmem:[%s6862_s8] sm:$0xff] %v57_v14 }
 0x221   :  { %5037 = vrsqrt.f32 %v439_v16  ;;  %v438_v18 = vmul.f32 0.015625, %v436_v17 }
 0x223   :  { %v440_v20 = vadd.f32 1e-05, %v438_v18 }
 0x225   :  { %5039 = vrsqrt.f32 %v440_v20 }
 0x22b   :  { %v5038_v25 = vpop.eup %5037 }
 0x22c   :  { %v443_v28 = vmul.f32 %v5038_v25, %v5228_v32  ;;  %v471_v32 = vld [vmem:[%s6856_s2 + $0x70] sm:$0xff]  ;;  %v83_v25 = vand.u32 127, %v65_v15 }
 0x22d   :  { %v4515_v42 = vpack.c.bf16 %v474_v39, %v471_v32  ;;  %v5495_v32 = vadd.s32 8, %v5325_v19 }
 0x22e   :  { %v449_v33 = vmul.f32 %v448_v24, %v443_v28  ;;  %v5471_v31 = vshra.s32 %v83_v25, 4 }
 0x22f   :  { %v5040_v34 = vpop.eup %5039 }
 0x230   :  { %v455_v35 = vadd.f32 %v454_v29, %v449_v33  ;;  %v444_v38 = vmul.f32 %v5040_v34, %v5233_v36  ;;  %v477_v36 = vld [vmem:[%s6856_s2 + $0xa0] sm:$0xff]  ;;  %v117_v33 = vand.u32 15, %v5325_v19  ;;  %v5474_v34 = vand.u32 15, %v83_v25 }
 0x231   :  { %v4519_v44 = vpack.c.bf16 %v480_v43, %v477_v36  ;;  %vm101_vm1 = vcmp.eq.s32.totalorder %v84_v30, %v5471_v31  ;;  %v85_v36 = vshra.s32 %v5495_v32, 6  ;;  %v118_v43 = vand.u32 15, %v5495_v32 }
 0x232   :  { %3303 = vmatmul.mubr.msk.f32.vlgmr.msra.gmra.mrb[0].mxu1 %vm417_vm0, %v455_v35  ;;  %v450_v40 = vmul.f32 %v448_v24, %v444_v38  ;;  %v5460_v24 = vld [vmem:[%s6860_s6 + $0x8] sm:$0xff]  ;;  %vm134_vm2 = vcmp.eq.s32.totalorder %v117_v33, %v5474_v34  ;;  %v5583_v30 = vadd.s32 56, %v5325_v19 }
 0x233   :  { %4510 = vmatpush3.bf16.msra.mxu1 %v4507_v3  ;;  %569 = vmatprep.mubr.f32.mxu1 %v6869_v59  ;;  %62 = vst [vmem:[%s6862_s8 + $0x10] sm:$0xff] %v5460_v24  ;;  %vm150_vm4 = vmand %vm101_vm1, %vm134_vm2  ;;  %vm5526_vm6 = vcmp.eq.s32.totalorder %v85_v36, %v5471_v31  ;;  %vm5531_vm7 = vcmp.eq.s32.totalorder %v118_v43, %v5474_v34  ;;  %v5612_v43 = vadd.s32 72, %v5325_v19 }
 0x234   :  { %4512 = vmatprep.subr.bf16.mxu1 %v4511_v37  ;;  %v456_v41 = vadd.f32 %v454_v29, %v450_v40  ;;  %v5498_v40 = vadd.s32 16, %v5325_v19  ;;  %vm151_vm10 = vmand %vm5526_vm6, %vm5531_vm7  ;;  %v6885_v21 = vshra.s32 %v5583_v30, 4 }
 0x236   :  { %3304 = vmatmul.mubr.msk.f32.gmra.mrb[2].mxu1 %vm417_vm0, %v456_v41  ;;  %v86_v45 = vshra.s32 %v5498_v40, 6  ;;  %v119_v46 = vand.u32 15, %v5498_v40 }
 0x237   :  { %4514 = vmatpush3.bf16.msra.mxu1 %v4511_v37  ;;  %3896 = vmatprep.mubr.msk.f32.mxu1 %vm417_vm0, %v455_v35  ;;  %v5480_v35 = vsel %vm150_vm4, 1.0, %v6869_v59 }
 0x238   :  { %4516 = vmatprep.subr.bf16.mxu1 %v4515_v42  ;;  %6917 = vst [vmem:[#allocation7_spill] sm:$0xff] %v5480_v35  ;;  %vm5539_vm8 = vcmp.eq.s32.totalorder %v86_v45, %v5471_v31  ;;  %vm5544_vm9 = vcmp.eq.s32.totalorder %v119_v46, %v5474_v34  ;;  %v91_v46 = vshra.s32 %v5583_v30, 6 }
 0x239   :  { %vm152_vm12 = vmand %vm5539_vm8, %vm5544_vm9 }
 0x23b   :  { %4518 = vmatpush3.bf16.msra.mxu1 %v4515_v42  ;;  %v5509_v42 = vadd.s32 24, %v5325_v19 }
 0x23c   :  { %4520 = vmatprep.subr.bf16.mxu1 %v4519_v44 }
 0x23f   :  { %4522 = vmatpush3.bf16.msra.mxu1 %v4519_v44  ;;  %v5514_v44 = vadd.s32 32, %v5325_v19 }
 0x240   :  { %4540 = vmatprep.subr.bf16.mxu1 %v5303_v7 }
 0x242   :  { %3897 = vmatmul.mubr.msk.f32.vlgmr.msra.gmra.mrb[4].mxu1 %vm417_vm0, %v456_v41 }
 0x243   :  { %4542 = vmatpush3.bf16.msra.mxu1 %v5303_v7 }
 0x244   :  { %4544 = vmatprep.subr.bf16.mxu1 %v5308_v9 }
 0x247   :  { %4546 = vmatpush3.bf16.msra.mxu1 %v5308_v9 }
 0x248   :  { %4548 = vmatprep.subr.bf16.mxu1 %v5319_v12 }
 0x24b   :  { %4550 = vmatpush3.bf16.msra.mxu1 %v5319_v12 }
 0x24c   :  { %4552 = vmatprep.subr.bf16.mxu1 %v5373_v47 }
 0x24f   :  { %4554 = vmatpush3.bf16.msra.mxu1 %v5373_v47 }
 0x305   :  { %v565_v50 = vpop.f32.mrb[0].mxu1 }
 0x306   :  { %v5383_v51 = vadd.f32 %v565_v50, %v484_v49  ;;  %v567_v52 = vpop.f32.mrb[1].mxu1 }
 0x307   :  { %v5437_v11 = vadd.f32 %v567_v52, %v488_v8 }
 0x308   :  { %784 = vrot.lane.b32.xlu0 %v5383_v51, %s5115_s16  ;;  %3915 = vmatprep.mubr.msk.f32.mxu0 %vm417_vm0, %v5383_v51 }
 0x309   :  { %v571_v53 = vpop.f32.mrb[2].mxu1 }
 0x30a   :  { %v5394_v55 = vadd.f32 %v571_v53, %v484_v49  ;;  %v573_v56 = vpop.f32.mrb[3].mxu1  ;;  %v87_v53 = vshra.s32 %v5509_v42, 6 }
 0x30b   :  { %v5441_v13 = vadd.f32 %v573_v56, %v488_v8  ;;  %v5523_v56 = vadd.s32 40, %v5325_v19  ;;  %v121_v8 = vand.u32 15, %v5514_v44 }
 0x30c   :  { %778 = vrot.lane.b32.xlu0 %v5392_v54, %s5115_s16  ;;  %786 = vrot.lane.b32.xlu1 %v5394_v55, %s5115_s16  ;;  %vm5562_vm11 = vcmp.eq.s32.totalorder %v87_v53, %v5471_v31 }
 0x30d   :  { %3916 = vmatmul.mubr.msk.f32.vlgmr.msra.gmra.mrb[2].mxu0 %vm417_vm0, %v5394_v55  ;;  %v89_v25 = vshra.s32 %v5523_v56, 6  ;;  %vm5587_vm15 = vcmp.eq.s32.totalorder %v121_v8, %v5474_v34 }
 0x30e   :  { %3945 = vmatprep.mubr.msk.f32.mxu0 %vm904_vm3, %v5480_v35 }
 0x30f   :  { %vm5607_vm2 = vcmp.eq.s32.totalorder %v89_v25, %v5471_v31  ;;  %v5767_v25 = vadd.s32 120, %v5325_v19 }
 0x310   :  { %776 = vrot.lane.b32.xlu1 %v5405_v57, %s5115_s16 }
 0x315   :  { %v5409_v58 = vpop.f32.mrb[4].mxu1 }
 0x316   :  { %v5411_v60 = vpop.f32.mrb[5].mxu1 }
 0x37a   :  { %v785_v61 = vpop.permute.xlu0 %784 }
 0x37b   :  { %3934 = vmatprep.mubr.msk.f32.mxu1 %vm417_vm0, %v785_v61 }
 0x37e   :  { %v787_v62 = vpop.permute.xlu1 %786  ;;  %v5455_v18 = vpop.permute.xlu0 %778 }
 0x37f   :  { %3935 = vmatmul.mubr.msk.f32.vlgmr.msra.gmra.mrb[6].mxu1 %vm417_vm0, %v787_v62  ;;  %6916 = vst [vmem:[#allocation6_spill] sm:$0xff] %v5455_v18  ;;  %v783_v28 = vmul.f32 %v5455_v18, %v5394_v55 }
 0x380   :  { %3977 = vmatprep.mubr.msk.f32.mxu1 %vm904_vm3, %v5480_v35 }
 0x382   :  { %v5448_v16 = vpop.permute.xlu1 %776 }
 0x383   :  { %6915 = vst [vmem:[#allocation5_spill] sm:$0xff] %v5448_v16  ;;  %v782_v17 = vmul.f32 %v5448_v16, %v5383_v51 }
 0x3e0   :  { %v5415_v63 = vpop.f32.mrb[2].mxu0 }
 0x3e1   :  { %v5417_v0 = vpop.f32.mrb[3].mxu0 }
 0x452   :  { %v3936_v1 = vpop.f32.mrb[6].mxu1 }
 0x453   :  { %v858_v3 = vpop.f32.mrb[7].mxu1  ;;  %v868_v10 = vmul.f32 %v3936_v1, %v5432_v6  ;;  %v120_v1 = vand.u32 15, %v5509_v42 }
 0x454   :  { %v867_v4 = vmul.f32 %v858_v3, %v5422_v2  ;;  %v88_v3 = vshra.s32 %v5514_v44, 6 }
 0x455   :  { %vm5572_vm13 = vcmp.eq.s32.totalorder %v120_v1, %v5474_v34 }
 0x456   :  { %871 = vrot.lane.b32.xlu1 %v867_v4, %s5115_s16  ;;  %vm5577_vm14 = vcmp.eq.s32.totalorder %v88_v3, %v5471_v31  ;;  %vm153_vm1 = vmand %vm5562_vm11, %vm5572_vm13  ;;  %v93_v4 = vshra.s32 %v5612_v43, 6  ;;  %vm5663_vm11 = vcmp.eq.s32.totalorder %v91_v46, %v5471_v31  ;;  %v128_v46 = vand.u32 15, %v5656_v5 }
 0x457   :  { %vm154_vm4 = vmand %vm5577_vm14, %vm5587_vm15  ;;  %v5645_v1 = vsel %vm153_vm1, 1.0, %v6869_v59 }
 0x458   :  { %6944 = vst [vmem:[#allocation10_spill] sm:$0xff] %v5645_v1  ;;  %v5648_v3 = vsel %vm154_vm4, 1.0, %v6869_v59  ;;  %vm5703_vm1 = vcmp.eq.s32.totalorder %v93_v4, %v5471_v31 }
 0x459   :  { %6945 = vst [vmem:[#allocation11_spill] sm:$0xff] %v5648_v3 }
 0x45a   :  { %873 = vrot.lane.b32.xlu1 %v868_v10, %s5115_s16  ;;  %v5550_v10 = vadd.s32 48, %v5325_v19 }
 0x45e   :  { %891 = vrot.lane.b32.xlu1 %v5437_v11, %s5115_s16 }
 0x462   :  { %893 = vrot.lane.b32.xlu1 %v5441_v13, %s5115_s16 }
 0x4c8   :  { %v872_v20 = vpop.permute.xlu1 %871 }
 0x4c9   :  { %v877_v22 = vadd.f32 %v872_v20, %v782_v17 }
 0x4cb   :  { %881 = vrot.lane.b32.xlu0 %v877_v22, %s5115_s16 }
 0x4cc   :  { %v874_v29 = vpop.permute.xlu1 %873 }
 0x4cd   :  { %v878_v15 = vadd.f32 %v874_v29, %v783_v28  ;;  %v122_v29 = vand.u32 15, %v5523_v56  ;;  %v5688_v28 = vadd.s32 96, %v5325_v19 }
 0x4cf   :  { %883 = vrot.lane.b32.xlu0 %v878_v15, %s5115_s16  ;;  %v90_v15 = vshra.s32 %v5550_v10, 6  ;;  %vm5619_vm6 = vcmp.eq.s32.totalorder %v122_v29, %v5474_v34  ;;  %v96_v53 = vshra.s32 %v5688_v28, 6 }
 0x4d0   :  { %v892_v37 = vpop.permute.xlu1 %891  ;;  %vm155_vm9 = vmand %vm5607_vm2, %vm5619_vm6 }
 0x4d1   :  { %vm5631_vm7 = vcmp.eq.s32.totalorder %v90_v15, %v5471_v31  ;;  %v5693_v29 = vsel %vm155_vm9, 1.0, %v6869_v59  ;;  %v770_v15 = vmul.f32 %v5417_v0, %v5422_v2 }
 0x4d2   :  { %6954 = vst [vmem:[#allocation12_spill] sm:$0xff] %v5693_v29 }
 0x4d4   :  { %v894_v41 = vpop.permute.xlu1 %893 }
 0x53d   :  { %v882_v38 = vpop.permute.xlu0 %881 }
 0x53e   :  { %887 = vst.msk [vmem:[%s6862_s8 + $0x8] sm:$0xff] %vm417_vm0, %v882_v38  ;;  %v5594_v38 = vadd.s32 64, %v5325_v19 }
 0x53f   :  { %898 = vst.msk [vmem:[%s6862_s8 + $0x8] sm:$0xff] %vm897_vm5, %v892_v37  ;;  %v123_v37 = vand.u32 15, %v5550_v10 }
 0x540   :  { %v92_v61 = vshra.s32 %v5594_v38, 6  ;;  %v125_v62 = vand.u32 15, %v5594_v38 }
 0x541   :  { %v884_v39 = vpop.permute.xlu0 %883  ;;  %vm5636_vm8 = vcmp.eq.s32.totalorder %v123_v37, %v5474_v34  ;;  %v95_v37 = vshra.s32 %v5656_v5, 6 }
 0x542   :  { %888 = vst.msk [vmem:[%s6862_s8 + $0x18] sm:$0xff] %vm417_vm0, %v884_v39  ;;  %v5597_v39 = vsel %vm151_vm10, 1.0, %v6869_v59  ;;  %vm156_vm10 = vmand %vm5631_vm7, %vm5636_vm8  ;;  %vm5677_vm13 = vcmp.eq.s32.totalorder %v92_v61, %v5471_v31  ;;  %vm5682_vm14 = vcmp.eq.s32.totalorder %v125_v62, %v5474_v34  ;;  %v129_v61 = vand.u32 15, %v5688_v28 }
 0x543   :  { %899 = vst.msk [vmem:[%s6862_s8 + $0x18] sm:$0xff] %vm897_vm5, %v894_v41  ;;  %6934 = vst [vmem:[#allocation8_spill] sm:$0xff] %v5597_v39  ;;  %v5600_v41 = vsel %vm152_vm12, 1.0, %v6869_v59  ;;  %v5696_v33 = vsel %vm156_vm10, 1.0, %v6869_v59  ;;  %v5736_v62 = vadd.s32 112, %v5325_v19  ;;  %vm5751_vm9 = vcmp.eq.s32.totalorder %v95_v37, %v5471_v31 }
 0x544   :  { %6935 = vst [vmem:[#allocation9_spill] sm:$0xff] %v5600_v41  ;;  %6955 = vst [vmem:[#allocation13_spill] sm:$0xff] %v5696_v33 }
 0x545   :  { %vm158_vm2 = vmand %vm5677_vm13, %vm5682_vm14  ;;  %vm5777_vm13 = vcmp.eq.s32.totalorder %v129_v61, %v5474_v34  ;;  %v98_v37 = vshra.s32 %v5736_v62, 6  ;;  %v131_v36 = vand.u32 15, %v5736_v62  ;;  %v99_v61 = vshra.s32 %v5767_v25, 6 }
 0x546   :  { %v901_v49 = vld [vmem:[%s6862_s8 + $0x8] sm:$0xff]  ;;  %v5744_v8 = vsel %vm158_vm2, 1.0, %v6869_v59 }
 0x547   :  { %v5002_v50 = vpack.i.bf16 %v901_v49, %v57_v14  ;;  %v4555_v52 = vpack.c.bf16 %v901_v49, %v57_v14  ;;  %v124_v49 = vand.u32 15, %v5583_v30  ;;  %6965 = vst [vmem:[#allocation15_spill] sm:$0xff] %v5744_v8 }
 0x549   :  { %5003 = vrot.lane.b32.xlu0 %v5002_v50, %s5115_s16  ;;  %4556 = vmatprep.subr.bf16.mxu0 %v4555_v52  ;;  %v5626_v50 = vadd.s32 80, %v5325_v19  ;;  %vm5668_vm12 = vcmp.eq.s32.totalorder %v124_v49, %v5474_v34  ;;  %v5724_v49 = vadd.s32 104, %v5325_v19 }
 0x54a   :  { %4558 = vmatpush3.bf16.msra.mxu0 %v4555_v52  ;;  %v903_v14 = vld [vmem:[%s6862_s8 + $0x18] sm:$0xff]  ;;  %vm157_vm15 = vmand %vm5663_vm11, %vm5668_vm12  ;;  %vm5760_vm11 = vcmp.eq.s32.totalorder %v128_v46, %v5474_v34  ;;  %vm5772_vm12 = vcmp.eq.s32.totalorder %v96_v53, %v5471_v31 }
 0x54b   :  { %v4997_v17 = vpack.i.bf16 %v903_v14, %v5460_v24  ;;  %v4559_v20 = vpack.c.bf16 %v903_v14, %v5460_v24  ;;  %v127_v24 = vand.u32 15, %v5626_v50  ;;  %v5741_v4 = vsel %vm157_vm15, 1.0, %v6869_v59  ;;  %vm161_vm14 = vmand %vm5751_vm9, %vm5760_vm11 }
 0x54c   :  { %6964 = vst [vmem:[#allocation14_spill] sm:$0xff] %v5741_v4  ;;  %v130_v22 = vand.u32 15, %v5724_v49  ;;  %vm162_vm15 = vmand %vm5772_vm12, %vm5777_vm13  ;;  %v132_v14 = vand.u32 15, %v5767_v25  ;;  %vm116_vm9 = vcmp.eq.s32.totalorder %v99_v61, %v5471_v31 }
 0x54d   :  { %4998 = vrot.lane.b32.xlu1 %v4997_v17, %s5115_s16  ;;  %4560 = vmatprep.subr.bf16.mxu0 %v4559_v20  ;;  %v126_v17 = vand.u32 15, %v5612_v43  ;;  %vm5729_vm7 = vcmp.eq.s32.totalorder %v127_v24, %v5474_v34 }
 0x54e   :  { %4562 = vmatpush3.bf16.msra.mxu0 %v4559_v20  ;;  %v94_v20 = vshra.s32 %v5626_v50, 6  ;;  %vm5805_vm2 = vcmp.eq.s32.totalorder %v130_v22, %v5474_v34 }
 0x54f   :  { %vm5713_vm4 = vcmp.eq.s32.totalorder %v126_v17, %v5474_v34  ;;  %v5818_v17 = vsel %vm161_vm14, 1.0, %v6869_v59 }
 0x550   :  { %vm5718_vm6 = vcmp.eq.s32.totalorder %v94_v20, %v5471_v31  ;;  %vm159_vm8 = vmand %vm5703_vm1, %vm5713_vm4  ;;  %v97_v20 = vshra.s32 %v5724_v49, 6  ;;  %vm115_vm4 = vcmp.eq.s32.totalorder %v98_v37, %v5471_v31  ;;  %6980 = vst [vmem:[#allocation18_spill] sm:$0xff] %v5818_v17 }
 0x551   :  { %3946 = vmatmul.mubr.msk.f32.vlgmr.msra.gmra.mrb[4].mxu0 %vm904_vm3, %v5597_v39  ;;  %vm160_vm10 = vmand %vm5718_vm6, %vm5729_vm7  ;;  %v5786_v45 = vsel %vm159_vm8, 1.0, %v6869_v59  ;;  %vm148_vm6 = vcmp.eq.s32.totalorder %v131_v36, %v5474_v34 }
 0x552   :  { %3948 = vmatprep.mubr.msk.f32.mxu0 %vm904_vm3, %v5600_v41  ;;  %6974 = vst [vmem:[#allocation16_spill] sm:$0xff] %v5786_v45  ;;  %v5789_v46 = vsel %vm160_vm10, 1.0, %v6869_v59  ;;  %vm5800_vm1 = vcmp.eq.s32.totalorder %v97_v20, %v5471_v31  ;;  %v5821_v20 = vsel %vm162_vm15, 1.0, %v6869_v59  ;;  %vm164_vm8 = vmand %vm115_vm4, %vm148_vm6  ;;  %vm149_vm10 = vcmp.eq.s32.totalorder %v132_v14, %v5474_v34 }
 0x553   :  { %6975 = vst [vmem:[#allocation17_spill] sm:$0xff] %v5789_v46  ;;  %6981 = vst [vmem:[#allocation19_spill] sm:$0xff] %v5821_v20  ;;  %v5837_v24 = vsel %vm164_vm8, 1.0, %v6869_v59  ;;  %v687_v34 = vmul.f32 %v5383_v51, %v5405_v57  ;;  %v6868_v57 = vshra.s32 %v5325_v19, 4 }
 0x554   :  { %vm163_vm7 = vmand %vm5800_vm1, %vm5805_vm2  ;;  %6983 = vst [vmem:[#allocation21_spill] sm:$0xff] %v5837_v24 }
 0x555   :  { %3949 = vmatmul.mubr.msk.f32.gmra.mrb[6].mxu0 %vm904_vm3, %v5645_v1  ;;  %v5834_v22 = vsel %vm163_vm7, 1.0, %v6869_v59  ;;  %vm165_vm11 = vmand %vm116_vm9, %vm149_vm10  ;;  %v772_v36 = vadd.f32 %v770_v15, %v687_v34  ;;  %v6865_v34 = vshra.s32 %v5509_v42, 4 }
 0x556   :  { %3951 = vmatprep.mubr.msk.f32.mxu0 %vm904_vm3, %v5648_v3  ;;  %6982 = vst [vmem:[#allocation20_spill] sm:$0xff] %v5834_v22  ;;  %v5848_v37 = vsel %vm165_vm11, 1.0, %v6869_v59  ;;  %vm5920_vm1 = vmpackc.low %vm417_vm0, %vm417_vm0 }
 0x557   :  { %6984 = vst [vmem:[#allocation22_spill] sm:$0xff] %v5848_v37 }
 0x559   :  { %3952 = vmatmul.mubr.msk.f32.gmra.mrb[8].mxu0 %vm904_vm3, %v5693_v29 }
 0x55a   :  { %3954 = vmatprep.mubr.msk.f32.mxu0 %vm904_vm3, %v5696_v33 }
 0x55d   :  { %3955 = vmatmul.mubr.msk.f32.gmra.mrb[10].mxu0 %vm904_vm3, %v5741_v4 }
 0x55e   :  { %3957 = vmatprep.mubr.msk.f32.mxu0 %vm904_vm3, %v5744_v8 }
 0x561   :  { %3958 = vmatmul.mubr.msk.f32.gmra.mrb[12].mxu0 %vm904_vm3, %v5786_v45 }
 0x562   :  { %3960 = vmatprep.mubr.msk.f32.mxu0 %vm904_vm3, %v5789_v46 }
 0x565   :  { %3961 = vmatmul.mubr.msk.f32.gmra.mrb[14].mxu0 %vm904_vm3, %v5818_v17 }
 0x566   :  { %3963 = vmatprep.mubr.msk.f32.mxu0 %vm904_vm3, %v5821_v20 }
 0x569   :  { %3964 = vmatmul.mubr.msk.f32.gmra.mrb[16].mxu0 %vm904_vm3, %v5834_v22 }
 0x56a   :  { %3966 = vmatprep.mubr.msk.f32.mxu0 %vm904_vm3, %v5837_v24 }
 0x56d   :  { %3967 = vmatmul.mubr.msk.f32.gmra.mrb[18].mxu0 %vm904_vm3, %v5848_v37 }
 0x56e   :  { %4033 = vmatprep.mubr.msk.f32.mxu0 %vm417_vm0, %v772_v36  ;;  %v214_v36 = vand.u32 3, %v6868_v57 }
 0x570   :  { %vm230_vm13 = vcmp.eq.s32.totalorder %v214_v36, %v5471_v31 }
 0x5bb   :  { %v5004_v52 = vpop.permute.xlu0 %5003 }
 0x5bc   :  { %v5006_v0 = vunpack.i.h.bf16 %v5004_v52  ;;  %v5005_v2 = vunpack.i.l.bf16 %v5004_v52  ;;  %v6866_v52 = vshra.s32 %v5498_v40, 4 }
 0x5be   :  { %v4563_v53 = vpack.c.bf16 %v5006_v0, %v5005_v2  ;;  %v217_v0 = vand.u32 3, %v6865_v34  ;;  %v6873_v2 = vshra.s32 %v5523_v56, 4 }
 0x5bf   :  { %v4999_v61 = vpop.permute.xlu1 %4998 }
 0x5c0   :  { %v5001_v14 = vunpack.i.h.bf16 %v4999_v61  ;;  %v5000_v23 = vunpack.i.l.bf16 %v4999_v61  ;;  %4564 = vmatprep.subr.bf16.mxu1 %v4563_v53  ;;  %v6874_v61 = vshra.s32 %v5514_v44, 4  ;;  %vm233_vm14 = vcmp.eq.s32.totalorder %v217_v0, %v5471_v31 }
 0x5c1   :  { %4566 = vmatpush3.bf16.msra.mxu1 %v4563_v53  ;;  %v216_v53 = vand.u32 3, %v6866_v52 }
 0x5c2   :  { %v4567_v51 = vpack.c.bf16 %v5001_v14, %v5000_v23  ;;  %v6867_v23 = vshra.s32 %v5495_v32, 4  ;;  %v218_v36 = vand.u32 3, %v6874_v61  ;;  %v6890_v61 = vshra.s32 %v5612_v43, 4 }
 0x5c3   :  { %vm232_vm15 = vcmp.eq.s32.totalorder %v216_v53, %v5471_v31 }
 0x5c4   :  { %4568 = vmatprep.subr.bf16.mxu1 %v4567_v51  ;;  %v215_v15 = vand.u32 3, %v6867_v23  ;;  %vm234_vm4 = vcmp.eq.s32.totalorder %v218_v36, %v5471_v31 }
 0x5c5   :  { %4570 = vmatpush3.bf16.msra.mxu1 %v4567_v51  ;;  %v5903_v51 = vsel %vm230_vm13, 1.0, %v6869_v59 }
 0x5c6   :  { %vm231_vm12 = vcmp.eq.s32.totalorder %v215_v15, %v5471_v31  ;;  %v219_v15 = vand.u32 3, %v6873_v2  ;;  %v3496_v2 = vld [vmem:[%s6857_s3 + $0x118] sm:$0xff] }
 0x5c7   :  { %v5900_v14 = vsel %vm231_vm12, 1.0, %v6869_v59 }
 0x5c8   :  { %3978 = vmatmul.mubr.msk.f32.vlgmr.msra.gmra.mrb[8].mxu1 %vm904_vm3, %v5597_v39  ;;  %vm235_vm2 = vcmp.eq.s32.totalorder %v219_v15, %v5471_v31 }
 0x5c9   :  { %3980 = vmatprep.mubr.msk.f32.mxu1 %vm904_vm3, %v5600_v41 }
 0x5cc   :  { %3981 = vmatmul.mubr.msk.f32.gmra.mrb[10].mxu1 %vm904_vm3, %v5645_v1 }
 0x5cd   :  { %3983 = vmatprep.mubr.msk.f32.mxu1 %vm904_vm3, %v5648_v3 }
 0x5d0   :  { %3984 = vmatmul.mubr.msk.f32.gmra.mrb[12].mxu1 %vm904_vm3, %v5693_v29 }
 0x5d1   :  { %3986 = vmatprep.mubr.msk.f32.mxu1 %vm904_vm3, %v5696_v33 }
 0x5d4   :  { %3987 = vmatmul.mubr.msk.f32.gmra.mrb[14].mxu1 %vm904_vm3, %v5741_v4  ;;  %v6905_v4 = vshra.s32 %v5688_v28, 4 }
 0x5d5   :  { %3989 = vmatprep.mubr.msk.f32.mxu1 %vm904_vm3, %v5744_v8 }
 0x5d8   :  { %3990 = vmatmul.mubr.msk.f32.gmra.mrb[16].mxu1 %vm904_vm3, %v5786_v45  ;;  %v6901_v45 = vshra.s32 %v5626_v50, 4 }
 0x5d9   :  { %3992 = vmatprep.mubr.msk.f32.mxu1 %vm904_vm3, %v5789_v46 }
 0x5dc   :  { %3993 = vmatmul.mubr.msk.f32.gmra.mrb[18].mxu1 %vm904_vm3, %v5818_v17 }
 0x5dd   :  { %3995 = vmatprep.mubr.msk.f32.mxu1 %vm904_vm3, %v5821_v20  ;;  %v6891_v20 = vshra.s32 %v5594_v38, 4 }
 0x5e0   :  { %3996 = vmatmul.mubr.msk.f32.gmra.mrb[20].mxu1 %vm904_vm3, %v5834_v22 }
 0x5e1   :  { %3998 = vmatprep.mubr.msk.f32.mxu1 %vm904_vm3, %v5837_v24  ;;  %v6988_v24 = vshra.s32 %v5550_v10, 4 }
 0x5e3   :  { %v220_v22 = vand.u32 3, %v6988_v24  ;;  %v223_v24 = vand.u32 3, %v6890_v61 }
 0x5e4   :  { %3999 = vmatmul.mubr.msk.f32.gmra.mrb[22].mxu1 %vm904_vm3, %v5848_v37  ;;  %v6985_v37 = vmov 0.0  }
 0x5e5   :  { %v5916_v0 = vsel %vm233_vm14, 1.0, %v6985_v37  ;;  %v5925_v53 = vsel %vm232_vm15, 1.0, %v6985_v37  ;;  %vm236_vm7 = vcmp.eq.s32.totalorder %v220_v22, %v5471_v31  ;;  %vm239_vm8 = vcmp.eq.s32.totalorder %v223_v24, %v5471_v31 }
 0x5e6   :  { %v5976_v24 = vsel %vm239_vm8, 1.0, %v6985_v37 }
 0x624   :  { %v3947_v34 = vpop.f32.mrb[4].mxu0 }
 0x625   :  { %v1099_v23 = vmul.f32 %v3947_v34, %v5900_v14  ;;  %v1019_v57 = vpop.f32.mrb[5].mxu0  ;;  %v221_v34 = vand.u32 3, %v6885_v21  ;;  %v5940_v21 = vsel %vm235_vm2, 1.0, %v6985_v37 }
 0x626   :  { %v1098_v59 = vmul.f32 %v5903_v51, %v1019_v57 }
 0x627   :  { %vm237_vm6 = vcmp.eq.s32.totalorder %v221_v34, %v5471_v31 }
 0x628   :  { %v4571_v57 = vpack.c.bf16 %v1099_v23, %v1098_v59  ;;  %v3950_v52 = vpop.f32.mrb[6].mxu0  ;;  %v5945_v59 = vsel %vm234_vm4, 1.0, %v6985_v37  ;;  %v6900_v23 = vshra.s32 %v5656_v5, 4  ;;  %v5960_v61 = vsel %vm237_vm6, 1.0, %v6985_v37 }
 0x629   :  { %v1101_v17 = vmul.f32 %v3950_v52, %v5916_v0  ;;  %v1029_v46 = vpop.f32.mrb[7].mxu0 }
 0x62a   :  { %4573 = vmatprep.subr.msk.bf16.mxu0 %vm5920_vm1, %v4571_v57  ;;  %v1100_v15 = vmul.f32 %v5925_v53, %v1029_v46  ;;  %v222_v46 = vand.u32 3, %v6891_v20  ;;  %v225_v22 = vand.u32 3, %v6900_v23  ;;  %v6911_v23 = vshra.s32 %v5736_v62, 4 }
 0x62b   :  { %4576 = vmatpush3.bf16.xpose.msk.msra.mxu0 %vm5920_vm1, %v4571_v57 }
 0x62c   :  { %v4577_v52 = vpack.c.bf16 %v1101_v17, %v1100_v15  ;;  %v3953_v36 = vpop.f32.mrb[8].mxu0  ;;  %v5963_v17 = vsel %vm236_vm7, 1.0, %v6985_v37  ;;  %v6904_v15 = vshra.s32 %v5724_v49, 4  ;;  %vm238_vm9 = vcmp.eq.s32.totalorder %v222_v46, %v5471_v31 }
 0x62d   :  { %v1103_v57 = vmul.f32 %v3953_v36, %v5940_v21  ;;  %v1039_v8 = vpop.f32.mrb[9].mxu0  ;;  %vm241_vm10 = vcmp.eq.s32.totalorder %v225_v22, %v5471_v31 }
 0x62e   :  { %4579 = vmatprep.subr.msk.bf16.mxu0 %vm5920_vm1, %v4577_v52  ;;  %v1102_v34 = vmul.f32 %v5945_v59, %v1039_v8  ;;  %v224_v8 = vand.u32 3, %v6901_v45  ;;  %v227_v46 = vand.u32 3, %v6904_v15  ;;  %v5996_v15 = vsel %vm241_vm10, 1.0, %v6985_v37 }
 0x630   :  { %v4583_v36 = vpack.c.bf16 %v1103_v57, %v1102_v34  ;;  %v3956_v20 = vpop.f32.mrb[10].mxu0  ;;  %v5981_v57 = vsel %vm238_vm9, 1.0, %v6985_v37  ;;  %vm240_vm11 = vcmp.eq.s32.totalorder %v224_v8, %v5471_v31  ;;  %vm243_vm12 = vcmp.eq.s32.totalorder %v227_v46, %v5471_v31 }
 0x631   :  { %v1105_v33 = vmul.f32 %v3956_v20, %v5960_v61  ;;  %v1049_v29 = vpop.f32.mrb[11].mxu0  ;;  %v5999_v34 = vsel %vm240_vm11, 1.0, %v6985_v37  ;;  %v6010_v18 = vsel %vm243_vm12, 1.0, %v6985_v37 }
 0x632   :  { %v1104_v3 = vmul.f32 %v5963_v17, %v1049_v29 }
 0x633   :  { %4582 = vmatpush3.bf16.xpose.msk.msra.mxu0 %vm5920_vm1, %v4577_v52  ;;  %v226_v52 = vand.u32 3, %v6905_v4 }
 0x634   :  { %4585 = vmatprep.subr.msk.bf16.mxu0 %vm5920_vm1, %v4583_v36  ;;  %v4589_v29 = vpack.c.bf16 %v1105_v33, %v1104_v3  ;;  %v3959_v20 = vpop.f32.mrb[12].mxu0  ;;  %v6989_v3 = vshra.s32 %v5767_v25, 4 }
 0x635   :  { %v1107_v45 = vmul.f32 %v3959_v20, %v5976_v24  ;;  %v1059_v22 = vpop.f32.mrb[13].mxu0  ;;  %vm242_vm13 = vcmp.eq.s32.totalorder %v226_v52, %v5471_v31  ;;  %v228_v20 = vand.u32 3, %v6911_v23 }
 0x636   :  { %v1106_v1 = vmul.f32 %v5981_v57, %v1059_v22  ;;  %v229_v33 = vand.u32 3, %v6989_v3  ;;  %v6015_v46 = vsel %vm242_vm13, 1.0, %v6985_v37 }
 0x637   :  { %vm244_vm15 = vcmp.eq.s32.totalorder %v228_v20, %v5471_v31 }
 0x638   :  { %v4595_v8 = vpack.c.bf16 %v1107_v45, %v1106_v1  ;;  %v3962_v4 = vpop.f32.mrb[14].mxu0  ;;  %vm245_vm14 = vcmp.eq.s32.totalorder %v229_v33, %v5471_v31 }
 0x639   :  { %v1109_v22 = vmul.f32 %v3962_v4, %v5996_v15  ;;  %v1069_v41 = vpop.f32.mrb[15].mxu0  ;;  %v6024_v3 = vsel %vm245_vm14, 1.0, %v6985_v37 }
 0x63a   :  { %v1108_v39 = vmul.f32 %v5999_v34, %v1069_v41 }
 0x63b   :  { %4588 = vmatpush3.bf16.xpose.msk.msra.mxu0 %vm5920_vm1, %v4583_v36  ;;  %v6027_v36 = vsel %vm244_vm15, 1.0, %v6985_v37 }
 0x63c   :  { %4591 = vmatprep.subr.msk.bf16.mxu0 %vm5920_vm1, %v4589_v29  ;;  %v4601_v1 = vpack.c.bf16 %v1109_v22, %v1108_v39  ;;  %v3965_v45 = vpop.f32.mrb[16].mxu0  ;;  %v1598_v22 = vld [vmem:[%s6857_s3 + $0x50] sm:$0xff] }
 0x63d   :  { %v1111_v41 = vmul.f32 %v3965_v45, %v6010_v18  ;;  %v1079_v4 = vpop.f32.mrb[17].mxu0 }
 0x63e   :  { %v1110_v52 = vmul.f32 %v6015_v46, %v1079_v4 }
 0x640   :  { %v4607_v23 = vpack.c.bf16 %v1111_v41, %v1110_v52  ;;  %v3968_v33 = vpop.f32.mrb[18].mxu0  ;;  %v6995_v41 = vshra.s32 %v5509_v42, 4  ;;  %v1601_v52 = vld [vmem:[%s6857_s3 + $0x68] sm:$0xff]  ;;  %v6998_v42 = vshra.s32 %v5514_v44, 4  ;;  %v1602_v44 = vld [vmem:[%s6857_s3 + $0x70] sm:$0xff] }
 0x641   :  { %v1113_v16 = vmul.f32 %v3968_v33, %v6024_v3  ;;  %v1089_v35 = vpop.f32.mrb[19].mxu0 }
 0x642   :  { %v1112_v39 = vmul.f32 %v6027_v36, %v1089_v35  ;;  %v688_v35 = vmul.f32 %v5394_v55, %v5392_v54  ;;  %v6991_v54 = vshra.s32 %v5495_v32, 4  ;;  %v6992_v55 = vshra.s32 %v5498_v40, 4  ;;  %v1600_v40 = vld [vmem:[%s6857_s3 + $0x60] sm:$0xff] }
 0x643   :  { %4594 = vmatpush3.bf16.xpose.msk.msra.mxu0 %vm5920_vm1, %v4589_v29  ;;  %vm281_vm8 = vcmp.eq.s32.totalorder %v6995_v41, %v5471_v31  ;;  %v5116_v32 = vmov 1.0|1.0   ;;  %vm282_vm10 = vcmp.eq.s32.totalorder %v6998_v42, %v5471_v31 }
 0x644   :  { %4597 = vmatprep.subr.msk.bf16.mxu0 %vm5920_vm1, %v4595_v8  ;;  %v4613_v20 = vpack.c.bf16 %v1113_v16, %v1112_v39  ;;  %v771_v16 = vmul.f32 %v5415_v63, %v5432_v6  ;;  %v6990_v63 = vshra.s32 %v5325_v19, 4  ;;  %vm279_vm4 = vcmp.eq.s32.totalorder %v6991_v54, %v5471_v31  ;;  %v1607_v54 = vld [vmem:[%s6857_s3 + $0x98] sm:$0xff] }
 0x645   :  { %vm280_vm6 = vcmp.eq.s32.totalorder %v6992_v55, %v5471_v31  ;;  %v6999_v39 = vshra.s32 %v5523_v56, 4  ;;  %v1603_v56 = vld [vmem:[%s6857_s3 + $0x78] sm:$0xff] }
 0x646   :  { %v773_v29 = vadd.f32 %v771_v16, %v688_v35  ;;  %vm278_vm2 = vcmp.eq.s32.totalorder %v6990_v63, %v5471_v31  ;;  %vm6091_vm9 = vmpackc.low %vm281_vm8, %vm280_vm6  ;;  %v7002_v35 = vshra.s32 %v5550_v10, 4  ;;  %v1604_v10 = vld [vmem:[%s6857_s3 + $0x80] sm:$0xff]  ;;  %v1606_v63 = vld [vmem:[%s6857_s3 + $0x90] sm:$0xff] }
 0x647   :  { %vm6075_vm7 = vmpackc.low %vm279_vm4, %vm278_vm2  ;;  %vm283_vm11 = vcmp.eq.s32.totalorder %v6999_v39, %v5471_v31  ;;  %v4703_v55 = vpack.c.bf16 %v1607_v54, %v1606_v63 }
 0x648   :  { %4620 = vmatprep.subr.msk.bf16.mxu1 %vm6075_vm7, %v5116_v32  ;;  %vm6107_vm12 = vmpackc.low %vm283_vm11, %vm282_vm10  ;;  %vm284_vm13 = vcmp.eq.s32.totalorder %v7002_v35, %v5471_v31 }
 0x649   :  { %4622 = vmatpush3.bf16.msk.msra.mxu1 %vm6075_vm7, %v5116_v32 }
 0x64a   :  { %4624 = vmatprep.subr.msk.bf16.mxu1 %vm6091_vm9, %v5116_v32 }
 0x64b   :  { %4600 = vmatpush3.bf16.xpose.msk.msra.mxu0 %vm5920_vm1, %v4595_v8  ;;  %v1596_v8 = vld [vmem:[%s6857_s3 + $0x40] sm:$0xff] }
 0x64c   :  { %4603 = vmatprep.subr.msk.bf16.mxu0 %vm5920_vm1, %v4601_v1 }
 0x64d   :  { %4626 = vmatpush3.bf16.msk.msra.mxu1 %vm6091_vm9, %v5116_v32 }
 0x64e   :  { %4628 = vmatprep.subr.msk.bf16.mxu1 %vm6107_vm12, %v5116_v32 }
 0x651   :  { %4630 = vmatpush3.bf16.msk.msra.mxu1 %vm6107_vm12, %v5116_v32 }
 0x653   :  { %4606 = vmatpush3.bf16.xpose.msk.msra.mxu0 %vm5920_vm1, %v4601_v1  ;;  %v1599_v1 = vld [vmem:[%s6857_s3 + $0x58] sm:$0xff] }
 0x654   :  { %4609 = vmatprep.subr.msk.bf16.mxu0 %vm5920_vm1, %v4607_v23  ;;  %v4687_v4 = vpack.c.bf16 %v1599_v1, %v1598_v22 }
 0x65b   :  { %4612 = vmatpush3.bf16.xpose.msk.msra.mxu0 %vm5920_vm1, %v4607_v23  ;;  %v1597_v23 = vld [vmem:[%s6857_s3 + $0x48] sm:$0xff] }
 0x65c   :  { %4615 = vmatprep.subr.msk.bf16.mxu0 %vm5920_vm1, %v4613_v20  ;;  %v4683_v6 = vpack.c.bf16 %v1597_v23, %v1596_v8  ;;  %v4695_v8 = vpack.c.bf16 %v1603_v56, %v1602_v44  ;;  %v655_v56 = vmul.f32 0.044715, %v5437_v11 }
 0x663   :  { %4618 = vmatpush3.bf16.xpose.msk.msra.mxu0 %vm5920_vm1, %v4613_v20  ;;  %v4691_v20 = vpack.c.bf16 %v1601_v52, %v1600_v40  ;;  %v657_v52 = vmul.f32 0.044715, %v5441_v13 }
 0x664   :  { %4684 = vmatprep.subr.bf16.mxu0 %v4683_v6 }
 0x66a   :  { %4034 = vmatmul.mubr.msk.f32.vlgmr.msra.gmra.mrb[20].mxu0 %vm417_vm0, %v773_v29  ;;  %v7003_v29 = vshra.s32 %v5583_v30, 4  ;;  %v1605_v30 = vld [vmem:[%s6857_s3 + $0x88] sm:$0xff] }
 0x66b   :  { %4686 = vmatpush3.bf16.msra.mxu0 %v4683_v6  ;;  %v4699_v22 = vpack.c.bf16 %v1605_v30, %v1604_v10  ;;  %v39_v6 = vld [vmem:[%s6859_s5 + $0x10] sm:$0xff]  ;;  %v659_v10 = vmul.f32 %v655_v56, %v5437_v11 }
 0x66c   :  { %4688 = vmatprep.subr.bf16.mxu0 %v4687_v4  ;;  %vm285_vm14 = vcmp.eq.s32.totalorder %v7003_v29, %v5471_v31  ;;  %v492_v1 = vrot.slane %v39_v6, %v5380_v48  ;;  %v34_v6 = vld [vmem:[%s6854_s0 + $0x28] sm:$0xff] }
 0x66d   :  { %vm6129_vm15 = vmpackc.low %vm285_vm14, %vm284_vm13 }
 0x66e   :  { %4632 = vmatprep.subr.msk.bf16.mxu1 %vm6129_vm15, %v5116_v32  ;;  %v648_v41 = vadd.f32 %v5409_v58, %v492_v1  ;;  %v643_v40 = vadd.f32 %v5411_v60, %v492_v1  ;;  %v663_v60 = vmul.f32 %v659_v10, %v5437_v11  ;;  %v30_v1 = vld [vmem:[%s6854_s0 + $0x8] sm:$0xff] }
 0x66f   :  { %4690 = vmatpush3.bf16.msra.mxu0 %v4687_v4  ;;  %4634 = vmatpush3.bf16.msk.msra.mxu1 %vm6129_vm15, %v5116_v32 }
 0x670   :  { %4692 = vmatprep.subr.bf16.mxu0 %v4691_v20  ;;  %v658_v4 = vmul.f32 0.044715, %v648_v41  ;;  %v656_v39 = vmul.f32 0.044715, %v643_v40 }
 0x672   :  { %v662_v42 = vmul.f32 %v658_v4, %v648_v41  ;;  %v660_v35 = vmul.f32 %v656_v39, %v643_v40 }
 0x673   :  { %4694 = vmatpush3.bf16.msra.mxu0 %v4691_v20  ;;  %v661_v20 = vmul.f32 %v657_v52, %v5441_v13 }
 0x674   :  { %4696 = vmatprep.subr.bf16.mxu0 %v4695_v8  ;;  %v666_v44 = vmul.f32 %v662_v42, %v648_v41  ;;  %v664_v30 = vmul.f32 %v660_v35, %v643_v40 }
 0x675   :  { %v665_v29 = vmul.f32 %v661_v20, %v5441_v13 }
 0x676   :  { %v668_v54 = vadd.f32 %v664_v30, %v643_v40 }
 0x677   :  { %4698 = vmatpush3.bf16.msra.mxu0 %v4695_v8  ;;  %v670_v8 = vadd.f32 %v666_v44, %v648_v41  ;;  %v669_v58 = vadd.f32 %v665_v29, %v5441_v13 }
 0x678   :  { %4700 = vmatprep.subr.bf16.mxu0 %v4699_v22  ;;  %v672_v4 = vmul.f32 0.7978846, %v668_v54 }
 0x679   :  { %v673_v63 = vmul.f32 0.7978846, %v669_v58  ;;  %v653_v58 = vmul.f32 0.5, %v5441_v13 }
 0x67b   :  { %4702 = vmatpush3.bf16.msra.mxu0 %v4699_v22  ;;  %v674_v22 = vmul.f32 0.7978846, %v670_v8  ;;  %v654_v8 = vmul.f32 0.5, %v648_v41  ;;  %v7007_v41 = vshra.s32 %v5612_v43, 4  ;;  %v1610_v43 = vld [vmem:[%s6857_s3 + $0xb0] sm:$0xff] }
 0x67c   :  { %4704 = vmatprep.subr.bf16.mxu0 %v4703_v55 }
 0x67d   :  { %5041 = vtanh.f32 %v674_v22  ;;  %vm287_vm4 = vcmp.eq.s32.totalorder %v7007_v41, %v5471_v31 }
 0x67e   :  { %5043 = vtanh.f32 %v673_v63 }
 0x67f   :  { %4706 = vmatpush3.bf16.msra.mxu0 %v4703_v55  ;;  %v667_v55 = vadd.f32 %v663_v60, %v5437_v11  ;;  %5045 = vtanh.f32 %v672_v4 }
 0x681   :  { %v671_v20 = vmul.f32 0.7978846, %v667_v55  ;;  %v1608_v55 = vld [vmem:[%s6857_s3 + $0xa0] sm:$0xff] }
 0x683   :  { %5047 = vtanh.f32 %v671_v20 }
 0x687   :  { %v5042_v56 = vpop.eup %5041 }
 0x688   :  { %v5044_v35 = vpop.eup %5043  ;;  %v682_v29 = vadd.f32 1.0, %v5042_v56 }
 0x689   :  { %v681_v10 = vadd.f32 1.0, %v5044_v35  ;;  %v5046_v30 = vpop.eup %5045  ;;  %v7010_v35 = vshra.s32 %v5626_v50, 4 }
 0x68a   :  { %v686_v22 = vmul.f32 %v682_v29, %v654_v8  ;;  %v680_v54 = vadd.f32 1.0, %v5046_v30  ;;  %v7014_v30 = vshra.s32 %v5688_v28, 4  ;;  %v7018_v28 = vshra.s32 %v5736_v62, 4 }
 0x68b   :  { %v685_v63 = vmul.f32 %v681_v10, %v653_v58  ;;  %vm288_vm8 = vcmp.eq.s32.totalorder %v7010_v35, %v5471_v31  ;;  %v7015_v58 = vshra.s32 %v5724_v49, 4  ;;  %v7019_v49 = vshra.s32 %v5767_v25, 4 }
 0x68c   :  { %vm290_vm13 = vcmp.eq.s32.totalorder %v7014_v30, %v5471_v31 }
 0x68d   :  { %v5048_v60 = vpop.eup %5047  ;;  %v5012_v4 = vpack.i.bf16 %v686_v22, %v685_v63  ;;  %vm291_vm14 = vcmp.eq.s32.totalorder %v7015_v58, %v5471_v31 }
 0x69b   :  { %v3979_v62 = vpop.f32.mrb[8].mxu1 }
 0x69c   :  { %v1276_v25 = vmul.f32 %v3979_v62, %v5900_v14 }
 0x73d   :  { %v4035_v52 = vpop.f32.mrb[20].mxu0 }
 0x73e   :  { %v6174_v42 = vadd.f32 %v4035_v52, %v34_v6  ;;  %v1411_v39 = vpop.f32.mrb[21].mxu0  ;;  %v1609_v6 = vld [vmem:[%s6857_s3 + $0xa8] sm:$0xff]  ;;  %v652_v52 = vmul.f32 0.5, %v643_v40  ;;  %v1611_v40 = vld [vmem:[%s6857_s3 + $0xb8] sm:$0xff] }
 0x73f   :  { %v6176_v44 = vadd.f32 %v1411_v39, %v30_v1  ;;  %v7006_v1 = vshra.s32 %v5594_v38, 4  ;;  %v4707_v13 = vpack.c.bf16 %v1609_v6, %v1608_v55  ;;  %v679_v39 = vadd.f32 1.0, %v5048_v60 }
 0x740   :  { %1422 = vmax.xlane.f32.xlu1 %v6174_v42  ;;  %v651_v38 = vmul.f32 0.5, %v5437_v11  ;;  %v684_v56 = vmul.f32 %v680_v54, %v652_v52  ;;  %v7011_v11 = vshra.s32 %v5656_v5, 4  ;;  %v4711_v29 = vpack.c.bf16 %v1611_v40, %v1610_v43 }
 0x741   :  { %1420 = vmax.xlane.f32.xlu0 %v6176_v44  ;;  %vm286_vm2 = vcmp.eq.s32.totalorder %v7006_v1, %v5471_v31  ;;  %4708 = vmatprep.subr.bf16.mxu0 %v4707_v13 }
 0x742   :  { %vm6193_vm6 = vmpackc.low %vm287_vm4, %vm286_vm2  ;;  %4710 = vmatpush3.bf16.msra.mxu0 %v4707_v13  ;;  %vm289_vm10 = vcmp.eq.s32.totalorder %v7011_v11, %v5471_v31  ;;  %v683_v8 = vmul.f32 %v679_v39, %v651_v38  ;;  %vm292_vm4 = vcmp.eq.s32.totalorder %v7018_v28, %v5471_v31 }
 0x743   :  { %4636 = vmatprep.subr.msk.bf16.mxu1 %vm6193_vm6, %v5116_v32  ;;  %vm6217_vm11 = vmpackc.low %vm289_vm10, %vm288_vm8  ;;  %4712 = vmatprep.subr.bf16.mxu0 %v4711_v29  ;;  %vm293_vm8 = vcmp.eq.s32.totalorder %v7019_v49, %v5471_v31  ;;  %v1196_v31 = vpop.f32.mrb[9].mxu1 }
 0x744   :  { %4638 = vmatpush3.bf16.msk.msra.mxu1 %vm6193_vm6, %v5116_v32  ;;  %vm6230_vm2 = vmpackc.low %vm291_vm14, %vm290_vm13  ;;  %v5007_v5 = vpack.i.bf16 %v684_v56, %v683_v8  ;;  %v1275_v60 = vmul.f32 %v5903_v51, %v1196_v31  ;;  %v3982_v63 = vpop.f32.mrb[10].mxu1 }
 0x745   :  { %4640 = vmatprep.subr.msk.bf16.mxu1 %vm6217_vm11, %v5116_v32  ;;  %vm6247_vm10 = vmpackc.low %vm293_vm8, %vm292_vm4  ;;  %v1278_v54 = vmul.f32 %v3982_v63, %v5916_v0  ;;  %v1206_v55 = vpop.f32.mrb[11].mxu1 }
 0x746   :  { %4714 = vmatpush3.bf16.msra.mxu0 %v4711_v29  ;;  %v4651_v6 = vpack.c.bf16 %v1276_v25, %v1275_v60  ;;  %v1277_v1 = vmul.f32 %v5925_v53, %v1206_v55  ;;  %v3985_v41 = vpop.f32.mrb[12].mxu1 }
 0x747   :  { %v1280_v13 = vmul.f32 %v3985_v41, %v5940_v21 }
 0x748   :  { %4642 = vmatpush3.bf16.msk.msra.mxu1 %vm6217_vm11, %v5116_v32  ;;  %v4655_v52 = vpack.c.bf16 %v1278_v54, %v1277_v1 }
 0x749   :  { %4644 = vmatprep.subr.msk.bf16.mxu1 %vm6230_vm2, %v5116_v32 }
 0x74c   :  { %4646 = vmatpush3.bf16.msk.msra.mxu1 %vm6230_vm2, %v5116_v32 }
 0x74d   :  { %4648 = vmatprep.subr.msk.bf16.mxu1 %vm6247_vm10, %v5116_v32 }
 0x750   :  { %4650 = vmatpush3.bf16.msk.msra.mxu1 %vm6247_vm10, %v5116_v32 }
 0x751   :  { %5013 = vrot.lane.b32.xlu1 %v5012_v4, %s5115_s16  ;;  %v1216_v4 = vpop.f32.mrb[13].mxu1  ;;  %4652 = vmatprep.subr.bf16.mxu1 %v4651_v6 }
 0x752   :  { %v1279_v39 = vmul.f32 %v5945_v59, %v1216_v4  ;;  %v3988_v38 = vpop.f32.mrb[14].mxu1 }
 0x753   :  { %v1282_v56 = vmul.f32 %v3988_v38, %v5960_v61  ;;  %v1226_v43 = vpop.f32.mrb[15].mxu1 }
 0x754   :  { %v4659_v40 = vpack.c.bf16 %v1280_v13, %v1279_v39  ;;  %v1281_v35 = vmul.f32 %v5963_v17, %v1226_v43  ;;  %v3991_v11 = vpop.f32.mrb[16].mxu1 }
 0x755   :  { %v1284_v8 = vmul.f32 %v3991_v11, %v5976_v24  ;;  %v1236_v30 = vpop.f32.mrb[17].mxu1 }
 0x756   :  { %v4663_v29 = vpack.c.bf16 %v1282_v56, %v1281_v35  ;;  %v1283_v58 = vmul.f32 %v5981_v57, %v1236_v30  ;;  %v3994_v28 = vpop.f32.mrb[18].mxu1 }
 0x757   :  { %5008 = vrot.lane.b32.xlu0 %v5007_v5, %s5115_s16  ;;  %v1286_v49 = vmul.f32 %v3994_v28, %v5996_v15  ;;  %v1246_v62 = vpop.f32.mrb[19].mxu1 }
 0x758   :  { %v4667_v5 = vpack.c.bf16 %v1284_v8, %v1283_v58  ;;  %v1285_v25 = vmul.f32 %v5999_v34, %v1246_v62  ;;  %v3997_v60 = vpop.f32.mrb[20].mxu1 }
 0x759   :  { %v1288_v63 = vmul.f32 %v3997_v60, %v6010_v18  ;;  %v1256_v54 = vpop.f32.mrb[21].mxu1 }
 0x75a   :  { %v4671_v31 = vpack.c.bf16 %v1286_v49, %v1285_v25  ;;  %v1287_v55 = vmul.f32 %v6015_v46, %v1256_v54  ;;  %v4000_v41 = vpop.f32.mrb[22].mxu1 }
 0x75b   :  { %v1290_v13 = vmul.f32 %v4000_v41, %v6024_v3  ;;  %v1266_v4 = vpop.f32.mrb[23].mxu1 }
 0x75c   :  { %v4675_v1 = vpack.c.bf16 %v1288_v63, %v1287_v55  ;;  %v1289_v39 = vmul.f32 %v6027_v36, %v1266_v4  ;;  %v1595_v4 = vld [vmem:[%s6857_s3 + $0x38] sm:$0xff] }
 0x75e   :  { %v4679_v38 = vpack.c.bf16 %v1290_v13, %v1289_v39  ;;  %v1594_v13 = vld [vmem:[%s6857_s3 + $0x30] sm:$0xff] }
 0x75f   :  { %v4727_v39 = vpack.c.bf16 %v1595_v4, %v1594_v13 }
 0x7cd   :  { %v1423_v56 = vpop.xlane.xlu1 %1422 }
 0x7ce   :  { %v1425_v43 = vsub.f32 %v6174_v42, %v1423_v56  ;;  %v1421_v35 = vpop.xlane.xlu0 %1420 }
 0x7cf   :  { %v1424_v11 = vsub.f32 %v6176_v44, %v1421_v35  ;;  %v1588_v44 = vld [vmem:[%s6857_s3] sm:$0xff] }
 0x7d0   :  { %v1428_v8 = vmul.f32 1.442695, %v1425_v43 }
 0x7d1   :  { %v1426_v30 = vmul.f32 1.442695, %v1424_v11  ;;  %v5014_v58 = vpop.permute.xlu1 %5013 }
 0x7d2   :  { %v5016_v28 = vunpack.i.h.bf16 %v5014_v58  ;;  %v5015_v49 = vunpack.i.l.bf16 %v5014_v58  ;;  %v5009_v62 = vpop.permute.xlu0 %5008 }
 0x7d3   :  { %5049 = vpow2.f32 %v1426_v30  ;;  %v5011_v25 = vunpack.i.h.bf16 %v5009_v62  ;;  %v5010_v60 = vunpack.i.l.bf16 %v5009_v62  ;;  %v1788_v62 = vsub.s32 3, %v5325_v19 }
 0x7d4   :  { %5051 = vpow2.f32 %v1428_v8  ;;  %v1625_v54 = vsel %vm417_vm0, %v5015_v49, %v5016_v28 }
 0x7d5   :  { %v1624_v63 = vsel %vm417_vm0, %v5010_v60, %v5011_v25  ;;  %v6319_v25 = vld [vmem:[%s6859_s5] sm:$0xff] }
 0x7d6   :  { %4138 = vmatprep.mubr.f32.mxu0 %v1624_v63  ;;  %v1789_v60 = vrot.slane %v6319_v25, %v1788_v62  ;;  %v3388_v62 = vld [vmem:[%s6856_s2 + $0x108] sm:$0xff] }
 0x7d7   :  { %4139 = vmatmul.mubr.f32.vlgmr.msra.gmra.mrb[22].mxu0 %v1625_v54 }
 0x7dd   :  { %v5050_v42 = vpop.eup %5049 }
 0x7de   :  { %v5052_v55 = vpop.eup %5051  ;;  %4068 = vmatprep.mubr.f32.mxu1 %v5050_v42 }
 0x7df   :  { %4069 = vmatmul.mubr.f32.vlgmr.msra.gmra.mrb[24].mxu1 %v5052_v55 }
 0x7e0   :  { %4654 = vmatpush3.bf16.msra.mxu1 %v4651_v6  ;;  %v1589_v6 = vld [vmem:[%s6857_s3 + $0x8] sm:$0xff] }
 0x7e1   :  { %4656 = vmatprep.subr.bf16.mxu1 %v4655_v52 }
 0x7e4   :  { %4658 = vmatpush3.bf16.msra.mxu1 %v4655_v52  ;;  %v1590_v52 = vld [vmem:[%s6857_s3 + $0x10] sm:$0xff] }
 0x7e5   :  { %4660 = vmatprep.subr.bf16.mxu1 %v4659_v40 }
 0x7e8   :  { %4662 = vmatpush3.bf16.msra.mxu1 %v4659_v40  ;;  %v4715_v40 = vpack.c.bf16 %v1589_v6, %v1588_v44 }
 0x7e9   :  { %4664 = vmatprep.subr.bf16.mxu1 %v4663_v29 }
 0x7ea   :  { %4716 = vmatprep.subr.bf16.mxu0 %v4715_v40 }
 0x7eb   :  { %4718 = vmatpush3.bf16.msra.mxu0 %v4715_v40 }
 0x7ec   :  { %4666 = vmatpush3.bf16.msra.mxu1 %v4663_v29  ;;  %v1591_v29 = vld [vmem:[%s6857_s3 + $0x18] sm:$0xff] }
 0x7ed   :  { %4668 = vmatprep.subr.bf16.mxu1 %v4667_v5 }
 0x7f0   :  { %4670 = vmatpush3.bf16.msra.mxu1 %v4667_v5  ;;  %v4719_v5 = vpack.c.bf16 %v1591_v29, %v1590_v52 }
 0x7f1   :  { %4672 = vmatprep.subr.bf16.mxu1 %v4671_v31 }
 0x7f2   :  { %4720 = vmatprep.subr.bf16.mxu0 %v4719_v5 }
 0x7f3   :  { %4722 = vmatpush3.bf16.msra.mxu0 %v4719_v5 }
 0x7f4   :  { %4674 = vmatpush3.bf16.msra.mxu1 %v4671_v31  ;;  %v1592_v31 = vld [vmem:[%s6857_s3 + $0x20] sm:$0xff] }
 0x7f5   :  { %4676 = vmatprep.subr.bf16.mxu1 %v4675_v1 }
 0x7f8   :  { %4678 = vmatpush3.bf16.msra.mxu1 %v4675_v1  ;;  %v1593_v1 = vld [vmem:[%s6857_s3 + $0x28] sm:$0xff] }
 0x7f9   :  { %4680 = vmatprep.subr.bf16.mxu1 %v4679_v38  ;;  %v4723_v41 = vpack.c.bf16 %v1593_v1, %v1592_v31 }
 0x7fb   :  { %4724 = vmatprep.subr.bf16.mxu0 %v4723_v41 }
 0x7fc   :  { %4682 = vmatpush3.bf16.msra.mxu1 %v4679_v38  ;;  %4726 = vmatpush3.bf16.msra.mxu0 %v4723_v41 }
 0x7fd   :  { %4728 = vmatprep.subr.bf16.mxu0 %v4727_v39 }
 0x800   :  { %4730 = vmatpush3.bf16.msra.mxu0 %v4727_v39 }
 0x801   :  { %4780 = vmatprep.subr.bf16.mxu0 %v5303_v7 }
 0x8b2   :  { %v4070_v38 = vpop.f32.mrb[24].mxu1 }
 0x8b3   :  { %5053 = vrcp.f32 %v4070_v38  ;;  %v1496_v56 = vpop.f32.mrb[25].mxu1  ;;  %vm1506_vm13 = vcmp.gt.f32.partialorder %v4070_v38, 0.0  ;;  %v3380_v38 = vld [vmem:[%s6856_s2 + $0xc8] sm:$0xff] }
 0x8b4   :  { %5055 = vrcp.f32 %v1496_v56  ;;  %vm1505_vm14 = vcmp.gt.f32.partialorder %v1496_v56, 0.0  ;;  %v3383_v56 = vld [vmem:[%s6856_s2 + $0xe0] sm:$0xff] }
 0x8bd   :  { %v5054_v43 = vpop.eup %5053 }
 0x8be   :  { %v5056_v35 = vpop.eup %5055  ;;  %v1510_v11 = vsel %vm1506_vm13, %v5054_v43, 0.0  ;;  %v4731_v43 = vpack.c.bf16 %v3383_v56, %v3380_v38 }
 0x8bf   :  { %v1509_v8 = vsel %vm1505_vm14, %v5056_v35, 0.0  ;;  %v1512_v58 = vmul.f32 %v5052_v55, %v1510_v11  ;;  %v3379_v35 = vld [vmem:[%s6856_s2 + $0xc0] sm:$0xff]  ;;  %v3382_v11 = vld [vmem:[%s6856_s2 + $0xd8] sm:$0xff] }
 0x8c0   :  { %v1511_v30 = vmul.f32 %v5050_v42, %v1509_v8  ;;  %v4733_v8 = vpack.c.bf16 %v3382_v11, %v3379_v35  ;;  %4732 = vmatprep.subr.bf16.mxu1 %v4731_v43 }
 0x8c2   :  { %4103 = vmatprep.mubr.f32.mxu1 %v1511_v30  ;;  %v3386_v30 = vld [vmem:[%s6856_s2 + $0xf8] sm:$0xff] }
 0x8c3   :  { %4104 = vmatmul.mubr.f32.vlgmr.msra.gmra.mrb[26].mxu1 %v1512_v58  ;;  %v3389_v58 = vld [vmem:[%s6856_s2 + $0x110] sm:$0xff] }
 0x8c4   :  { %1937 = vmatprep.mubr.f32.mxu1 %v6985_v37  ;;  %4734 = vmatpush1.bf16.msra.mxu1 %v4733_v8 }
 0x996   :  { %v4105_v28 = vpop.f32.mrb[26].mxu1 }
 0x997   :  { %v1579_v49 = vpop.f32.mrb[27].mxu1 }
 0x998   :  { %4157 = vmatprep.mubr.msk.f32.mxu0 %vm417_vm0, %v1579_v49  ;;  %v3385_v49 = vld [vmem:[%s6856_s2 + $0xf0] sm:$0xff] }
 0x999   :  { %4158 = vmatmul.mubr.msk.f32.vlgmr.msra.gmra.mrb[22].mxu0 %vm417_vm0, %v4105_v28  ;;  %v4735_v28 = vpack.c.bf16 %v3389_v58, %v3386_v30  ;;  %v1820_v58 = vsub.s32 4, %v5325_v19 }
 0x99a   :  { %4782 = vmatpush3.bf16.msra.mxu0 %v5303_v7 }
 0x99b   :  { %4784 = vmatprep.subr.bf16.mxu0 %v5308_v9  ;;  %4736 = vmatprep.subr.bf16.mxu1 %v4735_v28  ;;  %v1826_v28 = vsub.s32 5, %v5325_v19 }
 0x99e   :  { %4786 = vmatpush3.bf16.msra.mxu0 %v5308_v9 }
 0x99f   :  { %4788 = vmatprep.subr.bf16.mxu0 %v5319_v12 }
 0x9a2   :  { %4790 = vmatpush3.bf16.msra.mxu0 %v5319_v12 }
 0x9a3   :  { %4792 = vmatprep.subr.bf16.mxu0 %v5373_v47 }
 0x9a6   :  { %4794 = vmatpush3.bf16.msra.mxu0 %v5373_v47 }
 0xa6c   :  { %v4159_v63 = vpop.f32.mrb[22].mxu0 }
 0xa6d   :  { %v1785_v54 = vadd.f32 %v4159_v63, %v5219_v26  ;;  %v1775_v42 = vpop.f32.mrb[23].mxu0  ;;  %v3392_v63 = vld [vmem:[%s6856_s2 + $0x128] sm:$0xff] }
 0xa6e   :  { %v1784_v55 = vadd.f32 %v1775_v42, %v5221_v27 }
 0xa6f   :  { %v6324_v44 = vadd.f32 %v1789_v60, %v1785_v54  ;;  %v3395_v54 = vld [vmem:[%s6856_s2 + $0x140] sm:$0xff] }
 0xa70   :  { %v6326_v6 = vadd.f32 %v1789_v60, %v1784_v55  ;;  %v4737_v60 = vpack.c.bf16 %v3388_v62, %v3385_v49  ;;  %v4739_v42 = vpack.c.bf16 %v3395_v54, %v3392_v63  ;;  %v3391_v55 = vld [vmem:[%s6856_s2 + $0x120] sm:$0xff]  ;;  %v1821_v49 = vrot.slane %v6319_v25, %v1820_v58 }
 0xa71   :  { %v1795_v52 = vsel %vm417_vm0, %v6324_v44, 0.0  ;;  %v1827_v63 = vrot.slane %v6319_v25, %v1826_v28  ;;  %v3387_v54 = vld [vmem:[%s6856_s2 + $0x100] sm:$0xff] }
 0xa72   :  { %1796 = vadd.xlane.f32.xlu1 %v1795_v52  ;;  %v1792_v40 = vsel %vm417_vm0, %v6326_v6, 0.0  ;;  %4738 = vmatpush1.bf16.msra.mxu1 %v4737_v60  ;;  %v3394_v52 = vld [vmem:[%s6856_s2 + $0x138] sm:$0xff] }
 0xa73   :  { %1793 = vadd.xlane.f32.xlu0 %v1792_v40  ;;  %v4741_v40 = vpack.c.bf16 %v3394_v52, %v3391_v55  ;;  %4740 = vmatprep.subr.bf16.mxu1 %v4739_v42  ;;  %v3390_v42 = vld [vmem:[%s6856_s2 + $0x118] sm:$0xff] }
 0xa76   :  { %4742 = vmatpush1.bf16.msra.mxu1 %v4741_v40 }
 0xaff   :  { %v1797_v29 = vpop.xlane.xlu1 %1796 }
 0xb00   :  { %v1799_v5 = vmul.f32 0.015625, %v1797_v29  ;;  %v1794_v31 = vpop.xlane.xlu0 %1793  ;;  %v3398_v29 = vld [vmem:[%s6856_s2 + $0x158] sm:$0xff] }
 0xb01   :  { %v1798_v1 = vmul.f32 0.015625, %v1794_v31 }
 0xb02   :  { %v6333_v26 = vsub.f32 %v6324_v44, %v1799_v5  ;;  %v3401_v5 = vld [vmem:[%s6856_s2 + $0x170] sm:$0xff] }
 0xb03   :  { %v1800_v27 = vsub.f32 %v6326_v6, %v1798_v1  ;;  %v4743_v31 = vpack.c.bf16 %v3401_v5, %v3398_v29  ;;  %v3397_v1 = vld [vmem:[%s6856_s2 + $0x150] sm:$0xff]  ;;  %v4751_v29 = vpack.c.bf16 %v3390_v42, %v3387_v54 }
 0xb04   :  { %v1803_v4 = vmul.f32 %v6333_v26, %v6333_v26  ;;  %v5084_v42 = vld [vmem:[%s6854_s0 + $0x10] sm:$0xff] }
 0xb05   :  { %v1802_v41 = vmul.f32 %v1800_v27, %v1800_v27  ;;  %4744 = vmatprep.subr.bf16.mxu1 %v4743_v31  ;;  %v3396_v31 = vld [vmem:[%s6856_s2 + $0x148] sm:$0xff] }
 0xb06   :  { %v1807_v39 = vsel %vm417_vm0, %v1803_v4, 0.0 }
 0xb07   :  { %v1804_v13 = vsel %vm417_vm0, %v1802_v41, 0.0  ;;  %v3400_v41 = vld [vmem:[%s6856_s2 + $0x168] sm:$0xff] }
 0xb08   :  { %1805 = vadd.xlane.f32.xlu0 %v1804_v13  ;;  %v3381_v13 = vld [vmem:[%s6856_s2 + $0xd0] sm:$0xff]  ;;  %v4745_v4 = vpack.c.bf16 %v3400_v41, %v3397_v1 }
 0xb0a   :  { %4746 = vmatpush1.bf16.msra.mxu1 %v4745_v4  ;;  %v3402_v4 = vld [vmem:[%s6856_s2 + $0x178] sm:$0xff] }
 0xb0c   :  { %1808 = vadd.xlane.f32.xlu0 %v1807_v39  ;;  %v3384_v39 = vld [vmem:[%s6856_s2 + $0xe8] sm:$0xff] }
 0xb0d   :  { %v4747_v38 = vpack.c.bf16 %v3384_v39, %v3381_v13 }
 0xb0f   :  { %4748 = vmatprep.subr.bf16.mxu1 %v4747_v38 }
 0xb95   :  { %v1806_v56 = vpop.xlane.xlu0 %1805 }
 0xb96   :  { %v1810_v43 = vmul.f32 0.015625, %v1806_v56 }
 0xb98   :  { %v1812_v35 = vadd.f32 1e-05, %v1810_v43 }
 0xb99   :  { %v1809_v11 = vpop.xlane.xlu0 %1808 }
 0xb9a   :  { %5057 = vrsqrt.f32 %v1812_v35  ;;  %v1811_v8 = vmul.f32 0.015625, %v1809_v11 }
 0xb9c   :  { %v1813_v30 = vadd.f32 1e-05, %v1811_v8 }
 0xb9e   :  { %5059 = vrsqrt.f32 %v1813_v30 }
 0xba4   :  { %v5058_v62 = vpop.eup %5057 }
 0xba5   :  { %v1816_v60 = vmul.f32 %v5058_v62, %v1800_v27  ;;  %v3393_v27 = vld [vmem:[%s6856_s2 + $0x130] sm:$0xff] }
 0xba6   :  { %v4755_v13 = vpack.c.bf16 %v3396_v31, %v3393_v27 }
 0xba7   :  { %v1822_v55 = vmul.f32 %v1821_v49, %v1816_v60  ;;  %v5083_v60 = vld [vmem:[%s6854_s0 + $0x38] sm:$0xff] }
 0xba8   :  { %v5060_v52 = vpop.eup %5059 }
 0xba9   :  { %v1828_v40 = vadd.f32 %v1827_v63, %v1822_v55  ;;  %v1817_v5 = vmul.f32 %v5060_v52, %v6333_v26  ;;  %v3399_v26 = vld [vmem:[%s6856_s2 + $0x160] sm:$0xff]  ;;  %v5085_v52 = vld [vmem:[%s6854_s0 + $0x18] sm:$0xff] }
 0xbaa   :  { %v4759_v39 = vpack.c.bf16 %v3402_v4, %v3399_v26 }
 0xbab   :  { %3403 = vmatmul.mubr.msk.f32.vlgmr.msra.gmra.mrb[28].mxu1 %vm417_vm0, %v1828_v40  ;;  %v1823_v1 = vmul.f32 %v1821_v49, %v1817_v5  ;;  %v5082_v49 = vld [vmem:[%s6854_s0 + $0x30] sm:$0xff] }
 0xbac   :  { %4750 = vmatpush3.bf16.msra.mxu1 %v4747_v38  ;;  %1943 = vmatprep.mubr.f32.mxu1 %v6985_v37  ;;  %v6431_v37 = vsub.s32 6, %v5325_v19 }
 0xbad   :  { %4752 = vmatprep.subr.bf16.mxu1 %v4751_v29  ;;  %v1829_v41 = vadd.f32 %v1827_v63, %v1823_v1 }
 0xbae   :  { %v1858_v38 = vrot.slane %v6319_v25, %v6431_v37 }
 0xbaf   :  { %3404 = vmatmul.mubr.msk.f32.gmra.mrb[30].mxu1 %vm417_vm0, %v1829_v41 }
 0xbb0   :  { %4754 = vmatpush3.bf16.msra.mxu1 %v4751_v29  ;;  %4176 = vmatprep.mubr.msk.f32.mxu1 %vm417_vm0, %v1828_v40 }
 0xbb1   :  { %4756 = vmatprep.subr.bf16.mxu1 %v4755_v13 }
 0xbb4   :  { %4758 = vmatpush3.bf16.msra.mxu1 %v4755_v13 }
 0xbb5   :  { %4760 = vmatprep.subr.bf16.mxu1 %v4759_v39 }
 0xbb8   :  { %4762 = vmatpush3.bf16.msra.mxu1 %v4759_v39 }
 0xbb9   :  { %4764 = vmatprep.subr.bf16.mxu1 %v5303_v7 }
 0xbbb   :  { %4177 = vmatmul.mubr.msk.f32.vlgmr.msra.gmra.mrb[32].mxu1 %vm417_vm0, %v1829_v41  ;;  %v5086_v41 = vld [vmem:[%s6859_s5 + $0x8] sm:$0xff] }
 0xbbc   :  { %4766 = vmatpush3.bf16.msra.mxu1 %v5303_v7  ;;  %v1862_v13 = vrot.slane %v5086_v41, %v6431_v37  ;;  %v7028_v41 = vld [vmem:[#allocation11_spill] sm:$0xff] }
 0xbbd   :  { %4768 = vmatprep.subr.bf16.mxu1 %v5308_v9 }
 0xbc0   :  { %4770 = vmatpush3.bf16.msra.mxu1 %v5308_v9 }
 0xbc1   :  { %4772 = vmatprep.subr.bf16.mxu1 %v5319_v12 }
 0xbc4   :  { %4774 = vmatpush3.bf16.msra.mxu1 %v5319_v12 }
 0xbc5   :  { %4776 = vmatprep.subr.bf16.mxu1 %v5373_v47 }
 0xbc8   :  { %4778 = vmatpush3.bf16.msra.mxu1 %v5373_v47  ;;  %v7022_v47 = vld [vmem:[#allocation7_spill] sm:$0xff] }
 0xc7e   :  { %v1939_v56 = vpop.f32.mrb[28].mxu1 }
 0xc7f   :  { %v1940_v7 = vadd.f32 %v1939_v56, %v1858_v38  ;;  %v1941_v43 = vpop.f32.mrb[29].mxu1  ;;  %v7023_v56 = vld [vmem:[#allocation5_spill] sm:$0xff] }
 0xc80   :  { %v6469_v4 = vadd.f32 %v1941_v43, %v1862_v13 }
 0xc81   :  { %2150 = vrot.lane.b32.xlu0 %v1940_v7, %s5115_s16  ;;  %4195 = vmatprep.mubr.msk.f32.mxu1 %vm417_vm0, %v1940_v7  ;;  %v2061_v55 = vmul.f32 %v5084_v42, %v1940_v7 }
 0xc82   :  { %v1945_v9 = vpop.f32.mrb[30].mxu1 }
 0xc83   :  { %v1946_v35 = vadd.f32 %v1945_v9, %v1858_v38  ;;  %v1947_v12 = vpop.f32.mrb[31].mxu1  ;;  %v59_v38 = vld [vmem:[%s6860_s6 + $0x10] sm:$0xff]  ;;  %v2148_v9 = vmul.f32 %v1940_v7, %v7023_v56  ;;  %v7032_v56 = vld [vmem:[#allocation15_spill] sm:$0xff] }
 0xc84   :  { %v6473_v39 = vadd.f32 %v1947_v12, %v1862_v13  ;;  %63 = vst [vmem:[%s6862_s8 + $0x20] sm:$0xff] %v59_v38  ;;  %v60_v12 = vld [vmem:[%s6860_s6 + $0x18] sm:$0xff]  ;;  %v7029_v13 = vld [vmem:[#allocation12_spill] sm:$0xff] }
 0xc85   :  { %2152 = vrot.lane.b32.xlu1 %v1946_v35, %s5115_s16  ;;  %4196 = vmatmul.mubr.msk.f32.vlgmr.msra.gmra.mrb[34].mxu1 %vm417_vm0, %v1946_v35  ;;  %v2062_v62 = vmul.f32 %v5082_v49, %v1946_v35  ;;  %64 = vst [vmem:[%s6862_s8 + $0x30] sm:$0xff] %v60_v12 }
 0xc86   :  { %4225 = vmatprep.mubr.msk.f32.mxu1 %vm904_vm3, %v7022_v47 }
 0xc8e   :  { %v6441_v11 = vpop.f32.mrb[32].mxu1 }
 0xc8f   :  { %v6443_v8 = vpop.f32.mrb[33].mxu1 }
 0xcf3   :  { %v2151_v30 = vpop.permute.xlu0 %2150 }
 0xcf4   :  { %4214 = vmatprep.mubr.msk.f32.mxu0 %vm417_vm0, %v2151_v30  ;;  %v7024_v30 = vld [vmem:[#allocation6_spill] sm:$0xff] }
 0xcf7   :  { %v2153_v58 = vpop.permute.xlu1 %2152 }
 0xcf8   :  { %4215 = vmatmul.mubr.msk.f32.vlgmr.msra.gmra.mrb[24].mxu0 %vm417_vm0, %v2153_v58  ;;  %v2149_v58 = vmul.f32 %v1946_v35, %v7024_v30  ;;  %v7037_v30 = vld [vmem:[#allocation20_spill] sm:$0xff] }
 0xcf9   :  { %4257 = vmatprep.mubr.msk.f32.mxu0 %vm904_vm3, %v7022_v47 }
 0xd58   :  { %v4197_v28 = vpop.f32.mrb[34].mxu1 }
 0xd59   :  { %v2145_v63 = vmul.f32 %v5083_v60, %v4197_v28  ;;  %v2135_v54 = vpop.f32.mrb[35].mxu1 }
 0xd5a   :  { %v2144_v40 = vmul.f32 %v5085_v52, %v2135_v54 }
 0xd5b   :  { %v6461_v29 = vadd.f32 %v2145_v63, %v2062_v62 }
 0xd5c   :  { %v2146_v5 = vadd.f32 %v2144_v40, %v2061_v55 }
 0xdcb   :  { %v4216_v27 = vpop.f32.mrb[24].mxu0 }
 0xdcc   :  { %v2224_v31 = vpop.f32.mrb[25].mxu0  ;;  %v2234_v26 = vmul.f32 %v5083_v60, %v4216_v27  ;;  %v7025_v27 = vld [vmem:[#allocation8_spill] sm:$0xff] }
 0xdcd   :  { %v2233_v1 = vmul.f32 %v5085_v52, %v2224_v31  ;;  %v7026_v31 = vld [vmem:[#allocation9_spill] sm:$0xff] }
 0xdcf   :  { %2237 = vrot.lane.b32.xlu1 %v2233_v1, %s5115_s16  ;;  %v7027_v1 = vld [vmem:[#allocation10_spill] sm:$0xff] }
 0xdd3   :  { %2239 = vrot.lane.b32.xlu1 %v2234_v26, %s5115_s16  ;;  %v7030_v26 = vld [vmem:[#allocation13_spill] sm:$0xff] }
 0xdd7   :  { %2258 = vrot.lane.b32.xlu1 %v6469_v4, %s5115_s16 }
 0xddb   :  { %2260 = vrot.lane.b32.xlu1 %v6473_v39, %s5115_s16 }
 0xe41   :  { %v2238_v43 = vpop.permute.xlu1 %2237 }
 0xe42   :  { %v2243_v47 = vadd.f32 %v2238_v43, %v2148_v9  ;;  %v7033_v9 = vld [vmem:[#allocation16_spill] sm:$0xff]  ;;  %v7034_v43 = vld [vmem:[#allocation17_spill] sm:$0xff] }
 0xe44   :  { %2247 = vrot.lane.b32.xlu0 %v2243_v47, %s5115_s16  ;;  %v7035_v47 = vld [vmem:[#allocation18_spill] sm:$0xff] }
 0xe45   :  { %v2240_v28 = vpop.permute.xlu1 %2239 }
 0xe46   :  { %v2244_v49 = vadd.f32 %v2240_v28, %v2149_v58  ;;  %v7038_v58 = vld [vmem:[#allocation21_spill] sm:$0xff]  ;;  %v7039_v28 = vld [vmem:[#allocation22_spill] sm:$0xff] }
 0xe48   :  { %2249 = vrot.lane.b32.xlu0 %v2244_v49, %s5115_s16 }
 0xe49   :  { %v2259_v62 = vpop.permute.xlu1 %2258 }
 0xe4d   :  { %v2261_v60 = vpop.permute.xlu1 %2260 }
 0xeb6   :  { %v2248_v7 = vpop.permute.xlu0 %2247 }
 0xeb7   :  { %3411 = vst.msk [vmem:[%s6862_s8 + $0x28] sm:$0xff] %vm417_vm0, %v2248_v7 }
 0xeb8   :  { %3413 = vst.msk [vmem:[%s6862_s8 + $0x28] sm:$0xff] %vm897_vm5, %v2259_v62 }
 0xeba   :  { %v2250_v35 = vpop.permute.xlu0 %2249 }
 0xebb   :  { %3412 = vst.msk [vmem:[%s6862_s8 + $0x38] sm:$0xff] %vm417_vm0, %v2250_v35 }
 0xebc   :  { %3414 = vst.msk [vmem:[%s6862_s8 + $0x38] sm:$0xff] %vm897_vm5, %v2261_v60 }
 0xebf   :  { %v3416_v63 = vld [vmem:[%s6862_s8 + $0x28] sm:$0xff] }
 0xec0   :  { %v5022_v54 = vpack.i.bf16 %v3416_v63, %v59_v38  ;;  %v4795_v42 = vpack.c.bf16 %v3416_v63, %v59_v38  ;;  %v7031_v38 = vld [vmem:[#allocation14_spill] sm:$0xff] }
 0xec2   :  { %5023 = vrot.lane.b32.xlu0 %v5022_v54, %s5115_s16  ;;  %4796 = vmatprep.subr.bf16.mxu1 %v4795_v42 }
 0xec3   :  { %4798 = vmatpush3.bf16.msra.mxu1 %v4795_v42  ;;  %v3418_v55 = vld [vmem:[%s6862_s8 + $0x38] sm:$0xff] }
 0xec4   :  { %v5017_v52 = vpack.i.bf16 %v3418_v55, %v60_v12  ;;  %v4799_v40 = vpack.c.bf16 %v3418_v55, %v60_v12  ;;  %v7036_v12 = vld [vmem:[#allocation19_spill] sm:$0xff] }
 0xec6   :  { %5018 = vrot.lane.b32.xlu1 %v5017_v52, %s5115_s16  ;;  %4800 = vmatprep.subr.bf16.mxu1 %v4799_v40 }
 0xec7   :  { %4802 = vmatpush3.bf16.msra.mxu1 %v4799_v40 }
 0xeca   :  { %4226 = vmatmul.mubr.msk.f32.vlgmr.msra.gmra.mrb[36].mxu1 %vm904_vm3, %v7025_v27 }
 0xecb   :  { %4228 = vmatprep.mubr.msk.f32.mxu1 %vm904_vm3, %v7026_v31 }
 0xece   :  { %4229 = vmatmul.mubr.msk.f32.gmra.mrb[38].mxu1 %vm904_vm3, %v7027_v1 }
 0xecf   :  { %4231 = vmatprep.mubr.msk.f32.mxu1 %vm904_vm3, %v7028_v41 }
 0xed2   :  { %4232 = vmatmul.mubr.msk.f32.gmra.mrb[40].mxu1 %vm904_vm3, %v7029_v13 }
 0xed3   :  { %4234 = vmatprep.mubr.msk.f32.mxu1 %vm904_vm3, %v7030_v26 }
 0xed6   :  { %4235 = vmatmul.mubr.msk.f32.gmra.mrb[42].mxu1 %vm904_vm3, %v7031_v38 }
 0xed7   :  { %4237 = vmatprep.mubr.msk.f32.mxu1 %vm904_vm3, %v7032_v56 }
 0xeda   :  { %4238 = vmatmul.mubr.msk.f32.gmra.mrb[44].mxu1 %vm904_vm3, %v7033_v9 }
 0xedb   :  { %4240 = vmatprep.mubr.msk.f32.mxu1 %vm904_vm3, %v7034_v43 }
 0xede   :  { %4241 = vmatmul.mubr.msk.f32.gmra.mrb[46].mxu1 %vm904_vm3, %v7035_v47 }
 0xedf   :  { %4243 = vmatprep.mubr.msk.f32.mxu1 %vm904_vm3, %v7036_v12 }
 0xee2   :  { %4244 = vmatmul.mubr.msk.f32.gmra.mrb[48].mxu1 %vm904_vm3, %v7037_v30 }
 0xee3   :  { %4246 = vmatprep.mubr.msk.f32.mxu1 %vm904_vm3, %v7038_v58 }
 0xee6   :  { %4247 = vmatmul.mubr.msk.f32.gmra.mrb[50].mxu1 %vm904_vm3, %v7039_v28 }
 0xee7   :  { %4313 = vmatprep.mubr.msk.f32.mxu1 %vm417_vm0, %v2146_v5 }
 0xf34   :  { %v5024_v49 = vpop.permute.xlu0 %5023 }
 0xf35   :  { %v5026_v62 = vunpack.i.h.bf16 %v5024_v49  ;;  %v5025_v7 = vunpack.i.l.bf16 %v5024_v49 }
 0xf37   :  { %v4803_v35 = vpack.c.bf16 %v5026_v62, %v5025_v7 }
 0xf38   :  { %v5019_v60 = vpop.permute.xlu1 %5018 }
 0xf39   :  { %v5021_v63 = vunpack.i.h.bf16 %v5019_v60  ;;  %v5020_v54 = vunpack.i.l.bf16 %v5019_v60  ;;  %4804 = vmatprep.subr.bf16.mxu0 %v4803_v35 }
 0xf3a   :  { %4806 = vmatpush3.bf16.msra.mxu0 %v4803_v35 }
 0xf3b   :  { %v4807_v42 = vpack.c.bf16 %v5021_v63, %v5020_v54 }
 0xf3d   :  { %4808 = vmatprep.subr.bf16.mxu0 %v4807_v42 }
 0xf3e   :  { %4810 = vmatpush3.bf16.msra.mxu0 %v4807_v42 }
 0xf3f   :  { %4860 = vmatprep.subr.msk.bf16.mxu0 %vm6075_vm7, %v5116_v32 }
 0xf41   :  { %4258 = vmatmul.mubr.msk.f32.vlgmr.msra.gmra.mrb[26].mxu0 %vm904_vm3, %v7025_v27 }
 0xf42   :  { %4862 = vmatpush3.bf16.msk.msra.mxu0 %vm6075_vm7, %v5116_v32  ;;  %4260 = vmatprep.mubr.msk.f32.mxu0 %vm904_vm3, %v7026_v31 }
 0xf43   :  { %4864 = vmatprep.subr.msk.bf16.mxu0 %vm6091_vm9, %v5116_v32 }
 0xf45   :  { %4261 = vmatmul.mubr.msk.f32.gmra.mrb[28].mxu0 %vm904_vm3, %v7027_v1 }
 0xf46   :  { %4866 = vmatpush3.bf16.msk.msra.mxu0 %vm6091_vm9, %v5116_v32  ;;  %4263 = vmatprep.mubr.msk.f32.mxu0 %vm904_vm3, %v7028_v41 }
 0xf47   :  { %4868 = vmatprep.subr.msk.bf16.mxu0 %vm6107_vm12, %v5116_v32 }
 0xf49   :  { %4264 = vmatmul.mubr.msk.f32.gmra.mrb[30].mxu0 %vm904_vm3, %v7029_v13 }
 0xf4a   :  { %4870 = vmatpush3.bf16.msk.msra.mxu0 %vm6107_vm12, %v5116_v32  ;;  %4266 = vmatprep.mubr.msk.f32.mxu0 %vm904_vm3, %v7030_v26 }
 0xf4b   :  { %4872 = vmatprep.subr.msk.bf16.mxu0 %vm6129_vm15, %v5116_v32 }
 0xf4d   :  { %4267 = vmatmul.mubr.msk.f32.gmra.mrb[32].mxu0 %vm904_vm3, %v7031_v38 }
 0xf4e   :  { %4874 = vmatpush3.bf16.msk.msra.mxu0 %vm6129_vm15, %v5116_v32  ;;  %4269 = vmatprep.mubr.msk.f32.mxu0 %vm904_vm3, %v7032_v56 }
 0xf4f   :  { %4876 = vmatprep.subr.msk.bf16.mxu0 %vm6193_vm6, %v5116_v32 }
 0xf51   :  { %4270 = vmatmul.mubr.msk.f32.gmra.mrb[34].mxu0 %vm904_vm3, %v7033_v9 }
 0xf52   :  { %4878 = vmatpush3.bf16.msk.msra.mxu0 %vm6193_vm6, %v5116_v32  ;;  %4272 = vmatprep.mubr.msk.f32.mxu0 %vm904_vm3, %v7034_v43 }
 0xf53   :  { %4880 = vmatprep.subr.msk.bf16.mxu0 %vm6217_vm11, %v5116_v32 }
 0xf55   :  { %4273 = vmatmul.mubr.msk.f32.gmra.mrb[36].mxu0 %vm904_vm3, %v7035_v47 }
 0xf56   :  { %4882 = vmatpush3.bf16.msk.msra.mxu0 %vm6217_vm11, %v5116_v32  ;;  %4275 = vmatprep.mubr.msk.f32.mxu0 %vm904_vm3, %v7036_v12 }
 0xf57   :  { %4884 = vmatprep.subr.msk.bf16.mxu0 %vm6230_vm2, %v5116_v32 }
 0xf59   :  { %4276 = vmatmul.mubr.msk.f32.gmra.mrb[38].mxu0 %vm904_vm3, %v7037_v30 }
 0xf5a   :  { %4886 = vmatpush3.bf16.msk.msra.mxu0 %vm6230_vm2, %v5116_v32  ;;  %4278 = vmatprep.mubr.msk.f32.mxu0 %vm904_vm3, %v7038_v58 }
 0xf5b   :  { %4888 = vmatprep.subr.msk.bf16.mxu0 %vm6247_vm10, %v5116_v32 }
 0xf5d   :  { %4279 = vmatmul.mubr.msk.f32.gmra.mrb[40].mxu0 %vm904_vm3, %v7039_v28 }
 0xf5e   :  { %4890 = vmatpush3.bf16.msk.msra.mxu0 %vm6247_vm10, %v5116_v32 }
 0xf9d   :  { %v4227_v45 = vpop.f32.mrb[36].mxu1 }
 0xf9e   :  { %v2416_v33 = vmul.f32 %v4227_v45, %v5900_v14  ;;  %v2336_v16 = vpop.f32.mrb[37].mxu1 }
 0xf9f   :  { %v2415_v23 = vmul.f32 %v5903_v51, %v2336_v16 }
 0xfa1   :  { %v4811_v20 = vpack.c.bf16 %v2416_v33, %v2415_v23  ;;  %v4230_v10 = vpop.f32.mrb[38].mxu1 }
 0xfa2   :  { %v2418_v50 = vmul.f32 %v4230_v10, %v5916_v0  ;;  %v2346_v5 = vpop.f32.mrb[39].mxu1  ;;  %v3494_v10 = vld [vmem:[%s6857_s3 + $0x108] sm:$0xff] }
 0xfa3   :  { %4813 = vmatprep.subr.msk.bf16.mxu1 %vm5920_vm1, %v4811_v20  ;;  %v2417_v55 = vmul.f32 %v5925_v53, %v2346_v5 }
 0xfa4   :  { %4816 = vmatpush3.bf16.xpose.msk.msra.mxu1 %vm5920_vm1, %v4811_v20  ;;  %v3493_v20 = vld [vmem:[%s6857_s3 + $0x100] sm:$0xff] }
 0xfa5   :  { %v4817_v32 = vpack.c.bf16 %v2418_v50, %v2417_v55  ;;  %v4233_v22 = vpop.f32.mrb[40].mxu1  ;;  %v3495_v50 = vld [vmem:[%s6857_s3 + $0x110] sm:$0xff]  ;;  %v4923_v5 = vpack.c.bf16 %v3494_v10, %v3493_v20  ;;  %v5088_v10 = vld [vmem:[%s6854_s0 + $0x28] sm:$0xff] }
 0xfa6   :  { %v2420_v52 = vmul.f32 %v4233_v22, %v5940_v21  ;;  %v2356_v40 = vpop.f32.mrb[41].mxu1  ;;  %v4927_v55 = vpack.c.bf16 %v3496_v2, %v3495_v50 }
 0xfa7   :  { %4819 = vmatprep.subr.msk.bf16.mxu1 %vm5920_vm1, %v4817_v32  ;;  %v2419_v27 = vmul.f32 %v5945_v59, %v2356_v40  ;;  %v3500_v40 = vld [vmem:[%s6857_s3 + $0x138] sm:$0xff] }
 0xfa9   :  { %v4823_v31 = vpack.c.bf16 %v2420_v52, %v2419_v27  ;;  %v4236_v1 = vpop.f32.mrb[42].mxu1  ;;  %v3499_v52 = vld [vmem:[%s6857_s3 + $0x130] sm:$0xff] }
 0xfaa   :  { %v2422_v41 = vmul.f32 %v4236_v1, %v5960_v61  ;;  %v2366_v13 = vpop.f32.mrb[43].mxu1  ;;  %v4935_v27 = vpack.c.bf16 %v3500_v40, %v3499_v52  ;;  %v3502_v1 = vld [vmem:[%s6857_s3 + $0x148] sm:$0xff] }
 0xfab   :  { %v2421_v26 = vmul.f32 %v5963_v17, %v2366_v13  ;;  %v3503_v13 = vld [vmem:[%s6857_s3 + $0x150] sm:$0xff] }
 0xfac   :  { %4822 = vmatpush3.bf16.xpose.msk.msra.mxu1 %vm5920_vm1, %v4817_v32  ;;  %v3498_v32 = vld [vmem:[%s6857_s3 + $0x128] sm:$0xff] }
 0xfad   :  { %4825 = vmatprep.subr.msk.bf16.mxu1 %vm5920_vm1, %v4823_v31  ;;  %v4829_v38 = vpack.c.bf16 %v2422_v41, %v2421_v26  ;;  %v4239_v56 = vpop.f32.mrb[44].mxu1  ;;  %v3504_v26 = vld [vmem:[%s6857_s3 + $0x158] sm:$0xff] }
 0xfae   :  { %v2424_v9 = vmul.f32 %v4239_v56, %v5976_v24  ;;  %v2376_v43 = vpop.f32.mrb[45].mxu1  ;;  %v5087_v56 = vld [vmem:[%s6859_s5 + $0x10] sm:$0xff] }
 0xfaf   :  { %v2423_v47 = vmul.f32 %v5981_v57, %v2376_v43 }
 0xfb1   :  { %v4835_v12 = vpack.c.bf16 %v2424_v9, %v2423_v47  ;;  %v4242_v30 = vpop.f32.mrb[46].mxu1  ;;  %v1866_v9 = vrot.slane %v5087_v56, %v6431_v37  ;;  %v3505_v56 = vld [vmem:[%s6857_s3 + $0x160] sm:$0xff] }
 0xfb2   :  { %v2426_v58 = vmul.f32 %v4242_v30, %v5996_v15  ;;  %v2386_v28 = vpop.f32.mrb[47].mxu1  ;;  %v2031_v30 = vmul.f32 0.044715, %v6473_v39 }
 0xfb3   :  { %v2425_v49 = vmul.f32 %v5999_v34, %v2386_v28  ;;  %v2022_v43 = vadd.f32 %v6441_v11, %v1866_v9 }
 0xfb4   :  { %4828 = vmatpush3.bf16.xpose.msk.msra.mxu1 %vm5920_vm1, %v4823_v31  ;;  %v3501_v31 = vld [vmem:[%s6857_s3 + $0x140] sm:$0xff] }
 0xfb5   :  { %4831 = vmatprep.subr.msk.bf16.mxu1 %vm5920_vm1, %v4829_v38  ;;  %v4841_v62 = vpack.c.bf16 %v2426_v58, %v2425_v49  ;;  %v4245_v7 = vpop.f32.mrb[48].mxu1  ;;  %v4939_v41 = vpack.c.bf16 %v3502_v1, %v3501_v31  ;;  %v2032_v47 = vmul.f32 0.044715, %v2022_v43  ;;  %v2035_v49 = vmul.f32 %v2031_v30, %v6473_v39 }
 0xfb6   :  { %v2428_v35 = vmul.f32 %v4245_v7, %v6010_v18  ;;  %v2396_v60 = vpop.f32.mrb[49].mxu1  ;;  %v2029_v7 = vmul.f32 0.044715, %v6469_v4  ;;  %v2028_v40 = vmul.f32 0.5, %v2022_v43  ;;  %v2027_v1 = vmul.f32 0.5, %v6473_v39 }
 0xfb7   :  { %v2427_v63 = vmul.f32 %v6015_v46, %v2396_v60  ;;  %v2036_v58 = vmul.f32 %v2032_v47, %v2022_v43  ;;  %v2039_v60 = vmul.f32 %v2035_v49, %v6473_v39  ;;  %v3507_v49 = vld [vmem:[%s6857_s3 + $0x170] sm:$0xff] }
 0xfb8   :  { %v2033_v37 = vmul.f32 %v2029_v7, %v6469_v4 }
 0xfb9   :  { %v4847_v54 = vpack.c.bf16 %v2428_v35, %v2427_v63  ;;  %v4248_v42 = vpop.f32.mrb[50].mxu1  ;;  %v2043_v11 = vadd.f32 %v2039_v60, %v6473_v39  ;;  %v2025_v39 = vmul.f32 0.5, %v6469_v4 }
 0xfba   :  { %v2430_v45 = vmul.f32 %v4248_v42, %v6024_v3  ;;  %v2406_v33 = vpop.f32.mrb[51].mxu1 }
 0xfbb   :  { %v2429_v16 = vmul.f32 %v6027_v36, %v2406_v33 }
 0xfbc   :  { %4834 = vmatpush3.bf16.xpose.msk.msra.mxu1 %vm5920_vm1, %v4829_v38  ;;  %v4943_v38 = vpack.c.bf16 %v3504_v26, %v3503_v13 }
 0xfbd   :  { %4837 = vmatprep.subr.msk.bf16.mxu1 %vm5920_vm1, %v4835_v12  ;;  %v4853_v23 = vpack.c.bf16 %v2430_v45, %v2429_v16  ;;  %v2047_v45 = vmul.f32 0.7978846, %v2043_v11 }
 0xfc4   :  { %4840 = vmatpush3.bf16.xpose.msk.msra.mxu1 %vm5920_vm1, %v4835_v12  ;;  %v2017_v12 = vadd.f32 %v6443_v8, %v1866_v9  ;;  %v2037_v8 = vmul.f32 %v2033_v37, %v6469_v4  ;;  %v3506_v9 = vld [vmem:[%s6857_s3 + $0x168] sm:$0xff] }
 0xfc5   :  { %4843 = vmatprep.subr.msk.bf16.mxu1 %vm5920_vm1, %v4841_v62  ;;  %v4947_v47 = vpack.c.bf16 %v3506_v9, %v3505_v56 }
 0xfc6   :  { %v2030_v28 = vmul.f32 0.044715, %v2017_v12  ;;  %v2041_v16 = vadd.f32 %v2037_v8, %v6469_v4 }
 0xfc8   :  { %v2034_v35 = vmul.f32 %v2030_v28, %v2017_v12  ;;  %v2045_v2 = vmul.f32 0.7978846, %v2041_v16 }
 0xfcc   :  { %4846 = vmatpush3.bf16.xpose.msk.msra.mxu1 %vm5920_vm1, %v4841_v62  ;;  %v2040_v62 = vmul.f32 %v2036_v58, %v2022_v43  ;;  %v2026_v58 = vmul.f32 0.5, %v2017_v12 }
 0xfcd   :  { %4849 = vmatprep.subr.msk.bf16.mxu1 %vm5920_vm1, %v4847_v54 }
 0xfce   :  { %v2044_v63 = vadd.f32 %v2040_v62, %v2022_v43  ;;  %v3508_v62 = vld [vmem:[%s6857_s3 + $0x178] sm:$0xff] }
 0xfcf   :  { %v4951_v7 = vpack.c.bf16 %v3508_v62, %v3507_v49 }
 0xfd0   :  { %v2048_v42 = vmul.f32 0.7978846, %v2044_v63 }
 0xfd2   :  { %5061 = vtanh.f32 %v2048_v42 }
 0xfd3   :  { %5063 = vtanh.f32 %v2047_v45 }
 0xfd4   :  { %4852 = vmatpush3.bf16.xpose.msk.msra.mxu1 %vm5920_vm1, %v4847_v54  ;;  %v2038_v54 = vmul.f32 %v2034_v35, %v2017_v12 }
 0xfd5   :  { %4855 = vmatprep.subr.msk.bf16.mxu1 %vm5920_vm1, %v4853_v23 }
 0xfd6   :  { %v2042_v33 = vadd.f32 %v2038_v54, %v2017_v12 }
 0xfdc   :  { %4858 = vmatpush3.bf16.xpose.msk.msra.mxu1 %vm5920_vm1, %v4853_v23  ;;  %v2046_v23 = vmul.f32 0.7978846, %v2042_v33 }
 0xfdd   :  { %4924 = vmatprep.subr.bf16.mxu1 %v4923_v5 }
 0xfde   :  { %5065 = vtanh.f32 %v2046_v23 }
 0xfdf   :  { %5067 = vtanh.f32 %v2045_v2 }
 0xfe3   :  { %4314 = vmatmul.mubr.msk.f32.vlgmr.msra.gmra.mrb[52].mxu1 %vm417_vm0, %v6461_v29  ;;  %v3497_v29 = vld [vmem:[%s6857_s3 + $0x120] sm:$0xff] }
 0xfe4   :  { %4926 = vmatpush3.bf16.msra.mxu1 %v4923_v5  ;;  %v4931_v22 = vpack.c.bf16 %v3498_v32, %v3497_v29  ;;  %v5062_v32 = vpop.eup %5061 }
 0xfe5   :  { %4928 = vmatprep.subr.bf16.mxu1 %v4927_v55  ;;  %v2056_v52 = vadd.f32 1.0, %v5062_v32 }
 0xfe8   :  { %4930 = vmatpush3.bf16.msra.mxu1 %v4927_v55  ;;  %v5089_v55 = vld [vmem:[%s6854_s0 + $0x8] sm:$0xff] }
 0xfe9   :  { %4932 = vmatprep.subr.bf16.mxu1 %v4931_v22 }
 0xfec   :  { %4934 = vmatpush3.bf16.msra.mxu1 %v4931_v22  ;;  %v5064_v22 = vpop.eup %5063 }
 0xfed   :  { %4936 = vmatprep.subr.bf16.mxu1 %v4935_v27  ;;  %v5066_v31 = vpop.eup %5065 }
 0xfee   :  { %v5068_v13 = vpop.eup %5067 }
 0xfef   :  { %v2053_v43 = vadd.f32 1.0, %v5068_v13 }
 0xff0   :  { %4938 = vmatpush3.bf16.msra.mxu1 %v4935_v27  ;;  %v2055_v27 = vadd.f32 1.0, %v5064_v22 }
 0xff1   :  { %4940 = vmatprep.subr.bf16.mxu1 %v4939_v41  ;;  %v2057_v35 = vmul.f32 %v2053_v43, %v2025_v39 }
 0xff2   :  { %v2059_v26 = vmul.f32 %v2055_v27, %v2027_v1 }
 0xff4   :  { %4942 = vmatpush3.bf16.msra.mxu1 %v4939_v41  ;;  %v2060_v41 = vmul.f32 %v2056_v52, %v2028_v40 }
 0xff5   :  { %4944 = vmatprep.subr.bf16.mxu1 %v4943_v38 }
 0xff6   :  { %v5032_v30 = vpack.i.bf16 %v2060_v41, %v2059_v26 }
 0xff8   :  { %4946 = vmatpush3.bf16.msra.mxu1 %v4943_v38  ;;  %v2054_v38 = vadd.f32 1.0, %v5066_v31 }
 0xff9   :  { %4948 = vmatprep.subr.bf16.mxu1 %v4947_v47 }
 0xffa   :  { %v2058_v28 = vmul.f32 %v2054_v38, %v2026_v58 }
 0xffc   :  { %4950 = vmatpush3.bf16.msra.mxu1 %v4947_v47  ;;  %v5027_v12 = vpack.i.bf16 %v2058_v28, %v2057_v35  ;;  %v3486_v35 = vld [vmem:[%s6857_s3 + $0xc8] sm:$0xff] }
 0xffd   :  { %4952 = vmatprep.subr.bf16.mxu1 %v4951_v7 }
0x1000   :  { %4954 = vmatpush3.bf16.msra.mxu1 %v4951_v7 }
0x1014   :  { %v4259_v60 = vpop.f32.mrb[26].mxu0 }
0x1015   :  { %v2593_v4 = vmul.f32 %v4259_v60, %v5900_v14  ;;  %v2513_v63 = vpop.f32.mrb[27].mxu0 }
0x1016   :  { %v2592_v37 = vmul.f32 %v5903_v51, %v2513_v63 }
0x1018   :  { %v4262_v54 = vpop.f32.mrb[28].mxu0  ;;  %v4891_v8 = vpack.c.bf16 %v2593_v4, %v2592_v37  ;;  %v3488_v4 = vld [vmem:[%s6857_s3 + $0xd8] sm:$0xff]  ;;  %v3489_v37 = vld [vmem:[%s6857_s3 + $0xe0] sm:$0xff] }
0x1019   :  { %v2595_v11 = vmul.f32 %v4262_v54, %v5916_v0  ;;  %v2523_v42 = vpop.f32.mrb[29].mxu0  ;;  %v3490_v54 = vld [vmem:[%s6857_s3 + $0xe8] sm:$0xff] }
0x101a   :  { %v2594_v45 = vmul.f32 %v5925_v53, %v2523_v42  ;;  %4892 = vmatprep.subr.bf16.mxu0 %v4891_v8  ;;  %v3491_v42 = vld [vmem:[%s6857_s3 + $0xf0] sm:$0xff] }
0x101c   :  { %v4265_v33 = vpop.f32.mrb[30].mxu0 }
0x101d   :  { %v2597_v16 = vmul.f32 %v4265_v33, %v5940_v21  ;;  %v2533_v23 = vpop.f32.mrb[31].mxu0 }
0x10b6   :  { %v4315_v20 = vpop.f32.mrb[52].mxu1 }
0x10b7   :  { %v6729_v50 = vadd.f32 %v5088_v10, %v4315_v20  ;;  %v2728_v5 = vpop.f32.mrb[53].mxu1  ;;  %v4895_v20 = vpack.c.bf16 %v2595_v11, %v2594_v45  ;;  %v2596_v10 = vmul.f32 %v5945_v59, %v2533_v23  ;;  %v4963_v11 = vpack.c.bf16 %v3490_v54, %v3489_v37 }
0x10b8   :  { %v6734_v29 = vadd.f32 %v5089_v55, %v2728_v5  ;;  %v4268_v5 = vpop.f32.mrb[32].mxu0 }
0x10b9   :  { %2739 = vmax.xlane.f32.xlu1 %v6729_v50  ;;  %v2599_v14 = vmul.f32 %v4268_v5, %v5960_v61  ;;  %v2543_v2 = vpop.f32.mrb[33].mxu0  ;;  %v4899_v51 = vpack.c.bf16 %v2597_v16, %v2596_v10 }
0x10ba   :  { %2737 = vmax.xlane.f32.xlu0 %v6734_v29  ;;  %v2598_v55 = vmul.f32 %v5963_v17, %v2543_v2  ;;  %v4271_v0 = vpop.f32.mrb[34].mxu0 }
0x10bb   :  { %v2601_v22 = vmul.f32 %v4271_v0, %v5976_v24  ;;  %v2553_v53 = vpop.f32.mrb[35].mxu0  ;;  %v3106_v0 = vsub.s32 7, %v5325_v19 }
0x10bc   :  { %v4903_v32 = vpack.c.bf16 %v2599_v14, %v2598_v55  ;;  %v2600_v52 = vmul.f32 %v5981_v57, %v2553_v53  ;;  %v4274_v40 = vpop.f32.mrb[36].mxu0 }
0x10bd   :  { %v2603_v27 = vmul.f32 %v4274_v40, %v5996_v15  ;;  %v2563_v31 = vpop.f32.mrb[37].mxu0 }
0x10be   :  { %v4907_v21 = vpack.c.bf16 %v2601_v22, %v2600_v52  ;;  %v2602_v59 = vmul.f32 %v5999_v34, %v2563_v31  ;;  %v4277_v61 = vpop.f32.mrb[38].mxu0 }
0x10bf   :  { %v2605_v41 = vmul.f32 %v4277_v61, %v6010_v18  ;;  %v2573_v13 = vpop.f32.mrb[39].mxu0 }
0x10c0   :  { %v4911_v1 = vpack.c.bf16 %v2603_v27, %v2602_v59  ;;  %v2604_v17 = vmul.f32 %v6015_v46, %v2573_v13  ;;  %v4280_v38 = vpop.f32.mrb[40].mxu0 }
0x10c1   :  { %v2607_v24 = vmul.f32 %v4280_v38, %v6024_v3  ;;  %v2583_v56 = vpop.f32.mrb[41].mxu0 }
0x10c2   :  { %v4915_v26 = vpack.c.bf16 %v2605_v41, %v2604_v17  ;;  %v2606_v57 = vmul.f32 %v6027_v36, %v2583_v56  ;;  %v43_v56 = vld [vmem:[%s6858_s4 + $0x10] sm:$0xff] }
0x10c4   :  { %v4919_v9 = vpack.c.bf16 %v2607_v24, %v2606_v57  ;;  %v41_v24 = vld [vmem:[%s6858_s4] sm:$0xff] }
0x10c5   :  { %v4971_v57 = vpack.c.bf16 %v43_v56, %v41_v24 }
0x10ca   :  { %5033 = vrot.lane.b32.xlu1 %v5032_v30, %s5115_s16 }
0x10d0   :  { %5028 = vrot.lane.b32.xlu0 %v5027_v12, %s5115_s16  ;;  %v3487_v12 = vld [vmem:[%s6857_s3 + $0xd0] sm:$0xff] }
0x10d1   :  { %v4959_v63 = vpack.c.bf16 %v3488_v4, %v3487_v12 }
0x1146   :  { %v2740_v47 = vpop.xlane.xlu1 %2739 }
0x1147   :  { %v2742_v15 = vsub.f32 %v6729_v50, %v2740_v47  ;;  %v2738_v30 = vpop.xlane.xlu0 %2737  ;;  %v47_v47 = vld [vmem:[%s6858_s4 + $0x30] sm:$0xff] }
0x1148   :  { %v2741_v34 = vsub.f32 %v6734_v29, %v2738_v30  ;;  %v3485_v29 = vld [vmem:[%s6857_s3 + $0xc0] sm:$0xff] }
0x1149   :  { %v2745_v58 = vmul.f32 1.442695, %v2742_v15  ;;  %v4955_v60 = vpack.c.bf16 %v3486_v35, %v3485_v29  ;;  %v49_v30 = vld [vmem:[%s6858_s4 + $0x40] sm:$0xff] }
0x114a   :  { %v2743_v43 = vmul.f32 1.442695, %v2741_v34  ;;  %v5034_v18 = vpop.permute.xlu1 %5033  ;;  %v51_v34 = vld [vmem:[%s6858_s4 + $0x50] sm:$0xff] }
0x114b   :  { %v5036_v39 = vunpack.i.h.bf16 %v5034_v18  ;;  %v5035_v28 = vunpack.i.l.bf16 %v5034_v18  ;;  %v5029_v46 = vpop.permute.xlu0 %5028  ;;  %4956 = vmatprep.subr.bf16.mxu1 %v4955_v60  ;;  %v55_v18 = vld [vmem:[%s6858_s4 + $0x70] sm:$0xff] }
0x114c   :  { %5069 = vpow2.f32 %v2743_v43  ;;  %v5031_v49 = vunpack.i.h.bf16 %v5029_v46  ;;  %v5030_v62 = vunpack.i.l.bf16 %v5029_v46  ;;  %v53_v43 = vld [vmem:[%s6858_s4 + $0x60] sm:$0xff] }
0x114d   :  { %5071 = vpow2.f32 %v2745_v58  ;;  %v2943_v36 = vsel %vm417_vm0, %v5035_v28, %v5036_v39  ;;  %v4979_v58 = vpack.c.bf16 %v51_v34, %v49_v30  ;;  %v4983_v39 = vpack.c.bf16 %v55_v18, %v53_v43 }
0x114e   :  { %v2942_v3 = vsel %vm417_vm0, %v5030_v62, %v5031_v49 }
0x114f   :  { %4418 = vmatprep.mubr.f32.mxu1 %v2942_v3 }
0x1150   :  { %4419 = vmatmul.mubr.f32.vlgmr.msra.gmra.mrb[54].mxu1 %v2943_v36 }
0x1151   :  { %4958 = vmatpush3.bf16.msra.mxu1 %v4955_v60  ;;  %v7041_v60 = vsub.s32 1, %v5325_v19 }
0x1152   :  { %4960 = vmatprep.subr.bf16.mxu1 %v4959_v63 }
0x1155   :  { %4962 = vmatpush3.bf16.msra.mxu1 %v4959_v63 }
0x1156   :  { %v5070_v50 = vpop.eup %5069  ;;  %4964 = vmatprep.subr.bf16.mxu1 %v4963_v11 }
0x1157   :  { %v5072_v7 = vpop.eup %5071  ;;  %4348 = vmatprep.mubr.f32.mxu0 %v5070_v50 }
0x1158   :  { %4349 = vmatmul.mubr.f32.vlgmr.msra.gmra.mrb[42].mxu0 %v5072_v7 }
0x1159   :  { %4894 = vmatpush3.bf16.msra.mxu0 %v4891_v8  ;;  %v3492_v8 = vld [vmem:[%s6857_s3 + $0xf8] sm:$0xff]  ;;  %4966 = vmatpush3.bf16.msra.mxu1 %v4963_v11 }
0x115a   :  { %4896 = vmatprep.subr.bf16.mxu0 %v4895_v20  ;;  %v4967_v45 = vpack.c.bf16 %v3492_v8, %v3491_v42 }
0x115c   :  { %4968 = vmatprep.subr.bf16.mxu1 %v4967_v45 }
0x115d   :  { %4898 = vmatpush3.bf16.msra.mxu0 %v4895_v20  ;;  %4970 = vmatpush3.bf16.msra.mxu1 %v4967_v45 }
0x115e   :  { %4900 = vmatprep.subr.bf16.mxu0 %v4899_v51 }
0x1161   :  { %4902 = vmatpush3.bf16.msra.mxu0 %v4899_v51 }
0x1162   :  { %4904 = vmatprep.subr.bf16.mxu0 %v4903_v32 }
0x1165   :  { %4906 = vmatpush3.bf16.msra.mxu0 %v4903_v32  ;;  %v3107_v32 = vrot.slane %v6319_v25, %v3106_v0 }
0x1166   :  { %4908 = vmatprep.subr.bf16.mxu0 %v4907_v21 }
0x1169   :  { %4910 = vmatpush3.bf16.msra.mxu0 %v4907_v21 }
0x116a   :  { %4912 = vmatprep.subr.bf16.mxu0 %v4911_v1 }
0x116d   :  { %4914 = vmatpush3.bf16.msra.mxu0 %v4911_v1 }
0x116e   :  { %4916 = vmatprep.subr.bf16.mxu0 %v4915_v26 }
0x1171   :  { %4918 = vmatpush3.bf16.msra.mxu0 %v4915_v26 }
0x1172   :  { %4920 = vmatprep.subr.bf16.mxu0 %v4919_v9 }
0x1175   :  { %4922 = vmatpush3.bf16.msra.mxu0 %v4919_v9  ;;  %v45_v9 = vld [vmem:[%s6858_s4 + $0x20] sm:$0xff]  ;;  %s5117_s4 = smov [#allocation2]  }
0x1176   :  { %4972 = vmatprep.subr.bf16.mxu0 %v4971_v57  ;;  %v4975_v15 = vpack.c.bf16 %v47_v47, %v45_v9 }
0x122b   :  { %v4350_v33 = vpop.f32.mrb[42].mxu0 }
0x122c   :  { %5073 = vrcp.f32 %v4350_v33  ;;  %v2813_v16 = vpop.f32.mrb[43].mxu0  ;;  %vm2823_vm3 = vcmp.gt.f32.partialorder %v4350_v33, 0.0 }
0x122d   :  { %5075 = vrcp.f32 %v2813_v16  ;;  %vm2822_vm5 = vcmp.gt.f32.partialorder %v2813_v16, 0.0 }
0x1236   :  { %v5074_v23 = vpop.eup %5073 }
0x1237   :  { %v5076_v20 = vpop.eup %5075  ;;  %v2827_v10 = vsel %vm2823_vm3, %v5074_v23, 0.0 }
0x1238   :  { %v2826_v5 = vsel %vm2822_vm5, %v5076_v20, 0.0  ;;  %v2829_v2 = vmul.f32 %v5072_v7, %v2827_v10  ;;  %v7040_v7 = vsub.s32 0, %v5325_v19 }
0x1239   :  { %v2828_v14 = vmul.f32 %v5070_v50, %v2826_v5  ;;  %v40_v50 = vld [vmem:[%s6859_s5 + $0x18] sm:$0x7]  ;;  %s3240_s5 = sshll.u32 %s5117_s4, 4  ;;  %s3241_s5 = int_to_ptr.vmem [resolvable:$true] %s3240_s5 }
0x123a   :  { %v3139_v29 = vrot.slane %v40_v50, %v7040_v7  ;;  %v3145_v4 = vrot.slane %v40_v50, %v7041_v60  ;;  %v3151_v45 = vrot.slane %v40_v50, %v5380_v48  ;;  %s5090_s17 = scalar_lea.vmem %s3241_s5, 256  ;;  %p5095_p1 = scmp.lt.s32.totalorder %s3241_s5, %s3241_s5 }
0x123b   :  { %4383 = vmatprep.mubr.f32.mxu0 %v2828_v14  ;;  %p5091_p0 = scmp.ne.s32.totalorder %s3241_s5, %s5090_s17  ;;  %p5096_p2 = scmp.lt.s32.totalorder %s5090_s17, %s5090_s17 }
0x123c   :  { %4384 = vmatmul.mubr.f32.vlgmr.msra.gmra.mrb[44].mxu0 %v2829_v2 }
0x123d   :  { %4974 = vmatpush3.bf16.msra.mxu0 %v4971_v57  ;;  %p5097_p3 = por %p5096_p2, %p5095_p1 }
0x123e   :  { %4976 = vmatprep.subr.bf16.mxu0 %v4975_v15 }
0x123f   :  { %p5098_p4 = pnand %p5097_p3, %p5091_p0 }
0x1241   :  { %4978 = vmatpush3.bf16.msra.mxu0 %v4975_v15 }
0x1242   :  { %4980 = vmatprep.subr.bf16.mxu0 %v4979_v58 }
0x1245   :  { %4982 = vmatpush3.bf16.msra.mxu0 %v4979_v58 }
0x1246   :  { %4984 = vmatprep.subr.bf16.mxu0 %v4983_v39 }
0x1249   :  { %4986 = vmatpush3.bf16.msra.mxu0 %v4983_v39 }
0x130f   :  { %v4385_v51 = vpop.f32.mrb[44].mxu0 }
0x1310   :  { %v2896_v55 = vpop.f32.mrb[45].mxu0 }
0x1311   :  { %4437 = vmatprep.mubr.msk.f32.mxu1 %vm417_vm0, %v2896_v55 }
0x1312   :  { %4438 = vmatmul.mubr.msk.f32.vlgmr.msra.gmra.mrb[54].mxu1 %vm417_vm0, %v4385_v51 }
0x13e5   :  { %v4439_v22 = vpop.f32.mrb[54].mxu1 }
0x13e6   :  { %v3103_v53 = vadd.f32 %v4439_v22, %v6324_v44  ;;  %v3093_v52 = vpop.f32.mrb[55].mxu1 }
0x13e7   :  { %v3102_v21 = vadd.f32 %v3093_v52, %v6326_v6 }
0x13e8   :  { %v3109_v40 = vadd.f32 %v3107_v32, %v3103_v53 }
0x13e9   :  { %v3108_v27 = vadd.f32 %v3107_v32, %v3102_v21 }
0x13ea   :  { %v3113_v31 = vsel %vm417_vm0, %v3109_v40, 0.0 }
0x13eb   :  { %3114 = vadd.xlane.f32.xlu1 %v3113_v31  ;;  %v3110_v59 = vsel %vm417_vm0, %v3108_v27, 0.0 }
0x13ec   :  { %3111 = vadd.xlane.f32.xlu0 %v3110_v59 }
0x1478   :  { %v3115_v1 = vpop.xlane.xlu1 %3114 }
0x1479   :  { %v3117_v61 = vmul.f32 0.015625, %v3115_v1  ;;  %v3112_v41 = vpop.xlane.xlu0 %3111 }
0x147a   :  { %v3116_v13 = vmul.f32 0.015625, %v3112_v41 }
0x147b   :  { %v3119_v17 = vsub.f32 %v3109_v40, %v3117_v61 }
0x147c   :  { %v3118_v25 = vsub.f32 %v3108_v27, %v3116_v13 }
0x147d   :  { %v3121_v38 = vmul.f32 %v3119_v17, %v3119_v17 }
0x147e   :  { %v3120_v26 = vmul.f32 %v3118_v25, %v3118_v25 }
0x147f   :  { %v3125_v6 = vsel %vm417_vm0, %v3121_v38, 0.0 }
0x1480   :  { %v3122_v44 = vsel %vm417_vm0, %v3120_v26, 0.0 }
0x1481   :  { %3123 = vadd.xlane.f32.xlu0 %v3122_v44 }
0x1485   :  { %3126 = vadd.xlane.f32.xlu0 %v3125_v6 }
0x150e   :  { %v3124_v28 = vpop.xlane.xlu0 %3123 }
0x150f   :  { %v3128_v46 = vmul.f32 0.015625, %v3124_v28 }
0x1511   :  { %v3130_v49 = vadd.f32 1e-05, %v3128_v46 }
0x1512   :  { %v3127_v62 = vpop.xlane.xlu0 %3126 }
0x1513   :  { %5077 = vrsqrt.f32 %v3130_v49  ;;  %v3129_v3 = vmul.f32 0.015625, %v3127_v62 }
0x1515   :  { %v3131_v36 = vadd.f32 1e-05, %v3129_v3 }
0x1517   :  { %5079 = vrsqrt.f32 %v3131_v36 }
0x151d   :  { %v5078_v35 = vpop.eup %5077 }
0x151e   :  { %v3134_v12 = vmul.f32 %v5078_v35, %v3118_v25 }
0x1520   :  { %v3140_v63 = vmul.f32 %v3139_v29, %v3134_v12 }
0x1521   :  { %v5080_v37 = vpop.eup %5079 }
0x1522   :  { %v3135_v54 = vmul.f32 %v5080_v37, %v3119_v17  ;;  %v3146_v11 = vadd.f32 %v3145_v4, %v3140_v63 }
0x1524   :  { %v3141_v42 = vmul.f32 %v3139_v29, %v3135_v54  ;;  %4456 = vmatprep.mubr.msk.f32.mxu0 %vm417_vm0, %v3146_v11 }
0x1526   :  { %v3147_v8 = vadd.f32 %v3145_v4, %v3141_v42 }
0x1528   :  { %4457 = vmatmul.mubr.msk.f32.vlgmr.msra.gmra.mrb[46].mxu0 %vm417_vm0, %v3147_v8 }
0x15fb   :  { %v4458_v33 = vpop.f32.mrb[46].mxu0 }
0x15fc   :  { %v3230_v16 = vadd.f32 %v4458_v33, %v3151_v45  ;;  %v3224_v23 = vpop.f32.mrb[47].mxu0 }
0x15fd   :  { %v3225_v20 = vadd.f32 %v3224_v23, %v3151_v45 }
0x15fe   :  { %3234 = vst [vmem:[#allocation2 + $0x8] sm:$0xff] %v3230_v16 }
0x15ff   :  { %3233 = vst [vmem:[#allocation2] sm:$0xff] %v3225_v20 }
0x1600   :  { %5101 = shalt.err (!%p5098_p4)
}
0x1601   :  { %s5102_s1 = scalar_lea.hbm %s6861_s7, 256 }
0x1602   :  { %p5103_p5 = scmp.ne.s32.totalorder %s6861_s7, %s5102_s1  ;;  %p5106_p6 = scmp.lt.u32.totalorder %s5102_s1, %s6861_s7 }
0x1604   :  { %p5108_p7 = pnand %p5106_p6, %p5103_p5 }
0x1606   :  { %5111 = shalt.err (!%p5108_p7)
}
0x1607   :  { %s5118_s8 = smov 128   ;;  %s5119_s23 = smov 8  }
0x1608   :  { %3246 = dma.vmem_to_hbm [thread:$0]  %s3241_s5, 256, %s6861_s7, [#allocation3], %s5118_s8, %s5118_s8, %s5119_s23  }
0x1609   :  { %5112 = dma.done.wait [#allocation3], 256  }
0x160a   :  { %5113 = vsyncadd [#allocation3], 4294967040 }
0x160b   :  { %3254 = vsyncpa [#allocation3], 1 }

</bundles_post_ra>
